<compile_context>
chip_gen: v7x
topology: tpu7x:2x2x1
jax: 0.10.0
libtpu: 0.0.40
codegen_flags: <defaults>
</compile_context>

<pallas_src>
import functools

import jax
import jax.numpy as jnp
from jax.experimental import pallas as pl
from jax.experimental.pallas import tpu as pltpu

H1, H2, H3 = 1064, 532, 3      # logical hidden sizes from the PyTorch module
H1P, H2P = 1152, 640           # lane-dense (multiple-of-128) padded hidden sizes


def _autoencoder_kernel(
    x_ref,                      # (B, TD)    bf16 D-chunk of the input (reduction stream)
    w1_ref, b1_ref,             # (TD, H1P) bf16 chunk, (1, H1P) f32
    w2_ref, b2_ref,             # (H1P, H2P), (1, H2P)   resident
    w3_ref, b3_ref,             # (H2P, H3),  (1, H3)    resident
    w4_ref, b4_ref,             # (H3, H2P),  (1, H2P)   resident
    w5_ref, b5_ref,             # (H2P, H1P), (1, H1P)   resident
    w6_ref, b6_ref,             # (H1P, TN) bf16 chunk, (1, TN) f32 (output-column stream)
    o_ref,                      # (B, TN) f32
    acc_ref,                    # VMEM (B, H1P) f32  — encoder first-layer accumulator
    h_ref,                      # VMEM (B, H1P) bf16 — last hidden (input to the final layer)
    *, k_steps):
    i = pl.program_id(0)

    @pl.when(i == 0)
    def _init():
        acc_ref[...] = jnp.zeros_like(acc_ref)

    # ---- phase 1: stream the big first-layer weight over D chunks (f32 accumulation) ----
    @pl.when(i < k_steps)
    def _accumulate():
        acc_ref[...] += jnp.dot(x_ref[...], w1_ref[...],
                                preferred_element_type=jnp.float32)

    # ---- small middle layers: run exactly once, when the reduction finishes ----
    @pl.when(i == k_steps - 1)
    def _middle():
        h1 = jnp.maximum(acc_ref[...] + b1_ref[...], 0.0)
        h2 = jnp.dot(h1.astype(jnp.bfloat16), w2_ref[...],
                     preferred_element_type=jnp.float32) + b2_ref[...]
        h2 = jnp.maximum(h2, 0.0)
        code = jnp.dot(h2.astype(jnp.bfloat16), w3_ref[...],
                       preferred_element_type=jnp.float32) + b3_ref[...]
        h3 = jnp.dot(code.astype(jnp.bfloat16), w4_ref[...],
                     preferred_element_type=jnp.float32) + b4_ref[...]
        h3 = jnp.maximum(h3, 0.0)
        h4 = jnp.dot(h3.astype(jnp.bfloat16), w5_ref[...],
                     preferred_element_type=jnp.float32) + b5_ref[...]
        h_ref[...] = jnp.maximum(h4, 0.0).astype(jnp.bfloat16)   # cast once, reused every tail step

    # ---- phase 2: stream the big last-layer weight, one lane-dense output tile per step ----
    @pl.when(i >= k_steps - 1)
    def _tail():
        o_ref[...] = (jnp.dot(h_ref[...], w6_ref[...],
                              preferred_element_type=jnp.float32)
                      + b6_ref[...]).astype(o_ref.dtype)


def _vmem_estimate_bytes(b, tile):
    """Rough peak-VMEM estimate (default double buffering) for streamed tile width `tile`."""
    bf16, f32 = 2, 4
    streamed = 2 * (b * tile * bf16            # x chunk
                    + tile * H1P * bf16        # w1 chunk
                    + H1P * tile * bf16        # w6 chunk
                    + tile * f32               # b6 chunk
                    + b * tile * f32)          # output tile
    resident = 2 * ((H1P * H2P + H2P * H3 + H3 * H2P + H2P * H1P) * bf16
                    + (H1P + H2P + H3 + H2P + H1P) * f32)
    scratch = b * H1P * (f32 + bf16)
    return streamed + resident + scratch


_VMEM_PICK_BUDGET = 40 * 2 ** 20   # picker budget — safe below v7x's 64 MiB physical VMEM
_VMEM_LIMIT_CAP = 48 * 2 ** 20     # explicit scoped-VMEM cap (v5e default is only 16 MiB)


def _pick_tile(b, d_pad):
    """Largest lane-aligned tile dividing padded D whose VMEM residency fits the budget."""
    for t in (2048, 1024, 512, 256, 128):
        if d_pad % t == 0 and _vmem_estimate_bytes(b, t) <= _VMEM_PICK_BUDGET:
            return t
    return 128


@jax.jit
def weight_autoencoder_forward(x, params):
    """params: (w1, b1, ..., w6, b6) with weights as (in, out), biases as (1, out)."""
    w1, b1, w2, b2, w3, b3, w4, b4, w5, b5, w6, b6 = params
    B, D = x.shape
    out_dtype = jnp.float32 if x.dtype == jnp.float32 else x.dtype

    # bf16 weight + activation streaming (halves DMA bytes); f32 biases, f32 MXU accumulation.
    w1, w2, w3, w4, w5, w6 = (w.astype(jnp.bfloat16) for w in (w1, w2, w3, w4, w5, w6))
    b1, b2, b3, b4, b5, b6 = (b.astype(jnp.float32) for b in (b1, b2, b3, b4, b5, b6))

    # Pad D to a multiple of 128 (lane-dense streams/stores), hidden sizes to 1152/640
    # (lane-dense middle layers), and the batch to a multiple of 8 (sublane-dense f32 blocks).
    d_pad = ((D + 127) // 128) * 128
    b_pad = ((B + 7) // 8) * 8
    dp, hp1, hp2, bp = d_pad - D, H1P - H1, H2P - H2, b_pad - B

    x = jnp.pad(x, ((0, bp), (0, dp))).astype(jnp.bfloat16)
    w1 = jnp.pad(w1, ((0, dp), (0, hp1)));  b1 = jnp.pad(b1, ((0, 0), (0, hp1)))
    w2 = jnp.pad(w2, ((0, hp1), (0, hp2))); b2 = jnp.pad(b2, ((0, 0), (0, hp2)))
    w3 = jnp.pad(w3, ((0, hp2), (0, 0)))
    w4 = jnp.pad(w4, ((0, 0), (0, hp2)));   b4 = jnp.pad(b4, ((0, 0), (0, hp2)))
    w5 = jnp.pad(w5, ((0, hp2), (0, hp1))); b5 = jnp.pad(b5, ((0, 0), (0, hp1)))
    w6 = jnp.pad(w6, ((0, hp1), (0, dp)));  b6 = jnp.pad(b6, ((0, 0), (0, dp)))

    tile = _pick_tile(b_pad, d_pad)       # shared reduction / output-column tile width
    k_steps = d_pad // tile               # phase-1 steps (stream w1 rows / x columns)
    n_steps = d_pad // tile               # phase-2 steps (stream w6 columns / output tiles)
    last_k = k_steps - 1
    grid = (k_steps + n_steps - 1,)       # phased 1-D grid: reduction, then output tiles

    x_map = lambda i: (0, jnp.minimum(i, last_k))
    w1_map = lambda i: (jnp.minimum(i, last_k), 0)
    res_map = lambda i: (0, 0)                           # resident middle layers / biases
    col_map = lambda i: (0, jnp.maximum(i - last_k, 0))  # w6 / b6 / output column tiles

    in_specs = [
        pl.BlockSpec((b_pad, tile), x_map),
        pl.BlockSpec((tile, H1P), w1_map), pl.BlockSpec((1, H1P), res_map),
        pl.BlockSpec((H1P, H2P), res_map), pl.BlockSpec((1, H2P), res_map),
        pl.BlockSpec((H2P, H3), res_map),  pl.BlockSpec((1, H3), res_map),
        pl.BlockSpec((H3, H2P), res_map),  pl.BlockSpec((1, H2P), res_map),
        pl.BlockSpec((H2P, H1P), res_map), pl.BlockSpec((1, H1P), res_map),
        pl.BlockSpec((H1P, tile), col_map), pl.BlockSpec((1, tile), col_map),
    ]
    out_specs = pl.BlockSpec((b_pad, tile), col_map)

    weights_and_biases = (w1, b1, w2, b2, w3, b3, w4, b4, w5, b5, w6, b6)
    flops = 2 * b_pad * (d_pad * H1P + H1P * H2P + H2P * H3 + H3 * H2P + H2P * H1P + H1P * d_pad)
    bytes_accessed = (x.size * x.dtype.itemsize
                      + sum(a.size * a.dtype.itemsize for a in weights_and_biases)
                      + b_pad * d_pad * jnp.dtype(out_dtype).itemsize)

    vmem_limit = int(min(_VMEM_LIMIT_CAP,
                         max(3 * _vmem_estimate_bytes(b_pad, tile) // 2, 16 * 2 ** 20)))

    out = pl.pallas_call(
        functools.partial(_autoencoder_kernel, k_steps=k_steps),
        out_shape=jax.ShapeDtypeStruct((b_pad, d_pad), out_dtype),
        grid_spec=pltpu.PrefetchScalarGridSpec(
            num_scalar_prefetch=0,
            grid=grid,
            in_specs=in_specs,
            out_specs=out_specs,
            scratch_shapes=[pltpu.VMEM((b_pad, H1P), jnp.float32),    # encoder accumulator
                            pltpu.VMEM((b_pad, H1P), jnp.bfloat16)],  # last hidden (bf16)
        ),
        compiler_params=pltpu.CompilerParams(
            dimension_semantics=("arbitrary",),    # steps carry the accumulator (sequential)
            vmem_limit_bytes=vmem_limit),
        cost_estimate=pl.CostEstimate(flops=flops, transcendentals=0,
                                      bytes_accessed=bytes_accessed),
    )(x, *weights_and_biases)

    return out[:B, :D]


def init_params(key, input_size):
    """PyTorch-style uniform(+-1/sqrt(fan_in)) init; weights stored bf16, biases f32."""
    dims = [(input_size, H1), (H1, H2), (H2, H3),
            (H3, H2), (H2, H1), (H1, input_size)]
    params = []
    keys = jax.random.split(key, 2 * len(dims))
    for i, (fan_in, fan_out) in enumerate(dims):
        bound = 1.0 / jnp.sqrt(jnp.float32(fan_in))
        w = jax.random.uniform(keys[2 * i], (fan_in, fan_out), jnp.float32,
                               minval=-bound, maxval=bound)
        b = jax.random.uniform(keys[2 * i + 1], (1, fan_out), jnp.float32,
                               minval=-bound, maxval=bound)
        params.extend([w.astype(jnp.bfloat16), b])
    return tuple(params)


def reference_forward(x, params):
    """Pure-JAX reference with the same bf16-weight / f32-accumulation numerics."""
    w1, b1, w2, b2, w3, b3, w4, b4, w5, b5, w6, b6 = params

    def dot(a, w):
        return jnp.dot(a.astype(jnp.bfloat16), w.astype(jnp.bfloat16),
                       preferred_element_type=jnp.float32)

    h = jnp.maximum(dot(x, w1) + b1, 0.0)
    h = jnp.maximum(dot(h, w2) + b2, 0.0)
    code = dot(h, w3) + b3
    h = jnp.maximum(dot(code, w4) + b4, 0.0)
    h = jnp.maximum(dot(h, w5) + b5, 0.0)
    return dot(h, w6) + b6


if __name__ == "__main__":
    key = jax.random.PRNGKey(0)
    k_param, k_x = jax.random.split(key)

    # Small synthetic "flattened weights": D deliberately NOT a multiple of 128 and batch NOT a
    # multiple of 8, so the padding paths, the streamed reduction and the streamed output phase
    # are all exercised (D=300 -> 384 padded, tile 128, 3 reduction steps + 3 output tiles).
    input_size = 300
    batch = 6

    params = init_params(k_param, input_size)
    x = jax.random.normal(k_x, (batch, input_size), jnp.float32)

    out = weight_autoencoder_forward(x, params)
    out = jax.block_until_ready(out)

    ref = reference_forward(x, params)
    assert out.shape == (batch, input_size), out.shape
    assert jnp.allclose(out, ref, atol=2e-2, rtol=2e-2), "mismatch vs pure-JAX reference"

    print("KERNEL_OK")
</pallas_src>

<mosaic_0001>
module attributes {stable_mosaic.version = 11 : i64} {
  func.func @_autoencoder_kernel(%arg0: i32, %arg1: memref<8x128xbf16, #tpu.memory_space<vmem>>, %arg2: memref<128x1152xbf16, #tpu.memory_space<vmem>>, %arg3: memref<1x1152xf32, #tpu.memory_space<vmem>>, %arg4: memref<1152x640xbf16, #tpu.memory_space<vmem>>, %arg5: memref<1x640xf32, #tpu.memory_space<vmem>>, %arg6: memref<640x3xbf16, #tpu.memory_space<vmem>>, %arg7: memref<1x3xf32, #tpu.memory_space<vmem>>, %arg8: memref<3x640xbf16, #tpu.memory_space<vmem>>, %arg9: memref<1x640xf32, #tpu.memory_space<vmem>>, %arg10: memref<640x1152xbf16, #tpu.memory_space<vmem>>, %arg11: memref<1x1152xf32, #tpu.memory_space<vmem>>, %arg12: memref<1152x128xbf16, #tpu.memory_space<vmem>>, %arg13: memref<1x128xf32, #tpu.memory_space<vmem>>, %arg14: memref<8x128xf32, #tpu.memory_space<vmem>>, %arg15: memref<8x1152xf32, #tpu.memory_space<vmem>>, %arg16: memref<8x1152xbf16, #tpu.memory_space<vmem>>) attributes {dimension_semantics = [#tpu.dimension_semantics<arbitrary>], iteration_bounds = array<i64: 5>, scalar_prefetch = 0 : i64, scratch_operands = 2 : i64, tpu.core_type = #tpu.core_type<tc>, window_params = [{transform_indices = @transform_0, window_bounds = array<i64: 8, 128>}, {transform_indices = @transform_1, window_bounds = array<i64: 128, 1152>}, {pipeline_mode = #tpu.pipeline_mode<synchronous>, transform_indices = @transform_2, window_bounds = array<i64: 1, 1152>}, {pipeline_mode = #tpu.pipeline_mode<synchronous>, transform_indices = @transform_3, window_bounds = array<i64: 1152, 640>}, {pipeline_mode = #tpu.pipeline_mode<synchronous>, transform_indices = @transform_4, window_bounds = array<i64: 1, 640>}, {pipeline_mode = #tpu.pipeline_mode<synchronous>, transform_indices = @transform_5, window_bounds = array<i64: 640, 3>}, {pipeline_mode = #tpu.pipeline_mode<synchronous>, transform_indices = @transform_6, window_bounds = array<i64: 1, 3>}, {pipeline_mode = #tpu.pipeline_mode<synchronous>, transform_indices = @transform_7, window_bounds = array<i64: 3, 640>}, {pipeline_mode = #tpu.pipeline_mode<synchronous>, transform_indices = @transform_8, window_bounds = array<i64: 1, 640>}, {pipeline_mode = #tpu.pipeline_mode<synchronous>, transform_indices = @transform_9, window_bounds = array<i64: 640, 1152>}, {pipeline_mode = #tpu.pipeline_mode<synchronous>, transform_indices = @transform_10, window_bounds = array<i64: 1, 1152>}, {transform_indices = @transform_11, window_bounds = array<i64: 1152, 128>}, {transform_indices = @transform_12, window_bounds = array<i64: 1, 128>}, {transform_indices = @transform_13, window_bounds = array<i64: 8, 128>}]} {
    %c0_i32 = arith.constant 0 : i32
    %0 = arith.cmpi eq, %arg0, %c0_i32 : i32
    %1 = arith.extui %0 : i1 to i32
    %c0_i32_0 = arith.constant 0 : i32
    %2 = arith.cmpi ne, %1, %c0_i32_0 : i32
    scf.if %2 {
      %cst = arith.constant 0.000000e+00 : f32
      %12 = vector.broadcast %cst : f32 to vector<8x1152xf32>
      %c0 = arith.constant 0 : index
      %c0_5 = arith.constant 0 : index
      %13 = vector.load %arg15[%c0, %c0_5] : memref<8x1152xf32, #tpu.memory_space<vmem>>, vector<8x1152xf32>
      tpu.vector_store %arg15[%c0, %c0_5], %12 {strides = array<i32>} : memref<8x1152xf32, #tpu.memory_space<vmem>>, vector<8x1152xf32>,
    } else {
    }
    %c3_i32 = arith.constant 3 : i32
    %3 = arith.cmpi slt, %arg0, %c3_i32 : i32
    %4 = arith.extui %3 : i1 to i32
    %c0_i32_1 = arith.constant 0 : i32
    %5 = arith.cmpi ne, %4, %c0_i32_1 : i32
    scf.if %5 {
      %c0 = arith.constant 0 : index
      %c0_5 = arith.constant 0 : index
      %12 = vector.load %arg15[%c0, %c0_5] : memref<8x1152xf32, #tpu.memory_space<vmem>>, vector<8x1152xf32>
      %c0_6 = arith.constant 0 : index
      %c0_7 = arith.constant 0 : index
      %13 = vector.load %arg1[%c0_6, %c0_7] : memref<8x128xbf16, #tpu.memory_space<vmem>>, vector<8x128xbf16>
      %c0_8 = arith.constant 0 : index
      %c0_9 = arith.constant 0 : index
      %14 = vector.load %arg2[%c0_8, %c0_9] : memref<128x1152xbf16, #tpu.memory_space<vmem>>, vector<128x1152xbf16>
      %cst = arith.constant dense<0.000000e+00> : vector<8x1152xf32>
      %15 = tpu.matmul %13, %14, %cst {dimension_numbers = #tpu.dot_dimension_numbers<[1], [0], [0], [1], [0, 0, 1, 1], [], []>} : vector<8x128xbf16>, vector<128x1152xbf16>, vector<8x1152xf32> -> vector<8x1152xf32>
      %16 = arith.addf %12, %15 : vector<8x1152xf32>
      %c0_10 = arith.constant 0 : index
      %c0_11 = arith.constant 0 : index
      %17 = vector.load %arg15[%c0_10, %c0_11] : memref<8x1152xf32, #tpu.memory_space<vmem>>, vector<8x1152xf32>
      tpu.vector_store %arg15[%c0_10, %c0_11], %16 {strides = array<i32>} : memref<8x1152xf32, #tpu.memory_space<vmem>>, vector<8x1152xf32>,
    } else {
    }
    %c2_i32 = arith.constant 2 : i32
    %6 = arith.cmpi eq, %arg0, %c2_i32 : i32
    %7 = arith.extui %6 : i1 to i32
    %c0_i32_2 = arith.constant 0 : i32
    %8 = arith.cmpi ne, %7, %c0_i32_2 : i32
    scf.if %8 {
      %c0 = arith.constant 0 : index
      %c0_5 = arith.constant 0 : index
      %12 = vector.load %arg15[%c0, %c0_5] : memref<8x1152xf32, #tpu.memory_space<vmem>>, vector<8x1152xf32>
      %c0_6 = arith.constant 0 : index
      %c0_7 = arith.constant 0 : index
      %13 = vector.load %arg3[%c0_6, %c0_7] : memref<1x1152xf32, #tpu.memory_space<vmem>>, vector<1x1152xf32>
      %14 = vector.broadcast %13 : vector<1x1152xf32> to vector<8x1152xf32>
      %15 = arith.addf %12, %14 : vector<8x1152xf32>
      %cst = arith.constant 0.000000e+00 : f32
      %16 = vector.broadcast %cst : f32 to vector<8x1152xf32>
      %17 = arith.maximumf %15, %16 : vector<8x1152xf32>
      %18 = arith.truncf %17 : vector<8x1152xf32> to vector<8x1152xbf16>
      %c0_8 = arith.constant 0 : index
      %c0_9 = arith.constant 0 : index
      %19 = vector.load %arg4[%c0_8, %c0_9] : memref<1152x640xbf16, #tpu.memory_space<vmem>>, vector<1152x640xbf16>
      %cst_10 = arith.constant dense<0.000000e+00> : vector<8x640xf32>
      %20 = tpu.matmul %18, %19, %cst_10 {dimension_numbers = #tpu.dot_dimension_numbers<[1], [0], [0], [1], [0, 0, 1, 1], [], []>} : vector<8x1152xbf16>, vector<1152x640xbf16>, vector<8x640xf32> -> vector<8x640xf32>
      %c0_11 = arith.constant 0 : index
      %c0_12 = arith.constant 0 : index
      %21 = vector.load %arg5[%c0_11, %c0_12] : memref<1x640xf32, #tpu.memory_space<vmem>>, vector<1x640xf32>
      %22 = vector.broadcast %21 : vector<1x640xf32> to vector<8x640xf32>
      %23 = arith.addf %20, %22 : vector<8x640xf32>
      %cst_13 = arith.constant 0.000000e+00 : f32
      %24 = vector.broadcast %cst_13 : f32 to vector<8x640xf32>
      %25 = arith.maximumf %23, %24 : vector<8x640xf32>
      %26 = arith.truncf %25 : vector<8x640xf32> to vector<8x640xbf16>
      %c0_14 = arith.constant 0 : index
      %c0_15 = arith.constant 0 : index
      %27 = vector.load %arg6[%c0_14, %c0_15] : memref<640x3xbf16, #tpu.memory_space<vmem>>, vector<640x3xbf16>
      %cst_16 = arith.constant dense<0.000000e+00> : vector<8x3xf32>
      %28 = tpu.matmul %26, %27, %cst_16 {dimension_numbers = #tpu.dot_dimension_numbers<[1], [0], [0], [1], [0, 0, 1, 1], [], []>} : vector<8x640xbf16>, vector<640x3xbf16>, vector<8x3xf32> -> vector<8x3xf32>
      %c0_17 = arith.constant 0 : index
      %c0_18 = arith.constant 0 : index
      %29 = vector.load %arg7[%c0_17, %c0_18] : memref<1x3xf32, #tpu.memory_space<vmem>>, vector<1x3xf32>
      %30 = vector.broadcast %29 : vector<1x3xf32> to vector<8x3xf32>
      %31 = arith.addf %28, %30 : vector<8x3xf32>
      %32 = arith.truncf %31 : vector<8x3xf32> to vector<8x3xbf16>
      %c0_19 = arith.constant 0 : index
      %c0_20 = arith.constant 0 : index
      %33 = vector.load %arg8[%c0_19, %c0_20] : memref<3x640xbf16, #tpu.memory_space<vmem>>, vector<3x640xbf16>
      %cst_21 = arith.constant dense<0.000000e+00> : vector<8x640xf32>
      %34 = tpu.matmul %32, %33, %cst_21 {dimension_numbers = #tpu.dot_dimension_numbers<[1], [0], [0], [1], [0, 0, 1, 1], [], []>} : vector<8x3xbf16>, vector<3x640xbf16>, vector<8x640xf32> -> vector<8x640xf32>
      %c0_22 = arith.constant 0 : index
      %c0_23 = arith.constant 0 : index
      %35 = vector.load %arg9[%c0_22, %c0_23] : memref<1x640xf32, #tpu.memory_space<vmem>>, vector<1x640xf32>
      %36 = vector.broadcast %35 : vector<1x640xf32> to vector<8x640xf32>
      %37 = arith.addf %34, %36 : vector<8x640xf32>
      %cst_24 = arith.constant 0.000000e+00 : f32
      %38 = vector.broadcast %cst_24 : f32 to vector<8x640xf32>
      %39 = arith.maximumf %37, %38 : vector<8x640xf32>
      %40 = arith.truncf %39 : vector<8x640xf32> to vector<8x640xbf16>
      %c0_25 = arith.constant 0 : index
      %c0_26 = arith.constant 0 : index
      %41 = vector.load %arg10[%c0_25, %c0_26] : memref<640x1152xbf16, #tpu.memory_space<vmem>>, vector<640x1152xbf16>
      %cst_27 = arith.constant dense<0.000000e+00> : vector<8x1152xf32>
      %42 = tpu.matmul %40, %41, %cst_27 {dimension_numbers = #tpu.dot_dimension_numbers<[1], [0], [0], [1], [0, 0, 1, 1], [], []>} : vector<8x640xbf16>, vector<640x1152xbf16>, vector<8x1152xf32> -> vector<8x1152xf32>
      %c0_28 = arith.constant 0 : index
      %c0_29 = arith.constant 0 : index
      %43 = vector.load %arg11[%c0_28, %c0_29] : memref<1x1152xf32, #tpu.memory_space<vmem>>, vector<1x1152xf32>
      %44 = vector.broadcast %43 : vector<1x1152xf32> to vector<8x1152xf32>
      %45 = arith.addf %42, %44 : vector<8x1152xf32>
      %cst_30 = arith.constant 0.000000e+00 : f32
      %46 = vector.broadcast %cst_30 : f32 to vector<8x1152xf32>
      %47 = arith.maximumf %45, %46 : vector<8x1152xf32>
      %48 = arith.truncf %47 : vector<8x1152xf32> to vector<8x1152xbf16>
      %c0_31 = arith.constant 0 : index
      %c0_32 = arith.constant 0 : index
      %49 = vector.load %arg16[%c0_31, %c0_32] : memref<8x1152xbf16, #tpu.memory_space<vmem>>, vector<8x1152xbf16>
      tpu.vector_store %arg16[%c0_31, %c0_32], %48 {strides = array<i32>} : memref<8x1152xbf16, #tpu.memory_space<vmem>>, vector<8x1152xbf16>,
    } else {
    }
    %c2_i32_3 = arith.constant 2 : i32
    %9 = arith.cmpi sge, %arg0, %c2_i32_3 : i32
    %10 = arith.extui %9 : i1 to i32
    %c0_i32_4 = arith.constant 0 : i32
    %11 = arith.cmpi ne, %10, %c0_i32_4 : i32
    scf.if %11 {
      %c0 = arith.constant 0 : index
      %c0_5 = arith.constant 0 : index
      %12 = vector.load %arg16[%c0, %c0_5] : memref<8x1152xbf16, #tpu.memory_space<vmem>>, vector<8x1152xbf16>
      %c0_6 = arith.constant 0 : index
      %c0_7 = arith.constant 0 : index
      %13 = vector.load %arg12[%c0_6, %c0_7] : memref<1152x128xbf16, #tpu.memory_space<vmem>>, vector<1152x128xbf16>
      %cst = arith.constant dense<0.000000e+00> : vector<8x128xf32>
      %14 = tpu.matmul %12, %13, %cst {dimension_numbers = #tpu.dot_dimension_numbers<[1], [0], [0], [1], [0, 0, 1, 1], [], []>} : vector<8x1152xbf16>, vector<1152x128xbf16>, vector<8x128xf32> -> vector<8x128xf32>
      %c0_8 = arith.constant 0 : index
      %c0_9 = arith.constant 0 : index
      %15 = vector.load %arg13[%c0_8, %c0_9] : memref<1x128xf32, #tpu.memory_space<vmem>>, vector<1x128xf32>
      %16 = vector.broadcast %15 : vector<1x128xf32> to vector<8x128xf32>
      %17 = arith.addf %14, %16 : vector<8x128xf32>
      %c0_10 = arith.constant 0 : index
      %c0_11 = arith.constant 0 : index
      %18 = vector.load %arg14[%c0_10, %c0_11] : memref<8x128xf32, #tpu.memory_space<vmem>>, vector<8x128xf32>
      tpu.vector_store %arg14[%c0_10, %c0_11], %17 {strides = array<i32>} : memref<8x128xf32, #tpu.memory_space<vmem>>, vector<8x128xf32>,
    } else {
    }
    return
  }
  func.func @transform_0(%arg0: i32) -> (i32, i32) {
    %c2_i32 = arith.constant 2 : i32
    %0 = arith.minsi %arg0, %c2_i32 : i32
    %c0_i32 = arith.constant 0 : i32
    %c0_i32_0 = arith.constant 0 : i32
    return %c0_i32, %0 : i32, i32
  }
  func.func @transform_1(%arg0: i32) -> (i32, i32) {
    %c2_i32 = arith.constant 2 : i32
    %0 = arith.minsi %arg0, %c2_i32 : i32
    %c0_i32 = arith.constant 0 : i32
    %c0_i32_0 = arith.constant 0 : i32
    return %0, %c0_i32 : i32, i32
  }
  func.func @transform_2(%arg0: i32) -> (i32, i32) {
    %c0_i32 = arith.constant 0 : i32
    %c0_i32_0 = arith.constant 0 : i32
    %c0_i32_1 = arith.constant 0 : i32
    return %c0_i32, %c0_i32_0 : i32, i32
  }
  func.func @transform_3(%arg0: i32) -> (i32, i32) {
    %c0_i32 = arith.constant 0 : i32
    %c0_i32_0 = arith.constant 0 : i32
    %c0_i32_1 = arith.constant 0 : i32
    return %c0_i32, %c0_i32_0 : i32, i32
  }
  func.func @transform_4(%arg0: i32) -> (i32, i32) {
    %c0_i32 = arith.constant 0 : i32
    %c0_i32_0 = arith.constant 0 : i32
    %c0_i32_1 = arith.constant 0 : i32
    return %c0_i32, %c0_i32_0 : i32, i32
  }
  func.func @transform_5(%arg0: i32) -> (i32, i32) {
    %c0_i32 = arith.constant 0 : i32
    %c0_i32_0 = arith.constant 0 : i32
    %c0_i32_1 = arith.constant 0 : i32
    return %c0_i32, %c0_i32_0 : i32, i32
  }
  func.func @transform_6(%arg0: i32) -> (i32, i32) {
    %c0_i32 = arith.constant 0 : i32
    %c0_i32_0 = arith.constant 0 : i32
    %c0_i32_1 = arith.constant 0 : i32
    return %c0_i32, %c0_i32_0 : i32, i32
  }
  func.func @transform_7(%arg0: i32) -> (i32, i32) {
    %c0_i32 = arith.constant 0 : i32
    %c0_i32_0 = arith.constant 0 : i32
    %c0_i32_1 = arith.constant 0 : i32
    return %c0_i32, %c0_i32_0 : i32, i32
  }
  func.func @transform_8(%arg0: i32) -> (i32, i32) {
    %c0_i32 = arith.constant 0 : i32
    %c0_i32_0 = arith.constant 0 : i32
    %c0_i32_1 = arith.constant 0 : i32
    return %c0_i32, %c0_i32_0 : i32, i32
  }
  func.func @transform_9(%arg0: i32) -> (i32, i32) {
    %c0_i32 = arith.constant 0 : i32
    %c0_i32_0 = arith.constant 0 : i32
    %c0_i32_1 = arith.constant 0 : i32
    return %c0_i32, %c0_i32_0 : i32, i32
  }
  func.func @transform_10(%arg0: i32) -> (i32, i32) {
    %c0_i32 = arith.constant 0 : i32
    %c0_i32_0 = arith.constant 0 : i32
    %c0_i32_1 = arith.constant 0 : i32
    return %c0_i32, %c0_i32_0 : i32, i32
  }
  func.func @transform_11(%arg0: i32) -> (i32, i32) {
    %c2_i32 = arith.constant 2 : i32
    %0 = arith.subi %arg0, %c2_i32 : i32
    %c0_i32 = arith.constant 0 : i32
    %1 = arith.maxsi %0, %c0_i32 : i32
    %c0_i32_0 = arith.constant 0 : i32
    %c0_i32_1 = arith.constant 0 : i32
    return %c0_i32_0, %1 : i32, i32
  }
  func.func @transform_12(%arg0: i32) -> (i32, i32) {
    %c2_i32 = arith.constant 2 : i32
    %0 = arith.subi %arg0, %c2_i32 : i32
    %c0_i32 = arith.constant 0 : i32
    %1 = arith.maxsi %0, %c0_i32 : i32
    %c0_i32_0 = arith.constant 0 : i32
    %c0_i32_1 = arith.constant 0 : i32
    return %c0_i32_0, %1 : i32, i32
  }
  func.func @transform_13(%arg0: i32) -> (i32, i32) {
    %c2_i32 = arith.constant 2 : i32
    %0 = arith.subi %arg0, %c2_i32 : i32
    %c0_i32 = arith.constant 0 : i32
    %1 = arith.maxsi %0, %c0_i32 : i32
    %c0_i32_0 = arith.constant 0 : i32
    %c0_i32_1 = arith.constant 0 : i32
    return %c0_i32_0, %1 : i32, i32
  }
}

</mosaic_0001>

<bundles_post_ra>
// kernel: weight_autoencoder_forward.1
= control target key start
LH: loop header
LB: loop body
LE: loop exit
PB: predicated region body
PF: predicated region fallthrough
CT: control target
= control target key end

     0   :  { %s15496_s0 = inlined_call_operand.vmem [shape: bf16[8,384], index: 0, kind: input, shape index: {}]   ;;  %s15497_s1 = inlined_call_operand.vmem [shape: bf16[384,1152], index: 1, kind: input, shape index: {}]   ;;  %s15498_s2 = inlined_call_operand.vmem [shape: f32[1,1152], index: 2, kind: input, shape index: {}]   ;;  %s15499_s3 = inlined_call_operand.vmem [shape: bf16[1152,640], index: 3, kind: input, shape index: {}]   ;;  %s15500_s4 = inlined_call_operand.vmem [shape: f32[1,640], index: 4, kind: input, shape index: {}]   ;;  %s15501_s5 = inlined_call_operand.vmem [shape: bf16[640,3], index: 5, kind: input, shape index: {}]   ;;  %s15502_s6 = inlined_call_operand.vmem [shape: f32[1,3], index: 6, kind: input, shape index: {}]   ;;  %s15503_s7 = inlined_call_operand.vmem [shape: bf16[3,640], index: 7, kind: input, shape index: {}]   ;;  %s15504_s8 = inlined_call_operand.vmem [shape: f32[1,640], index: 8, kind: input, shape index: {}]   ;;  %s15505_s9 = inlined_call_operand.vmem [shape: bf16[640,1152], index: 9, kind: input, shape index: {}]   ;;  %s15506_s10 = inlined_call_operand.vmem [shape: f32[1,1152], index: 10, kind: input, shape index: {}]   ;;  %s15507_s11 = inlined_call_operand.vmem [shape: bf16[1152,384], index: 11, kind: input, shape index: {}]   ;;  %s15508_s12 = inlined_call_operand.vmem [shape: f32[1,384], index: 12, kind: input, shape index: {}]   ;;  %s15509_s13 = inlined_call_operand.hbm [shape: f32[8,384], index: 13, kind: output, shape index: {}]  }
   0x1   :  { %15521 = sst [smem:[#allocation17_spill]] %s15507_s11 }
   0x2   :  { %15522 = sst [smem:[#allocation18_spill]] %s15509_s13 }
   0x3   :  { %18 = vsyncpa [#allocation6], 0 }
   0x4   :  { %20 = vsyncpa [#allocation6 + $0x1], 0  ;;  %s12376_s25 = smov 0   ;;  %s12378_s26 = smov 0  }
   0x5   :  { %s12380_s27 = smov 0   ;;  %s12382_s28 = smov 0  }
   0x6 LB: > { %15523 = sst [smem:[#allocation8_spill]] %s12280_s25  ;;  %s12397_s29 = sadd.s32 4294967295, %s12292_s28   ;;  %s12292_s28 = sphi %s12382_s28, %s15541_s28   ;;  %s12288_s27 = sphi %s12380_s27, %s15544_s27   ;;  %s12284_s26 = sphi %s12378_s26, %s15543_s26   ;;  %s12280_s25 = sphi %s12376_s25, %s15542_s25  }
   0x7   : > { %15524 = sst [smem:[#allocation9_spill]] %s12284_s26  ;;  %s9466_s30 = sadd.s32 4294967294, %s12292_s28  }
   0x8   : > { %15525 = sst [smem:[#allocation10_spill]] %s12288_s27  ;;  %s12401_s14 = sadd.s32 1, %s12292_s28  }
   0x9   : > { %15526 = sst [smem:[#allocation11_spill]] %s12292_s28  ;;  %p280_p0 = scmp.gt.s32.totalorder %s9466_s30, 0 }
   0xa   : > { %15527 = sst [smem:[#allocation12_spill]] %s12401_s14  ;;  %s9468_s15 = sadd.s32 4294967294, %s12401_s14 }
   0xb   : > { %s288_s16 = sadd.s32 1, %s12288_s27  ;;  %p283_p1 = scmp.gt.s32.totalorder %s9468_s15, 0 }
   0xc   : > { %s281_s17 = scalar_select %p280_p0, %s9466_s30, 0 }
   0xd   : > { %p295_p2 = scmp.ne.s32.totalorder %s12288_s27, %s12284_s26  ;;  %p296_p3 = scmp.eq.s32.totalorder %s12292_s28, 0 }
   0xe   : > { %p363_p4 = scmp.eq.s32.totalorder %s12397_s29, 4  ;;  %s15546_s15 = smov (!%p283_p1, %s9468_s15), 0 }
   0xf   : > { %p297_p5 = por %p296_p3, %p295_p2  ;;  %s285_s19 = ssub.s32 %s281_s17, %s15546_s15 }
  0x10   : > { %p12409_p6 = por %p363_p4, %p295_p2  ;;  %p368_p7 = scmp.ne.s32.totalorder %s12284_s26, %s12280_s25 }
  0x11   : > { %p286_p8 = scmp.eq.s32.totalorder %s285_s19, 0  ;;  %p369_p9 = scmp.eq.s32.totalorder %s9466_s30, 4 }
  0x12   : > { %s15528_s18 = scalar_select %p12409_p6, 1, 0 }
  0x13   : > { %s12416_s20 = scalar_select %p286_p8, %s12288_s27, %s288_s16  }
  0x14   : > { %15529 = sst [smem:[#allocation13_spill]] %s15528_s18  ;;  %p12418_p10 = por %p369_p9, %p368_p7 }
  0x15   : > { %15530 = sst [smem:[#allocation14_spill]] %s12416_s20  ;;  %p9474_p11 = scmp.ge.s32.totalorder %s12292_s28, 5 }
  0x16   : > { %s15531_s21 = scalar_select %p12418_p10, 1, 0 }
  0x17   : > { %412 = sbr.rel (%p9474_p11) target bundleno = 136 (0x88), region = 52 }
  0x18   : > { %15532 = sst [smem:[#allocation15_spill]] %s15531_s21 }
  0x1e   : > { %440 = sbr.rel (!%p297_p5) target bundleno = 136 (0x88), region = 64  ;;  %s442_s22 = sand.u32 (%p297_p5), 1, %s12288_s27  }
  0x1f   : > { %s9476_s23 = sshll.u32 (%p297_p5), %s281_s17, 2  ;;  %s10926_s24 = smul.u32 (%p297_p5), 576, %s442_s22 }
  0x20   : > { %s15533_s11 = sld [smem:[#allocation17_spill]] (%p297_p5) }
  0x21   : > { %s12434_s30 = scalar_lea.vmem (%p297_p5), [#allocation4], %s10926_s24 }
  0x26   : > { %s12427_s15 = scalar_lea.vmem %s15533_s11, %s9476_s23 }
  0x27   : > { %v465_v0 = vld [vmem:[%s12427_s15] sm:$0xf]  ;;  %v467_v1 = vld [vmem:[%s12427_s15 + $0xc] sm:$0xf]  ;;  %v469_v2 = vld [vmem:[%s12427_s15 + $0x18] sm:$0xf] }
  0x28   : > { %v471_v3 = vld [vmem:[%s12427_s15 + $0x24] sm:$0xf]  ;;  %v473_v4 = vld [vmem:[%s12427_s15 + $0x30] sm:$0xf]  ;;  %466 = vst [vmem:[%s12434_s30] sm:$0xf] %v465_v0 }
  0x29   : > { %468 = vst [vmem:[%s12434_s30 + $0x4] sm:$0xf] %v467_v1  ;;  %470 = vst [vmem:[%s12434_s30 + $0x8] sm:$0xf] %v469_v2  ;;  %v475_v5 = vld [vmem:[%s12427_s15 + $0x3c] sm:$0xf] }
  0x2a   : > { %472 = vst [vmem:[%s12434_s30 + $0xc] sm:$0xf] %v471_v3  ;;  %474 = vst [vmem:[%s12434_s30 + $0x10] sm:$0xf] %v473_v4  ;;  %v477_v6 = vld [vmem:[%s12427_s15 + $0x48] sm:$0xf] }
  0x2b   : > { %v479_v7 = vld [vmem:[%s12427_s15 + $0x54] sm:$0xf]  ;;  %476 = vst [vmem:[%s12434_s30 + $0x14] sm:$0xf] %v475_v5  ;;  %478 = vst [vmem:[%s12434_s30 + $0x18] sm:$0xf] %v477_v6 }
  0x2c   : > { %480 = vst [vmem:[%s12434_s30 + $0x1c] sm:$0xf] %v479_v7  ;;  %v481_v8 = vld [vmem:[%s12427_s15 + $0x60] sm:$0xf]  ;;  %v483_v9 = vld [vmem:[%s12427_s15 + $0x6c] sm:$0xf] }
  0x2d   : > { %v485_v10 = vld [vmem:[%s12427_s15 + $0x78] sm:$0xf]  ;;  %482 = vst [vmem:[%s12434_s30 + $0x20] sm:$0xf] %v481_v8  ;;  %484 = vst [vmem:[%s12434_s30 + $0x24] sm:$0xf] %v483_v9 }
  0x2e   : > { %486 = vst [vmem:[%s12434_s30 + $0x28] sm:$0xf] %v485_v10  ;;  %v487_v11 = vld [vmem:[%s12427_s15 + $0x84] sm:$0xf]  ;;  %v489_v12 = vld [vmem:[%s12427_s15 + $0x90] sm:$0xf] }
  0x2f   : > { %v491_v13 = vld [vmem:[%s12427_s15 + $0x9c] sm:$0xf]  ;;  %488 = vst [vmem:[%s12434_s30 + $0x2c] sm:$0xf] %v487_v11  ;;  %490 = vst [vmem:[%s12434_s30 + $0x30] sm:$0xf] %v489_v12 }
  0x30   : > { %492 = vst [vmem:[%s12434_s30 + $0x34] sm:$0xf] %v491_v13  ;;  %v493_v14 = vld [vmem:[%s12427_s15 + $0xa8] sm:$0xf]  ;;  %v495_v15 = vld [vmem:[%s12427_s15 + $0xb4] sm:$0xf] }
  0x31   : > { %v497_v16 = vld [vmem:[%s12427_s15 + $0xc0] sm:$0xf]  ;;  %494 = vst [vmem:[%s12434_s30 + $0x38] sm:$0xf] %v493_v14  ;;  %496 = vst [vmem:[%s12434_s30 + $0x3c] sm:$0xf] %v495_v15 }
  0x32   : > { %498 = vst [vmem:[%s12434_s30 + $0x40] sm:$0xf] %v497_v16  ;;  %v499_v17 = vld [vmem:[%s12427_s15 + $0xcc] sm:$0xf]  ;;  %v501_v18 = vld [vmem:[%s12427_s15 + $0xd8] sm:$0xf] }
  0x33   : > { %v503_v19 = vld [vmem:[%s12427_s15 + $0xe4] sm:$0xf]  ;;  %500 = vst [vmem:[%s12434_s30 + $0x44] sm:$0xf] %v499_v17  ;;  %502 = vst [vmem:[%s12434_s30 + $0x48] sm:$0xf] %v501_v18 }
  0x34   : > { %504 = vst [vmem:[%s12434_s30 + $0x4c] sm:$0xf] %v503_v19  ;;  %v505_v20 = vld [vmem:[%s12427_s15 + $0xf0] sm:$0xf]  ;;  %v507_v21 = vld [vmem:[%s12427_s15 + $0xfc] sm:$0xf] }
  0x35   : > { %v509_v22 = vld [vmem:[%s12427_s15 + $0x108] sm:$0xf]  ;;  %506 = vst [vmem:[%s12434_s30 + $0x50] sm:$0xf] %v505_v20  ;;  %508 = vst [vmem:[%s12434_s30 + $0x54] sm:$0xf] %v507_v21 }
  0x36   : > { %510 = vst [vmem:[%s12434_s30 + $0x58] sm:$0xf] %v509_v22  ;;  %v511_v23 = vld [vmem:[%s12427_s15 + $0x114] sm:$0xf]  ;;  %v513_v24 = vld [vmem:[%s12427_s15 + $0x120] sm:$0xf] }
  0x37   : > { %v515_v25 = vld [vmem:[%s12427_s15 + $0x12c] sm:$0xf]  ;;  %512 = vst [vmem:[%s12434_s30 + $0x5c] sm:$0xf] %v511_v23  ;;  %514 = vst [vmem:[%s12434_s30 + $0x60] sm:$0xf] %v513_v24 }
  0x38   : > { %516 = vst [vmem:[%s12434_s30 + $0x64] sm:$0xf] %v515_v25  ;;  %v517_v26 = vld [vmem:[%s12427_s15 + $0x138] sm:$0xf]  ;;  %v519_v27 = vld [vmem:[%s12427_s15 + $0x144] sm:$0xf] }
  0x39   : > { %v521_v28 = vld [vmem:[%s12427_s15 + $0x150] sm:$0xf]  ;;  %518 = vst [vmem:[%s12434_s30 + $0x68] sm:$0xf] %v517_v26  ;;  %520 = vst [vmem:[%s12434_s30 + $0x6c] sm:$0xf] %v519_v27 }
  0x3a   : > { %522 = vst [vmem:[%s12434_s30 + $0x70] sm:$0xf] %v521_v28  ;;  %v523_v29 = vld [vmem:[%s12427_s15 + $0x15c] sm:$0xf]  ;;  %v525_v30 = vld [vmem:[%s12427_s15 + $0x168] sm:$0xf] }
  0x3b   : > { %v527_v31 = vld [vmem:[%s12427_s15 + $0x174] sm:$0xf]  ;;  %524 = vst [vmem:[%s12434_s30 + $0x74] sm:$0xf] %v523_v29  ;;  %526 = vst [vmem:[%s12434_s30 + $0x78] sm:$0xf] %v525_v30 }
  0x3c   : > { %528 = vst [vmem:[%s12434_s30 + $0x7c] sm:$0xf] %v527_v31  ;;  %v529_v32 = vld [vmem:[%s12427_s15 + $0x180] sm:$0xf]  ;;  %v531_v33 = vld [vmem:[%s12427_s15 + $0x18c] sm:$0xf] }
  0x3d   : > { %v533_v34 = vld [vmem:[%s12427_s15 + $0x198] sm:$0xf]  ;;  %530 = vst [vmem:[%s12434_s30 + $0x80] sm:$0xf] %v529_v32  ;;  %532 = vst [vmem:[%s12434_s30 + $0x84] sm:$0xf] %v531_v33 }
  0x3e   : > { %534 = vst [vmem:[%s12434_s30 + $0x88] sm:$0xf] %v533_v34  ;;  %v535_v35 = vld [vmem:[%s12427_s15 + $0x1a4] sm:$0xf]  ;;  %v537_v36 = vld [vmem:[%s12427_s15 + $0x1b0] sm:$0xf] }
  0x3f   : > { %v539_v37 = vld [vmem:[%s12427_s15 + $0x1bc] sm:$0xf]  ;;  %536 = vst [vmem:[%s12434_s30 + $0x8c] sm:$0xf] %v535_v35  ;;  %538 = vst [vmem:[%s12434_s30 + $0x90] sm:$0xf] %v537_v36 }
  0x40   : > { %540 = vst [vmem:[%s12434_s30 + $0x94] sm:$0xf] %v539_v37  ;;  %v541_v38 = vld [vmem:[%s12427_s15 + $0x1c8] sm:$0xf]  ;;  %v543_v39 = vld [vmem:[%s12427_s15 + $0x1d4] sm:$0xf] }
  0x41   : > { %v545_v40 = vld [vmem:[%s12427_s15 + $0x1e0] sm:$0xf]  ;;  %542 = vst [vmem:[%s12434_s30 + $0x98] sm:$0xf] %v541_v38  ;;  %544 = vst [vmem:[%s12434_s30 + $0x9c] sm:$0xf] %v543_v39 }
  0x42   : > { %546 = vst [vmem:[%s12434_s30 + $0xa0] sm:$0xf] %v545_v40  ;;  %v547_v41 = vld [vmem:[%s12427_s15 + $0x1ec] sm:$0xf]  ;;  %v549_v42 = vld [vmem:[%s12427_s15 + $0x1f8] sm:$0xf] }
  0x43   : > { %v551_v43 = vld [vmem:[%s12427_s15 + $0x204] sm:$0xf]  ;;  %548 = vst [vmem:[%s12434_s30 + $0xa4] sm:$0xf] %v547_v41  ;;  %550 = vst [vmem:[%s12434_s30 + $0xa8] sm:$0xf] %v549_v42 }
  0x44   : > { %552 = vst [vmem:[%s12434_s30 + $0xac] sm:$0xf] %v551_v43  ;;  %v553_v44 = vld [vmem:[%s12427_s15 + $0x210] sm:$0xf]  ;;  %v555_v45 = vld [vmem:[%s12427_s15 + $0x21c] sm:$0xf] }
  0x45   : > { %v557_v46 = vld [vmem:[%s12427_s15 + $0x228] sm:$0xf]  ;;  %554 = vst [vmem:[%s12434_s30 + $0xb0] sm:$0xf] %v553_v44  ;;  %556 = vst [vmem:[%s12434_s30 + $0xb4] sm:$0xf] %v555_v45 }
  0x46   : > { %558 = vst [vmem:[%s12434_s30 + $0xb8] sm:$0xf] %v557_v46  ;;  %v559_v47 = vld [vmem:[%s12427_s15 + $0x234] sm:$0xf]  ;;  %v561_v48 = vld [vmem:[%s12427_s15 + $0x240] sm:$0xf] }
  0x47   : > { %v563_v49 = vld [vmem:[%s12427_s15 + $0x24c] sm:$0xf]  ;;  %560 = vst [vmem:[%s12434_s30 + $0xbc] sm:$0xf] %v559_v47  ;;  %562 = vst [vmem:[%s12434_s30 + $0xc0] sm:$0xf] %v561_v48 }
  0x48   : > { %564 = vst [vmem:[%s12434_s30 + $0xc4] sm:$0xf] %v563_v49  ;;  %v565_v50 = vld [vmem:[%s12427_s15 + $0x258] sm:$0xf]  ;;  %v567_v51 = vld [vmem:[%s12427_s15 + $0x264] sm:$0xf] }
  0x49   : > { %v569_v52 = vld [vmem:[%s12427_s15 + $0x270] sm:$0xf]  ;;  %566 = vst [vmem:[%s12434_s30 + $0xc8] sm:$0xf] %v565_v50  ;;  %568 = vst [vmem:[%s12434_s30 + $0xcc] sm:$0xf] %v567_v51 }
  0x4a   : > { %570 = vst [vmem:[%s12434_s30 + $0xd0] sm:$0xf] %v569_v52  ;;  %v571_v53 = vld [vmem:[%s12427_s15 + $0x27c] sm:$0xf]  ;;  %v573_v54 = vld [vmem:[%s12427_s15 + $0x288] sm:$0xf] }
  0x4b   : > { %v575_v55 = vld [vmem:[%s12427_s15 + $0x294] sm:$0xf]  ;;  %572 = vst [vmem:[%s12434_s30 + $0xd4] sm:$0xf] %v571_v53  ;;  %574 = vst [vmem:[%s12434_s30 + $0xd8] sm:$0xf] %v573_v54 }
  0x4c   : > { %576 = vst [vmem:[%s12434_s30 + $0xdc] sm:$0xf] %v575_v55  ;;  %v577_v56 = vld [vmem:[%s12427_s15 + $0x2a0] sm:$0xf]  ;;  %v579_v57 = vld [vmem:[%s12427_s15 + $0x2ac] sm:$0xf] }
  0x4d   : > { %v581_v58 = vld [vmem:[%s12427_s15 + $0x2b8] sm:$0xf]  ;;  %578 = vst [vmem:[%s12434_s30 + $0xe0] sm:$0xf] %v577_v56  ;;  %580 = vst [vmem:[%s12434_s30 + $0xe4] sm:$0xf] %v579_v57 }
  0x4e   : > { %582 = vst [vmem:[%s12434_s30 + $0xe8] sm:$0xf] %v581_v58  ;;  %v583_v59 = vld [vmem:[%s12427_s15 + $0x2c4] sm:$0xf]  ;;  %v585_v60 = vld [vmem:[%s12427_s15 + $0x2d0] sm:$0xf] }
  0x4f   : > { %v587_v61 = vld [vmem:[%s12427_s15 + $0x2dc] sm:$0xf]  ;;  %584 = vst [vmem:[%s12434_s30 + $0xec] sm:$0xf] %v583_v59  ;;  %586 = vst [vmem:[%s12434_s30 + $0xf0] sm:$0xf] %v585_v60 }
  0x50   : > { %588 = vst [vmem:[%s12434_s30 + $0xf4] sm:$0xf] %v587_v61  ;;  %v589_v62 = vld [vmem:[%s12427_s15 + $0x2e8] sm:$0xf]  ;;  %v591_v63 = vld [vmem:[%s12427_s15 + $0x2f4] sm:$0xf] }
  0x51   : > { %v593_v0 = vld [vmem:[%s12427_s15 + $0x300] sm:$0xf]  ;;  %590 = vst [vmem:[%s12434_s30 + $0xf8] sm:$0xf] %v589_v62  ;;  %592 = vst [vmem:[%s12434_s30 + $0xfc] sm:$0xf] %v591_v63 }
  0x52   : > { %594 = vst [vmem:[%s12434_s30 + $0x100] sm:$0xf] %v593_v0  ;;  %v595_v1 = vld [vmem:[%s12427_s15 + $0x30c] sm:$0xf]  ;;  %v597_v2 = vld [vmem:[%s12427_s15 + $0x318] sm:$0xf] }
  0x53   : > { %v599_v3 = vld [vmem:[%s12427_s15 + $0x324] sm:$0xf]  ;;  %596 = vst [vmem:[%s12434_s30 + $0x104] sm:$0xf] %v595_v1  ;;  %598 = vst [vmem:[%s12434_s30 + $0x108] sm:$0xf] %v597_v2 }
  0x54   : > { %600 = vst [vmem:[%s12434_s30 + $0x10c] sm:$0xf] %v599_v3  ;;  %v601_v4 = vld [vmem:[%s12427_s15 + $0x330] sm:$0xf]  ;;  %v603_v5 = vld [vmem:[%s12427_s15 + $0x33c] sm:$0xf] }
  0x55   : > { %v605_v6 = vld [vmem:[%s12427_s15 + $0x348] sm:$0xf]  ;;  %602 = vst [vmem:[%s12434_s30 + $0x110] sm:$0xf] %v601_v4  ;;  %604 = vst [vmem:[%s12434_s30 + $0x114] sm:$0xf] %v603_v5 }
  0x56   : > { %606 = vst [vmem:[%s12434_s30 + $0x118] sm:$0xf] %v605_v6  ;;  %v607_v7 = vld [vmem:[%s12427_s15 + $0x354] sm:$0xf]  ;;  %v609_v8 = vld [vmem:[%s12427_s15 + $0x360] sm:$0xf] }
  0x57   : > { %v611_v9 = vld [vmem:[%s12427_s15 + $0x36c] sm:$0xf]  ;;  %608 = vst [vmem:[%s12434_s30 + $0x11c] sm:$0xf] %v607_v7  ;;  %610 = vst [vmem:[%s12434_s30 + $0x120] sm:$0xf] %v609_v8 }
  0x58   : > { %612 = vst [vmem:[%s12434_s30 + $0x124] sm:$0xf] %v611_v9  ;;  %v613_v10 = vld [vmem:[%s12427_s15 + $0x378] sm:$0xf]  ;;  %v615_v11 = vld [vmem:[%s12427_s15 + $0x384] sm:$0xf] }
  0x59   : > { %v617_v12 = vld [vmem:[%s12427_s15 + $0x390] sm:$0xf]  ;;  %614 = vst [vmem:[%s12434_s30 + $0x128] sm:$0xf] %v613_v10  ;;  %616 = vst [vmem:[%s12434_s30 + $0x12c] sm:$0xf] %v615_v11 }
  0x5a   : > { %618 = vst [vmem:[%s12434_s30 + $0x130] sm:$0xf] %v617_v12  ;;  %v619_v13 = vld [vmem:[%s12427_s15 + $0x39c] sm:$0xf]  ;;  %v621_v14 = vld [vmem:[%s12427_s15 + $0x3a8] sm:$0xf] }
  0x5b   : > { %v623_v15 = vld [vmem:[%s12427_s15 + $0x3b4] sm:$0xf]  ;;  %620 = vst [vmem:[%s12434_s30 + $0x134] sm:$0xf] %v619_v13  ;;  %622 = vst [vmem:[%s12434_s30 + $0x138] sm:$0xf] %v621_v14 }
  0x5c   : > { %624 = vst [vmem:[%s12434_s30 + $0x13c] sm:$0xf] %v623_v15  ;;  %v625_v16 = vld [vmem:[%s12427_s15 + $0x3c0] sm:$0xf]  ;;  %v627_v17 = vld [vmem:[%s12427_s15 + $0x3cc] sm:$0xf] }
  0x5d   : > { %v629_v18 = vld [vmem:[%s12427_s15 + $0x3d8] sm:$0xf]  ;;  %626 = vst [vmem:[%s12434_s30 + $0x140] sm:$0xf] %v625_v16  ;;  %628 = vst [vmem:[%s12434_s30 + $0x144] sm:$0xf] %v627_v17 }
  0x5e   : > { %630 = vst [vmem:[%s12434_s30 + $0x148] sm:$0xf] %v629_v18  ;;  %v631_v19 = vld [vmem:[%s12427_s15 + $0x3e4] sm:$0xf]  ;;  %v633_v20 = vld [vmem:[%s12427_s15 + $0x3f0] sm:$0xf] }
  0x5f   : > { %v635_v21 = vld [vmem:[%s12427_s15 + $0x3fc] sm:$0xf]  ;;  %632 = vst [vmem:[%s12434_s30 + $0x14c] sm:$0xf] %v631_v19  ;;  %634 = vst [vmem:[%s12434_s30 + $0x150] sm:$0xf] %v633_v20 }
  0x60   : > { %636 = vst [vmem:[%s12434_s30 + $0x154] sm:$0xf] %v635_v21  ;;  %v637_v22 = vld [vmem:[%s12427_s15 + $0x408] sm:$0xf]  ;;  %v639_v23 = vld [vmem:[%s12427_s15 + $0x414] sm:$0xf] }
  0x61   : > { %v641_v24 = vld [vmem:[%s12427_s15 + $0x420] sm:$0xf]  ;;  %638 = vst [vmem:[%s12434_s30 + $0x158] sm:$0xf] %v637_v22  ;;  %640 = vst [vmem:[%s12434_s30 + $0x15c] sm:$0xf] %v639_v23 }
  0x62   : > { %642 = vst [vmem:[%s12434_s30 + $0x160] sm:$0xf] %v641_v24  ;;  %v643_v25 = vld [vmem:[%s12427_s15 + $0x42c] sm:$0xf]  ;;  %v645_v26 = vld [vmem:[%s12427_s15 + $0x438] sm:$0xf] }
  0x63   : > { %v647_v27 = vld [vmem:[%s12427_s15 + $0x444] sm:$0xf]  ;;  %644 = vst [vmem:[%s12434_s30 + $0x164] sm:$0xf] %v643_v25  ;;  %646 = vst [vmem:[%s12434_s30 + $0x168] sm:$0xf] %v645_v26 }
  0x64   : > { %648 = vst [vmem:[%s12434_s30 + $0x16c] sm:$0xf] %v647_v27  ;;  %v649_v28 = vld [vmem:[%s12427_s15 + $0x450] sm:$0xf]  ;;  %v651_v29 = vld [vmem:[%s12427_s15 + $0x45c] sm:$0xf] }
  0x65   : > { %v653_v30 = vld [vmem:[%s12427_s15 + $0x468] sm:$0xf]  ;;  %650 = vst [vmem:[%s12434_s30 + $0x170] sm:$0xf] %v649_v28  ;;  %652 = vst [vmem:[%s12434_s30 + $0x174] sm:$0xf] %v651_v29 }
  0x66   : > { %654 = vst [vmem:[%s12434_s30 + $0x178] sm:$0xf] %v653_v30  ;;  %v655_v31 = vld [vmem:[%s12427_s15 + $0x474] sm:$0xf]  ;;  %v657_v32 = vld [vmem:[%s12427_s15 + $0x480] sm:$0xf] }
  0x67   : > { %v659_v33 = vld [vmem:[%s12427_s15 + $0x48c] sm:$0xf]  ;;  %656 = vst [vmem:[%s12434_s30 + $0x17c] sm:$0xf] %v655_v31  ;;  %658 = vst [vmem:[%s12434_s30 + $0x180] sm:$0xf] %v657_v32 }
  0x68   : > { %660 = vst [vmem:[%s12434_s30 + $0x184] sm:$0xf] %v659_v33  ;;  %v661_v34 = vld [vmem:[%s12427_s15 + $0x498] sm:$0xf]  ;;  %v663_v35 = vld [vmem:[%s12427_s15 + $0x4a4] sm:$0xf] }
  0x69   : > { %v665_v36 = vld [vmem:[%s12427_s15 + $0x4b0] sm:$0xf]  ;;  %662 = vst [vmem:[%s12434_s30 + $0x188] sm:$0xf] %v661_v34  ;;  %664 = vst [vmem:[%s12434_s30 + $0x18c] sm:$0xf] %v663_v35 }
  0x6a   : > { %666 = vst [vmem:[%s12434_s30 + $0x190] sm:$0xf] %v665_v36  ;;  %v667_v37 = vld [vmem:[%s12427_s15 + $0x4bc] sm:$0xf]  ;;  %v669_v38 = vld [vmem:[%s12427_s15 + $0x4c8] sm:$0xf] }
  0x6b   : > { %v671_v39 = vld [vmem:[%s12427_s15 + $0x4d4] sm:$0xf]  ;;  %668 = vst [vmem:[%s12434_s30 + $0x194] sm:$0xf] %v667_v37  ;;  %670 = vst [vmem:[%s12434_s30 + $0x198] sm:$0xf] %v669_v38 }
  0x6c   : > { %672 = vst [vmem:[%s12434_s30 + $0x19c] sm:$0xf] %v671_v39  ;;  %v673_v40 = vld [vmem:[%s12427_s15 + $0x4e0] sm:$0xf]  ;;  %v675_v41 = vld [vmem:[%s12427_s15 + $0x4ec] sm:$0xf] }
  0x6d   : > { %v677_v42 = vld [vmem:[%s12427_s15 + $0x4f8] sm:$0xf]  ;;  %674 = vst [vmem:[%s12434_s30 + $0x1a0] sm:$0xf] %v673_v40  ;;  %676 = vst [vmem:[%s12434_s30 + $0x1a4] sm:$0xf] %v675_v41 }
  0x6e   : > { %678 = vst [vmem:[%s12434_s30 + $0x1a8] sm:$0xf] %v677_v42  ;;  %v679_v43 = vld [vmem:[%s12427_s15 + $0x504] sm:$0xf]  ;;  %v681_v44 = vld [vmem:[%s12427_s15 + $0x510] sm:$0xf] }
  0x6f   : > { %v683_v45 = vld [vmem:[%s12427_s15 + $0x51c] sm:$0xf]  ;;  %680 = vst [vmem:[%s12434_s30 + $0x1ac] sm:$0xf] %v679_v43  ;;  %682 = vst [vmem:[%s12434_s30 + $0x1b0] sm:$0xf] %v681_v44 }
  0x70   : > { %684 = vst [vmem:[%s12434_s30 + $0x1b4] sm:$0xf] %v683_v45  ;;  %v685_v46 = vld [vmem:[%s12427_s15 + $0x528] sm:$0xf]  ;;  %v687_v47 = vld [vmem:[%s12427_s15 + $0x534] sm:$0xf] }
  0x71   : > { %v689_v48 = vld [vmem:[%s12427_s15 + $0x540] sm:$0xf]  ;;  %686 = vst [vmem:[%s12434_s30 + $0x1b8] sm:$0xf] %v685_v46  ;;  %688 = vst [vmem:[%s12434_s30 + $0x1bc] sm:$0xf] %v687_v47 }
  0x72   : > { %690 = vst [vmem:[%s12434_s30 + $0x1c0] sm:$0xf] %v689_v48  ;;  %v691_v49 = vld [vmem:[%s12427_s15 + $0x54c] sm:$0xf]  ;;  %v693_v50 = vld [vmem:[%s12427_s15 + $0x558] sm:$0xf] }
  0x73   : > { %v695_v51 = vld [vmem:[%s12427_s15 + $0x564] sm:$0xf]  ;;  %692 = vst [vmem:[%s12434_s30 + $0x1c4] sm:$0xf] %v691_v49  ;;  %694 = vst [vmem:[%s12434_s30 + $0x1c8] sm:$0xf] %v693_v50 }
  0x74   : > { %696 = vst [vmem:[%s12434_s30 + $0x1cc] sm:$0xf] %v695_v51  ;;  %v697_v52 = vld [vmem:[%s12427_s15 + $0x570] sm:$0xf]  ;;  %v699_v53 = vld [vmem:[%s12427_s15 + $0x57c] sm:$0xf] }
  0x75   : > { %v701_v54 = vld [vmem:[%s12427_s15 + $0x588] sm:$0xf]  ;;  %698 = vst [vmem:[%s12434_s30 + $0x1d0] sm:$0xf] %v697_v52  ;;  %700 = vst [vmem:[%s12434_s30 + $0x1d4] sm:$0xf] %v699_v53 }
  0x76   : > { %702 = vst [vmem:[%s12434_s30 + $0x1d8] sm:$0xf] %v701_v54  ;;  %v703_v55 = vld [vmem:[%s12427_s15 + $0x594] sm:$0xf]  ;;  %v705_v56 = vld [vmem:[%s12427_s15 + $0x5a0] sm:$0xf] }
  0x77   : > { %v707_v57 = vld [vmem:[%s12427_s15 + $0x5ac] sm:$0xf]  ;;  %704 = vst [vmem:[%s12434_s30 + $0x1dc] sm:$0xf] %v703_v55  ;;  %706 = vst [vmem:[%s12434_s30 + $0x1e0] sm:$0xf] %v705_v56 }
  0x78   : > { %708 = vst [vmem:[%s12434_s30 + $0x1e4] sm:$0xf] %v707_v57  ;;  %v709_v58 = vld [vmem:[%s12427_s15 + $0x5b8] sm:$0xf]  ;;  %v711_v59 = vld [vmem:[%s12427_s15 + $0x5c4] sm:$0xf] }
  0x79   : > { %v713_v60 = vld [vmem:[%s12427_s15 + $0x5d0] sm:$0xf]  ;;  %710 = vst [vmem:[%s12434_s30 + $0x1e8] sm:$0xf] %v709_v58  ;;  %712 = vst [vmem:[%s12434_s30 + $0x1ec] sm:$0xf] %v711_v59 }
  0x7a   : > { %714 = vst [vmem:[%s12434_s30 + $0x1f0] sm:$0xf] %v713_v60  ;;  %v715_v61 = vld [vmem:[%s12427_s15 + $0x5dc] sm:$0xf]  ;;  %v717_v62 = vld [vmem:[%s12427_s15 + $0x5e8] sm:$0xf] }
  0x7b   : > { %v719_v63 = vld [vmem:[%s12427_s15 + $0x5f4] sm:$0xf]  ;;  %716 = vst [vmem:[%s12434_s30 + $0x1f4] sm:$0xf] %v715_v61  ;;  %718 = vst [vmem:[%s12434_s30 + $0x1f8] sm:$0xf] %v717_v62 }
  0x7c   : > { %720 = vst [vmem:[%s12434_s30 + $0x1fc] sm:$0xf] %v719_v63  ;;  %v721_v0 = vld [vmem:[%s12427_s15 + $0x600] sm:$0xf]  ;;  %v723_v1 = vld [vmem:[%s12427_s15 + $0x60c] sm:$0xf] }
  0x7d   : > { %v725_v2 = vld [vmem:[%s12427_s15 + $0x618] sm:$0xf]  ;;  %722 = vst [vmem:[%s12434_s30 + $0x200] sm:$0xf] %v721_v0  ;;  %724 = vst [vmem:[%s12434_s30 + $0x204] sm:$0xf] %v723_v1 }
  0x7e   : > { %726 = vst [vmem:[%s12434_s30 + $0x208] sm:$0xf] %v725_v2  ;;  %v727_v3 = vld [vmem:[%s12427_s15 + $0x624] sm:$0xf]  ;;  %v729_v4 = vld [vmem:[%s12427_s15 + $0x630] sm:$0xf] }
  0x7f   : > { %v731_v5 = vld [vmem:[%s12427_s15 + $0x63c] sm:$0xf]  ;;  %728 = vst [vmem:[%s12434_s30 + $0x20c] sm:$0xf] %v727_v3  ;;  %730 = vst [vmem:[%s12434_s30 + $0x210] sm:$0xf] %v729_v4 }
  0x80   : > { %732 = vst [vmem:[%s12434_s30 + $0x214] sm:$0xf] %v731_v5  ;;  %v733_v6 = vld [vmem:[%s12427_s15 + $0x648] sm:$0xf]  ;;  %v735_v7 = vld [vmem:[%s12427_s15 + $0x654] sm:$0xf] }
  0x81   : > { %v737_v8 = vld [vmem:[%s12427_s15 + $0x660] sm:$0xf]  ;;  %734 = vst [vmem:[%s12434_s30 + $0x218] sm:$0xf] %v733_v6  ;;  %736 = vst [vmem:[%s12434_s30 + $0x21c] sm:$0xf] %v735_v7 }
  0x82   : > { %738 = vst [vmem:[%s12434_s30 + $0x220] sm:$0xf] %v737_v8  ;;  %v739_v9 = vld [vmem:[%s12427_s15 + $0x66c] sm:$0xf]  ;;  %v741_v10 = vld [vmem:[%s12427_s15 + $0x678] sm:$0xf] }
  0x83   : > { %v743_v11 = vld [vmem:[%s12427_s15 + $0x684] sm:$0xf]  ;;  %740 = vst [vmem:[%s12434_s30 + $0x224] sm:$0xf] %v739_v9  ;;  %742 = vst [vmem:[%s12434_s30 + $0x228] sm:$0xf] %v741_v10 }
  0x84   : > { %744 = vst [vmem:[%s12434_s30 + $0x22c] sm:$0xf] %v743_v11  ;;  %v745_v12 = vld [vmem:[%s12427_s15 + $0x690] sm:$0xf]  ;;  %v747_v13 = vld [vmem:[%s12427_s15 + $0x69c] sm:$0xf] }
  0x85   : > { %v749_v14 = vld [vmem:[%s12427_s15 + $0x6a8] sm:$0xf]  ;;  %746 = vst [vmem:[%s12434_s30 + $0x230] sm:$0xf] %v745_v12  ;;  %748 = vst [vmem:[%s12434_s30 + $0x234] sm:$0xf] %v747_v13 }
  0x86   : > { %750 = vst [vmem:[%s12434_s30 + $0x238] sm:$0xf] %v749_v14  ;;  %v751_v15 = vld [vmem:[%s12427_s15 + $0x6b4] sm:$0xf] }
  0x87   : > { %752 = vst [vmem:[%s12434_s30 + $0x23c] sm:$0xf] %v751_v15 }
  0x88 PF: > { %p9477_p12 = scmp.ge.s32.totalorder %s12292_s28, 1  ;;  %p1074_p13 = scmp.lt.s32.totalorder %s12292_s28, 6 }
  0x8a   : > { %p1075_p0 = pnand %p9477_p12, %p1074_p13 }
  0x8c   : > { %1078 = sbr.rel (%p1075_p0) target bundleno = 2397 (0x95d), region = 109 }
  0x93   : > { %s12722_s13 = sand.u32 1, %s12284_s26   ;;  %p1144_p1 = scmp.lt.s32.totalorder %s12397_s29, 2 }
  0x94   : > { %15534 = sst [smem:[#allocation16_spill]] %s12722_s13  ;;  %s10927_s14 = smul.u32 576, %s12722_s13 }
  0x95   : > { %s9478_s16 = sshll.u32 %s12722_s13, 3  ;;  %s9485_s17 = sadd.s32 4294967294, %s12397_s29 }
  0x96   : > { %p1167_p2 = scmp.gt.s32.totalorder %s9485_s17, 0  ;;  %p9486_p3 = scmp.lt.s32.totalorder %s9485_s17, 2 }
  0x97   : > { %s1145_s19 = scalar_select %p1144_p1, %s12397_s29, 2 }
  0x98   : > { %s12731_s22 = scalar_select %p1167_p2, %s9485_s17, 0 }
  0x99   : > { %s1147_s23 = scalar_select %p1144_p1, %s1145_s19, 2 }
  0x9a   : > { %s9483_s24 = sshll.u32 %s1145_s19, 4  ;;  %s12752_s19 = scalar_lea.vmem [#allocation4], %s10927_s14 }
  0x9b   : > { %s9482_s15 = sshll.u32 %s1147_s23, 2  ;;  %p1155_p4 = scmp.lt.s32.totalorder %s9483_s24, 47 }
  0x9c   : > { %s12738_s20 = scalar_lea.vmem %s15496_s0, %s9482_s15  ;;  %s12754_s23 = scalar_lea.vmem [#allocation5], %s9478_s16 }
  0x9d   : > { %s15548_s24 = smov (!%p1155_p4, %s9483_s24), 47  ;;  %p9491_p5 = scmp.ne.s32.totalorder %s12397_s29, 0 }
  0x9e   : > { %s12741_s27 = scalar_select %p9486_p3, %s12731_s22, 2 }
  0x9f   : > { %s10928_s26 = smul.u32 36, %s15548_s24  ;;  %v12294_v16 = vmov (!%p9491_p5), 0.0  }
  0xa0   : > { %s1171_s28 = scalar_lea.vmem %s15508_s12, %s12741_s27  ;;  %1182 = sbr.rel (%p9491_p5) target bundleno = 167 (0xa7), region = 117  ;;  %1183 = vst [vmem:[#allocation2] sm:$0xff] (!%p9491_p5), %v12294_v16  ;;  %1184 = vst [vmem:[#allocation2 + $0x8] sm:$0xff] (!%p9491_p5), %v12294_v16 }
  0xa1   : > { %s12750_s17 = scalar_lea.vmem %s15497_s1, %s10928_s26  ;;  %1185 = vst [vmem:[#allocation2 + $0x10] sm:$0xff] (!%p9491_p5), %v12294_v16  ;;  %1186 = vst [vmem:[#allocation2 + $0x18] sm:$0xff] (!%p9491_p5), %v12294_v16 }
  0xa2   : > { %1187 = vst [vmem:[#allocation2 + $0x20] sm:$0xff] (!%p9491_p5), %v12294_v16  ;;  %1188 = vst [vmem:[#allocation2 + $0x28] sm:$0xff] (!%p9491_p5), %v12294_v16 }
  0xa3   : > { %1189 = vst [vmem:[#allocation2 + $0x30] sm:$0xff] (!%p9491_p5), %v12294_v16  ;;  %1190 = vst [vmem:[#allocation2 + $0x38] sm:$0xff] (!%p9491_p5), %v12294_v16 }
  0xa4   : > { %1191 = vst [vmem:[#allocation2 + $0x40] sm:$0xff] (!%p9491_p5), %v12294_v16 }
  0xa7 PF: > { %p9492_p7 = scmp.ge.s32.totalorder %s12397_s29, 3 }
  0xa8   : > { %v10979_v17 = vld [vmem:[%s12750_s17 + $0x4] ss:$36 sps:$4 sm:$0xff] (!%p9492_p7)   ;;  %v12295_v19 = vmov (!%p9492_p7), 0   ;;  %v10982_v20 = vld [vmem:[%s12750_s17 + $0x4c] ss:$36 sps:$4 sm:$0xff] (!%p9492_p7)   ;;  %vm12297_vm0 = vmmov (!%p9492_p7), 0  }
  0xa9   : > { %1195 = sbr.rel (%p9492_p7) target bundleno = 481 (0x1e1), region = 121  ;;  %v10981_v18 = vld [vmem:[%s12750_s17] ss:$36 sps:$4 sm:$0xff] (!%p9492_p7)   ;;  %1686 = vmatprep.mubr.bf16.mxu0 (!%p9492_p7), %v12295_v19  ;;  %1727 = vmatprep.mubr.bf16.mxu1 (!%p9492_p7), %v12295_v19  ;;  %v10984_v21 = vld [vmem:[%s12750_s17 + $0x48] ss:$36 sps:$4 sm:$0xff] (!%p9492_p7)  }
  0xaa   : > { %1654 = vmatprep.subr.bf16.mxu0 (!%p9492_p7), %v10979_v17  ;;  %v10985_v22 = vld [vmem:[%s12750_s17 + $0x94] ss:$36 sps:$4 sm:$0xff] (!%p9492_p7)   ;;  %v10988_v24 = vld [vmem:[%s12750_s17 + $0xdc] ss:$36 sps:$4 sm:$0xff] (!%p9492_p7)   ;;  %v11002_v26 = vld [vmem:[%s12750_s17 + $0xc] ss:$36 sps:$4 sm:$0xff] (!%p9492_p7)  }
  0xab   : > { %1655 = vmatpush1.bf16.msra.mxu0 (!%p9492_p7), %v10981_v18  ;;  %v10987_v23 = vld [vmem:[%s12750_s17 + $0x90] ss:$36 sps:$4 sm:$0xff] (!%p9492_p7)   ;;  %v10990_v25 = vld [vmem:[%s12750_s17 + $0xd8] ss:$36 sps:$4 sm:$0xff] (!%p9492_p7)   ;;  %v11005_v27 = vld [vmem:[%s12750_s17 + $0x8] ss:$36 sps:$4 sm:$0xff] (!%p9492_p7)   ;;  %1695 = vmatprep.subr.bf16.mxu1 (!%p9492_p7), %v11002_v26 }
  0xac   : > { %1656 = vmatprep.subr.bf16.mxu0 (!%p9492_p7), %v10982_v20  ;;  %v10991_v28 = vld [vmem:[%s12750_s17 + $0x124] ss:$36 sps:$4 sm:$0xff] (!%p9492_p7)   ;;  %v11006_v29 = vld [vmem:[%s12750_s17 + $0x54] ss:$36 sps:$4 sm:$0xff] (!%p9492_p7)   ;;  %1696 = vmatpush1.bf16.msra.mxu1 (!%p9492_p7), %v11005_v27  ;;  %v11012_v32 = vld [vmem:[%s12750_s17 + $0x9c] ss:$36 sps:$4 sm:$0xff] (!%p9492_p7)  }
  0xad   : > { %v10993_v30 = vld [vmem:[%s12750_s17 + $0x120] ss:$36 sps:$4 sm:$0xff] (!%p9492_p7)   ;;  %v11011_v31 = vld [vmem:[%s12750_s17 + $0x50] ss:$36 sps:$4 sm:$0xff] (!%p9492_p7)   ;;  %1697 = vmatprep.subr.bf16.mxu1 (!%p9492_p7), %v11006_v29  ;;  %v11017_v34 = vld [vmem:[%s12750_s17 + $0x98] ss:$36 sps:$4 sm:$0xff] (!%p9492_p7)  }
  0xae   : > { %v10994_v33 = vld [vmem:[%s12750_s17 + $0x16c] ss:$36 sps:$4 sm:$0xff] (!%p9492_p7)   ;;  %v11018_v36 = vld [vmem:[%s12750_s17 + $0xe4] ss:$36 sps:$4 sm:$0xff] (!%p9492_p7)   ;;  %v10997_v37 = vld [vmem:[%s12750_s17 + $0x1b4] ss:$36 sps:$4 sm:$0xff] (!%p9492_p7)  }
  0xaf   : > { %1657 = vmatpush1.bf16.msra.mxu0 (!%p9492_p7), %v10984_v21  ;;  %v10996_v35 = vld [vmem:[%s12750_s17 + $0x168] ss:$36 sps:$4 sm:$0xff] (!%p9492_p7)   ;;  %v10999_v38 = vld [vmem:[%s12750_s17 + $0x1b0] ss:$36 sps:$4 sm:$0xff] (!%p9492_p7)   ;;  %v11023_v39 = vld [vmem:[%s12750_s17 + $0xe0] ss:$36 sps:$4 sm:$0xff] (!%p9492_p7)  }
  0xb0   : > { %1658 = vmatprep.subr.bf16.mxu0 %v10985_v22  ;;  %1698 = vmatpush1.bf16.msra.mxu1 %v11011_v31  ;;  %v11024_v40 = vld [vmem:[%s12750_s17 + $0x12c] ss:$36 sps:$4 sm:$0xff]   ;;  %v11000_v41 = vld [vmem:[%s12750_s17 + $0x1fc] ss:$36 sps:$4 sm:$0xff]   ;;  %v11030_v44 = vld [vmem:[%s12750_s17 + $0x174] ss:$36 sps:$4 sm:$0xff]  }
  0xb1   : > { %1699 = vmatprep.subr.bf16.mxu1 %v11012_v32  ;;  %v11029_v42 = vld [vmem:[%s12750_s17 + $0x128] ss:$36 sps:$4 sm:$0xff]   ;;  %v11004_v43 = vld [vmem:[%s12750_s17 + $0x1f8] ss:$36 sps:$4 sm:$0xff]   ;;  %v12789_v46 = vld [vmem:[%s12738_s20] sm:$0xf] }
  0xb2   : > { %v11010_v45 = vld [vmem:[%s12750_s17 + $0x14] ss:$36 sps:$4 sm:$0xff]   ;;  %v11036_v49 = vld [vmem:[%s12750_s17 + $0x1bc] ss:$36 sps:$4 sm:$0xff]   ;;  %v11042_v53 = vld [vmem:[%s12750_s17 + $0x204] ss:$36 sps:$4 sm:$0xff]  }
  0xb3   : > { %1659 = vmatpush1.bf16.msra.mxu0 %v10987_v23  ;;  %v11008_v47 = vld [vmem:[%s12750_s17 + $0x10] ss:$36 sps:$4 sm:$0xff]   ;;  %v11016_v50 = vld [vmem:[%s12750_s17 + $0x5c] ss:$36 sps:$4 sm:$0xff]   ;;  %v11022_v54 = vld [vmem:[%s12750_s17 + $0xa4] ss:$36 sps:$4 sm:$0xff]  }
  0xb4   : > { %1660 = vmatprep.subr.bf16.mxu0 %v10988_v24  ;;  %1700 = vmatpush1.bf16.msra.mxu1 %v11017_v34  ;;  %v11035_v48 = vld [vmem:[%s12750_s17 + $0x170] ss:$36 sps:$4 sm:$0xff]   ;;  %v11014_v51 = vld [vmem:[%s12750_s17 + $0x58] ss:$36 sps:$4 sm:$0xff]   ;;  %v11047_v55 = vld [vmem:[%s12750_s17 + $0x200] ss:$36 sps:$4 sm:$0xff]  }
  0xb5   : > { %1701 = vmatprep.subr.bf16.mxu1 %v11018_v36  ;;  %v11041_v52 = vld [vmem:[%s12750_s17 + $0x1b8] ss:$36 sps:$4 sm:$0xff]   ;;  %v11020_v56 = vld [vmem:[%s12750_s17 + $0xa0] ss:$36 sps:$4 sm:$0xff]   ;;  %v11028_v58 = vld [vmem:[%s12750_s17 + $0xec] ss:$36 sps:$4 sm:$0xff]  }
  0xb6   : > { %v11053_v57 = vld [vmem:[%s12750_s17 + $0x1c] ss:$36 sps:$4 sm:$0xff]   ;;  %v11026_v59 = vld [vmem:[%s12750_s17 + $0xe8] ss:$36 sps:$4 sm:$0xff]   ;;  %v11034_v62 = vld [vmem:[%s12750_s17 + $0x134] ss:$36 sps:$4 sm:$0xff]  }
  0xb7   : > { %1661 = vmatpush1.bf16.msra.mxu0 %v10990_v25  ;;  %v11051_v60 = vld [vmem:[%s12750_s17 + $0x18] ss:$36 sps:$4 sm:$0xff]   ;;  %v11056_v61 = vld [vmem:[%s12750_s17 + $0x64] ss:$36 sps:$4 sm:$0xff]   ;;  %v11032_v63 = vld [vmem:[%s12750_s17 + $0x130] ss:$36 sps:$4 sm:$0xff]  }
  0xb8   : > { %1662 = vmatprep.subr.bf16.mxu0 %v10991_v28  ;;  %1702 = vmatpush1.bf16.msra.mxu1 %v11023_v39  ;;  %v11054_v0 = vld [vmem:[%s12750_s17 + $0x60] ss:$36 sps:$4 sm:$0xff]   ;;  %v11060_v1 = vld [vmem:[%s12750_s17 + $0xac] ss:$36 sps:$4 sm:$0xff]   ;;  %v11038_v4 = vld [vmem:[%s12750_s17 + $0x178] ss:$36 sps:$4 sm:$0xff]  }
  0xb9   : > { %1703 = vmatprep.subr.bf16.mxu1 %v11024_v40  ;;  %v11040_v2 = vld [vmem:[%s12750_s17 + $0x17c] ss:$36 sps:$4 sm:$0xff]   ;;  %v11058_v3 = vld [vmem:[%s12750_s17 + $0xa8] ss:$36 sps:$4 sm:$0xff]   ;;  %v11064_v5 = vld [vmem:[%s12750_s17 + $0xf4] ss:$36 sps:$4 sm:$0xff]  }
  0xba   : > { %v11046_v6 = vld [vmem:[%s12750_s17 + $0x1c4] ss:$36 sps:$4 sm:$0xff]   ;;  %v11062_v7 = vld [vmem:[%s12750_s17 + $0xf0] ss:$36 sps:$4 sm:$0xff]   ;;  %v11068_v9 = vld [vmem:[%s12750_s17 + $0x13c] ss:$36 sps:$4 sm:$0xff]  }
  0xbb   : > { %1663 = vmatpush1.bf16.msra.mxu0 %v10993_v30  ;;  %v11044_v8 = vld [vmem:[%s12750_s17 + $0x1c0] ss:$36 sps:$4 sm:$0xff]   ;;  %v11050_v10 = vld [vmem:[%s12750_s17 + $0x20c] ss:$36 sps:$4 sm:$0xff]   ;;  %v11066_v11 = vld [vmem:[%s12750_s17 + $0x138] ss:$36 sps:$4 sm:$0xff]  }
  0xbc   : > { %1664 = vmatprep.subr.bf16.mxu0 %v10994_v33  ;;  %1704 = vmatpush1.bf16.msra.mxu1 %v11029_v42  ;;  %v11048_v12 = vld [vmem:[%s12750_s17 + $0x208] ss:$36 sps:$4 sm:$0xff]   ;;  %v11070_v14 = vld [vmem:[%s12750_s17 + $0x180] ss:$36 sps:$4 sm:$0xff]   ;;  %v12296_v17 = vmov 0.0   ;;  %v1198_v36 = vld [vmem:[#allocation2 + $0x10] sm:$0xff] }
  0xbd   : > { %1705 = vmatprep.subr.bf16.mxu1 %v11030_v44  ;;  %v11072_v13 = vld [vmem:[%s12750_s17 + $0x184] ss:$36 sps:$4 sm:$0xff]   ;;  %v11076_v16 = vld [vmem:[%s12750_s17 + $0x1cc] ss:$36 sps:$4 sm:$0xff]   ;;  %v11080_v20 = vld [vmem:[%s12750_s17 + $0x214] ss:$36 sps:$4 sm:$0xff]  }
  0xbe   : > { %v11057_v15 = vld [vmem:[%s12750_s17 + $0x20] ss:$36 sps:$4 sm:$0xff]   ;;  %v11074_v18 = vld [vmem:[%s12750_s17 + $0x1c8] ss:$36 sps:$4 sm:$0xff]   ;;  %v11078_v21 = vld [vmem:[%s12750_s17 + $0x210] ss:$36 sps:$4 sm:$0xff]  }
  0xbf   : > { %1665 = vmatpush1.bf16.msra.mxu0 %v10996_v35  ;;  %v11065_v22 = vld [vmem:[%s12750_s17 + $0xb0] ss:$36 sps:$4 sm:$0xff]   ;;  %v11069_v23 = vld [vmem:[%s12750_s17 + $0xf8] ss:$36 sps:$4 sm:$0xff]   ;;  %v11073_v24 = vld [vmem:[%s12750_s17 + $0x140] ss:$36 sps:$4 sm:$0xff]  }
  0xc0   : > { %1666 = vmatprep.subr.bf16.mxu0 %v10997_v37  ;;  %1706 = vmatpush1.bf16.msra.mxu1 %v11035_v48  ;;  %v11077_v25 = vld [vmem:[%s12750_s17 + $0x188] ss:$36 sps:$4 sm:$0xff]   ;;  %v11081_v26 = vld [vmem:[%s12750_s17 + $0x1d0] ss:$36 sps:$4 sm:$0xff]   ;;  %v11082_v27 = vld [vmem:[%s12750_s17 + $0x218] ss:$36 sps:$4 sm:$0xff]  }
  0xc1   : > { %1707 = vmatprep.subr.bf16.mxu1 %v11036_v49  ;;  %v1196_v28 = vld [vmem:[#allocation2] sm:$0xff]  ;;  %v1197_v29 = vld [vmem:[#allocation2 + $0x8] sm:$0xff]  ;;  %v1199_v37 = vld [vmem:[#allocation2 + $0x18] sm:$0xff] }
  0xc2   : > { %v1200_v44 = vld [vmem:[#allocation2 + $0x20] sm:$0xff] }
  0xc3   : > { %1667 = vmatpush1.bf16.msra.mxu0 %v10999_v38 }
  0xc4   : > { %1668 = vmatprep.subr.bf16.mxu0 %v11000_v41  ;;  %1708 = vmatpush1.bf16.msra.mxu1 %v11041_v52  ;;  %v1202_v52 = vld [vmem:[#allocation2 + $0x30] sm:$0xff] }
  0xc5   : > { %1709 = vmatprep.subr.bf16.mxu1 %v11042_v53  ;;  %v1203_v53 = vld [vmem:[#allocation2 + $0x38] sm:$0xff] }
  0xc7   : > { %1669 = vmatpush1.bf16.msra.mxu0 %v11004_v43 }
  0xc8   : > { %1736 = vmatprep.subr.bf16.mxu0 %v11010_v45  ;;  %1710 = vmatpush1.bf16.msra.mxu1 %v11047_v55  ;;  %v1201_v45 = vld [vmem:[#allocation2 + $0x28] sm:$0xff] }
  0xc9   : > { %1777 = vmatprep.subr.bf16.mxu1 %v11053_v57 }
  0xca   : > { %1687 = vmatmul.mubr.bf16.vlgmr.msra.gmra.mrb[0].mxu0 %v12789_v46 }
  0xcb   : > { %1737 = vmatpush1.bf16.msra.mxu0 %v11008_v47  ;;  %1768 = vmatprep.mubr.bf16.mxu0 %v12295_v19 }
  0xcc   : > { %1738 = vmatprep.subr.bf16.mxu0 %v11016_v50  ;;  %1728 = vmatmul.mubr.bf16.vlgmr.msra.gmra.mrb[0].mxu1 %v12789_v46 }
  0xcd   : > { %1778 = vmatpush1.bf16.msra.mxu1 %v11051_v60  ;;  %1809 = vmatprep.mubr.bf16.mxu1 %v12295_v19  ;;  %v11061_v19 = vld [vmem:[%s12750_s17 + $0x68] ss:$36 sps:$4 sm:$0xff]   ;;  %v1204_v60 = vld [vmem:[#allocation2 + $0x40] sm:$0xff] }
  0xce   : > { %1779 = vmatprep.subr.bf16.mxu1 %v11056_v61 }
  0xcf   : > { %1739 = vmatpush1.bf16.msra.mxu0 %v11014_v51 }
  0xd0   : > { %1740 = vmatprep.subr.bf16.mxu0 %v11022_v54 }
  0xd1   : > { %1780 = vmatpush1.bf16.msra.mxu1 %v11054_v0 }
  0xd2   : > { %1781 = vmatprep.subr.bf16.mxu1 %v11060_v1 }
  0xd3   : > { %1741 = vmatpush1.bf16.msra.mxu0 %v11020_v56 }
  0xd4   : > { %1742 = vmatprep.subr.bf16.mxu0 %v11028_v58 }
  0xd5   : > { %1782 = vmatpush1.bf16.msra.mxu1 %v11058_v3 }
  0xd6   : > { %1783 = vmatprep.subr.bf16.mxu1 %v11064_v5 }
  0xd7   : > { %1743 = vmatpush1.bf16.msra.mxu0 %v11026_v59 }
  0xd8   : > { %1744 = vmatprep.subr.bf16.mxu0 %v11034_v62 }
  0xd9   : > { %1784 = vmatpush1.bf16.msra.mxu1 %v11062_v7 }
  0xda   : > { %1785 = vmatprep.subr.bf16.mxu1 %v11068_v9 }
  0xdb   : > { %1745 = vmatpush1.bf16.msra.mxu0 %v11032_v63 }
  0xdc   : > { %1746 = vmatprep.subr.bf16.mxu0 %v11040_v2 }
  0xdd   : > { %1786 = vmatpush1.bf16.msra.mxu1 %v11066_v11 }
  0xde   : > { %1787 = vmatprep.subr.bf16.mxu1 %v11072_v13 }
  0xdf   : > { %1747 = vmatpush1.bf16.msra.mxu0 %v11038_v4 }
  0xe0   : > { %1748 = vmatprep.subr.bf16.mxu0 %v11046_v6 }
  0xe1   : > { %1788 = vmatpush1.bf16.msra.mxu1 %v11070_v14 }
  0xe2   : > { %1789 = vmatprep.subr.bf16.mxu1 %v11076_v16 }
  0xe3   : > { %1749 = vmatpush1.bf16.msra.mxu0 %v11044_v8 }
  0xe4   : > { %1750 = vmatprep.subr.bf16.mxu0 %v11050_v10 }
  0xe5   : > { %1790 = vmatpush1.bf16.msra.mxu1 %v11074_v18 }
  0xe6   : > { %1791 = vmatprep.subr.bf16.mxu1 %v11080_v20 }
  0xe7   : > { %1751 = vmatpush1.bf16.msra.mxu0 %v11048_v12 }
  0xe8   : > { %10744 = vmatprep.subr.bf16.mxu0 %v12296_v17 }
  0xe9   : > { %1792 = vmatpush1.bf16.msra.mxu1 %v11078_v21 }
  0xea   : > { %1769 = vmatmul.mubr.bf16.vlgmr.msra.gmra.mrb[4].mxu0 %v12789_v46 }
  0xeb   : > { %10745 = vmatpush3.bf16.msra.mxu0 %v11057_v15  ;;  %10760 = vmatprep.mubr.msk.bf16.mxu0 %vm12297_vm0, %v12296_v17 }
  0xec   : > { %10746 = vmatprep.subr.bf16.mxu0 %v12296_v17  ;;  %1810 = vmatmul.mubr.bf16.vlgmr.msra.gmra.mrb[4].mxu1 %v12789_v46 }
  0xef   : > { %10747 = vmatpush3.bf16.msra.mxu0 %v11061_v19 }
  0xf0   : > { %10748 = vmatprep.subr.bf16.mxu0 %v12296_v17 }
  0xf3   : > { %10749 = vmatpush3.bf16.msra.mxu0 %v11065_v22 }
  0xf4   : > { %10750 = vmatprep.subr.bf16.mxu0 %v12296_v17 }
  0xf7   : > { %10751 = vmatpush3.bf16.msra.mxu0 %v11069_v23 }
  0xf8   : > { %10752 = vmatprep.subr.bf16.mxu0 %v12296_v17 }
  0xfb   : > { %10753 = vmatpush3.bf16.msra.mxu0 %v11073_v24 }
  0xfc   : > { %10754 = vmatprep.subr.bf16.mxu0 %v12296_v17 }
  0xff   : > { %10755 = vmatpush3.bf16.msra.mxu0 %v11077_v25 }
 0x100   : > { %10756 = vmatprep.subr.bf16.mxu0 %v12296_v17 }
 0x103   : > { %10757 = vmatpush3.bf16.msra.mxu0 %v11081_v26 }
 0x104   : > { %10758 = vmatprep.subr.bf16.mxu0 %v12296_v17 }
 0x107   : > { %10759 = vmatpush3.bf16.msra.mxu0 %v11082_v27 }
 0x10a   : > { %10761 = vmatmul.mubr.bf16.vlgmr.msra.gmra.mrb[8].mxu0 %v12789_v46 }
 0x19d   : > { %v1688_v30 = vpop.f32.mrb[0].mxu0 }
 0x19e   : > { %v1858_v31 = vadd.f32 %v1688_v30, %v1196_v28  ;;  %v1690_v32 = vpop.f32.mrb[1].mxu0 }
 0x19f   : > { %v1859_v33 = vadd.f32 %v1690_v32, %v1197_v29  ;;  %v1692_v34 = vpop.f32.mrb[2].mxu0  ;;  %v1729_v38 = vpop.f32.mrb[0].mxu1 }
 0x1a0   : > { %1867 = vst [vmem:[#allocation2] sm:$0xff] %v1858_v31  ;;  %v1693_v35 = vpop.f32.mrb[3].mxu0  ;;  %v1860_v39 = vadd.f32 %v1729_v38, %v1198_v36  ;;  %v1731_v40 = vpop.f32.mrb[1].mxu1 }
 0x1a1   : > { %1868 = vst [vmem:[#allocation2 + $0x8] sm:$0xff] %v1859_v33  ;;  %v1861_v41 = vadd.f32 %v1731_v40, %v1199_v37  ;;  %v1733_v42 = vpop.f32.mrb[2].mxu1 }
 0x1a2   : > { %1869 = vst [vmem:[#allocation2 + $0x10] sm:$0xff] %v1860_v39  ;;  %v1734_v43 = vpop.f32.mrb[3].mxu1 }
 0x1a3   : > { %1870 = vst [vmem:[#allocation2 + $0x18] sm:$0xff] %v1861_v41 }
 0x1bd   : > { %v1770_v46 = vpop.f32.mrb[4].mxu0 }
 0x1be   : > { %v1862_v47 = vadd.f32 %v1770_v46, %v1200_v44  ;;  %v1772_v48 = vpop.f32.mrb[5].mxu0 }
 0x1bf   : > { %v1863_v49 = vadd.f32 %v1772_v48, %v1201_v45  ;;  %v1774_v50 = vpop.f32.mrb[6].mxu0  ;;  %v1811_v54 = vpop.f32.mrb[4].mxu1 }
 0x1c0   : > { %1871 = vst [vmem:[#allocation2 + $0x20] sm:$0xff] %v1862_v47  ;;  %v1775_v51 = vpop.f32.mrb[7].mxu0  ;;  %v1864_v55 = vadd.f32 %v1811_v54, %v1202_v52  ;;  %v1813_v56 = vpop.f32.mrb[5].mxu1 }
 0x1c1   : > { %1872 = vst [vmem:[#allocation2 + $0x28] sm:$0xff] %v1863_v49  ;;  %v1865_v57 = vadd.f32 %v1813_v56, %v1203_v53  ;;  %v1815_v58 = vpop.f32.mrb[6].mxu1 }
 0x1c2   : > { %1873 = vst [vmem:[#allocation2 + $0x30] sm:$0xff] %v1864_v55  ;;  %v1816_v59 = vpop.f32.mrb[7].mxu1 }
 0x1c3   : > { %1874 = vst [vmem:[#allocation2 + $0x38] sm:$0xff] %v1865_v57 }
 0x1dd   : > { %v1852_v61 = vpop.f32.mrb[8].mxu0 }
 0x1de   : > { %v1866_v62 = vadd.f32 %v1852_v61, %v1204_v60  ;;  %v10762_v63 = vpop.f32.mrb[9].mxu0 }
 0x1df   : > { %v1855_v0 = vpop.f32.mrb[10].mxu0 }
 0x1e0   : > { %1875 = vst [vmem:[#allocation2 + $0x40] sm:$0xff] %v1866_v62  ;;  %v10763_v1 = vpop.f32.mrb[11].mxu0 }
 0x1e1 PF: > { %p9565_p8 = scmp.ne.s32.totalorder %s12397_s29, 2 }
 0x1e2   : > { %v11083_v2 = vld [vmem:[%s15499_s3 + $0x4] ss:$20 sps:$4 sm:$0xff] (!%p9565_p8)   ;;  %v11085_v3 = vld [vmem:[%s15499_s3 + $0xc] ss:$20 sps:$4 sm:$0xff] (!%p9565_p8)   ;;  %v11088_v5 = vld [vmem:[%s15499_s3 + $0x8] ss:$20 sps:$4 sm:$0xff] (!%p9565_p8)   ;;  %v1893_v39 = vlaneseq (!%p9565_p8) }
 0x1e3   : > { %1879 = sbr.rel (%p9565_p8) target bundleno = 2060 (0x80c), region = 125  ;;  %4296 = vmatprep.subr.bf16.mxu0 (!%p9565_p8), %v11083_v2  ;;  %v11087_v4 = vld [vmem:[%s15499_s3] ss:$20 sps:$4 sm:$0xff] (!%p9565_p8)   ;;  %4501 = vmatprep.subr.bf16.mxu1 (!%p9565_p8), %v11085_v3  ;;  %v11093_v8 = vld [vmem:[%s15499_s3 + $0x28] ss:$20 sps:$4 sm:$0xff] (!%p9565_p8)   ;;  %vm12300_vm1 = vmmov (!%p9565_p8), 0  }
 0x1e4   : > { %v11089_v6 = vld [vmem:[%s15499_s3 + $0x2c] ss:$20 sps:$4 sm:$0xff] (!%p9565_p8)   ;;  %4297 = vmatpush1.bf16.msra.mxu0 (!%p9565_p8), %v11087_v4  ;;  %4502 = vmatpush1.bf16.msra.mxu1 (!%p9565_p8), %v11088_v5  ;;  %v11091_v7 = vld [vmem:[%s15499_s3 + $0x34] ss:$20 sps:$4 sm:$0xff] (!%p9565_p8)   ;;  %v11094_v9 = vld [vmem:[%s15499_s3 + $0x30] ss:$20 sps:$4 sm:$0xff] (!%p9565_p8)  }
 0x1e5   : > { %4298 = vmatprep.subr.bf16.mxu0 (!%p9565_p8), %v11089_v6  ;;  %4503 = vmatprep.subr.bf16.mxu1 (!%p9565_p8), %v11091_v7  ;;  %v11095_v10 = vld [vmem:[%s15499_s3 + $0x54] ss:$20 sps:$4 sm:$0xff] (!%p9565_p8)   ;;  %v11097_v11 = vld [vmem:[%s15499_s3 + $0x5c] ss:$20 sps:$4 sm:$0xff] (!%p9565_p8)   ;;  %v11100_v13 = vld [vmem:[%s15499_s3 + $0x58] ss:$20 sps:$4 sm:$0xff] (!%p9565_p8)  }
 0x1e6   : > { %v11099_v12 = vld [vmem:[%s15499_s3 + $0x50] ss:$20 sps:$4 sm:$0xff] (!%p9565_p8)   ;;  %v11105_v16 = vld [vmem:[%s15499_s3 + $0x78] ss:$20 sps:$4 sm:$0xff] (!%p9565_p8)   ;;  %v11106_v17 = vld [vmem:[%s15499_s3 + $0x80] ss:$20 sps:$4 sm:$0xff] (!%p9565_p8)  }
 0x1e7   : > { %v11101_v14 = vld [vmem:[%s15499_s3 + $0x7c] ss:$20 sps:$4 sm:$0xff] (!%p9565_p8)   ;;  %v11103_v15 = vld [vmem:[%s15499_s3 + $0x84] ss:$20 sps:$4 sm:$0xff] (!%p9565_p8)   ;;  %v11109_v19 = vld [vmem:[%s15499_s3 + $0xac] ss:$20 sps:$4 sm:$0xff] (!%p9565_p8)  }
 0x1e8   : > { %4299 = vmatpush1.bf16.msra.mxu0 (!%p9565_p8), %v11093_v8  ;;  %4504 = vmatpush1.bf16.msra.mxu1 (!%p9565_p8), %v11094_v9  ;;  %v11107_v18 = vld [vmem:[%s15499_s3 + $0xa4] ss:$20 sps:$4 sm:$0xff] (!%p9565_p8)   ;;  %v11111_v20 = vld [vmem:[%s15499_s3 + $0xa0] ss:$20 sps:$4 sm:$0xff] (!%p9565_p8)   ;;  %v11112_v21 = vld [vmem:[%s15499_s3 + $0xa8] ss:$20 sps:$4 sm:$0xff] (!%p9565_p8)  }
 0x1e9   : > { %4300 = vmatprep.subr.bf16.mxu0 (!%p9565_p8), %v11095_v10  ;;  %4505 = vmatprep.subr.bf16.mxu1 (!%p9565_p8), %v11097_v11  ;;  %v11113_v22 = vld [vmem:[%s15499_s3 + $0xcc] ss:$20 sps:$4 sm:$0xff] (!%p9565_p8)   ;;  %v11115_v23 = vld [vmem:[%s15499_s3 + $0xd4] ss:$20 sps:$4 sm:$0xff] (!%p9565_p8)   ;;  %v11118_v25 = vld [vmem:[%s15499_s3 + $0xd0] ss:$20 sps:$4 sm:$0xff] (!%p9565_p8)  }
 0x1ea   : > { %v11117_v24 = vld [vmem:[%s15499_s3 + $0xc8] ss:$20 sps:$4 sm:$0xff]   ;;  %v11123_v28 = vld [vmem:[%s15499_s3 + $0xf0] ss:$20 sps:$4 sm:$0xff]   ;;  %v11124_v29 = vld [vmem:[%s15499_s3 + $0xf8] ss:$20 sps:$4 sm:$0xff]  }
 0x1eb   : > { %v11119_v26 = vld [vmem:[%s15499_s3 + $0xf4] ss:$20 sps:$4 sm:$0xff]   ;;  %v11121_v27 = vld [vmem:[%s15499_s3 + $0xfc] ss:$20 sps:$4 sm:$0xff]   ;;  %v11127_v31 = vld [vmem:[%s15499_s3 + $0x124] ss:$20 sps:$4 sm:$0xff]  }
 0x1ec   : > { %4301 = vmatpush1.bf16.msra.mxu0 %v11099_v12  ;;  %4506 = vmatpush1.bf16.msra.mxu1 %v11100_v13  ;;  %v11125_v30 = vld [vmem:[%s15499_s3 + $0x11c] ss:$20 sps:$4 sm:$0xff]   ;;  %v11129_v32 = vld [vmem:[%s15499_s3 + $0x118] ss:$20 sps:$4 sm:$0xff]   ;;  %v11130_v33 = vld [vmem:[%s15499_s3 + $0x120] ss:$20 sps:$4 sm:$0xff]  }
 0x1ed   : > { %4302 = vmatprep.subr.bf16.mxu0 %v11101_v14  ;;  %4507 = vmatprep.subr.bf16.mxu1 %v11103_v15  ;;  %v11131_v34 = vld [vmem:[%s15499_s3 + $0x144] ss:$20 sps:$4 sm:$0xff]   ;;  %v11133_v35 = vld [vmem:[%s15499_s3 + $0x14c] ss:$20 sps:$4 sm:$0xff]   ;;  %v11136_v37 = vld [vmem:[%s15499_s3 + $0x148] ss:$20 sps:$4 sm:$0xff]  }
 0x1ee   : > { %v11135_v36 = vld [vmem:[%s15499_s3 + $0x140] ss:$20 sps:$4 sm:$0xff]   ;;  %v11141_v41 = vld [vmem:[%s15499_s3 + $0x168] ss:$20 sps:$4 sm:$0xff]   ;;  %v11142_v42 = vld [vmem:[%s15499_s3 + $0x170] ss:$20 sps:$4 sm:$0xff]  }
 0x1ef   : > { %v11137_v38 = vld [vmem:[%s15499_s3 + $0x16c] ss:$20 sps:$4 sm:$0xff]   ;;  %v11139_v40 = vld [vmem:[%s15499_s3 + $0x174] ss:$20 sps:$4 sm:$0xff]   ;;  %v12966_v44 = vshrl.u32 %v1893_v39, 7  ;;  %vm5423_vm2 = vcmask 1040384  }
 0x1f0   : > { %4303 = vmatpush1.bf16.msra.mxu0 %v11105_v16  ;;  %4508 = vmatpush1.bf16.msra.mxu1 %v11106_v17  ;;  %v11143_v43 = vld [vmem:[%s15499_s3 + $0x194] ss:$20 sps:$4 sm:$0xff]   ;;  %v11145_v45 = vld [vmem:[%s15499_s3 + $0x19c] ss:$20 sps:$4 sm:$0xff]   ;;  %v11148_v47 = vld [vmem:[%s15499_s3 + $0x198] ss:$20 sps:$4 sm:$0xff]  }
 0x1f1   : > { %4304 = vmatprep.subr.bf16.mxu0 %v11107_v18  ;;  %4509 = vmatprep.subr.bf16.mxu1 %v11109_v19  ;;  %v11147_v46 = vld [vmem:[%s15499_s3 + $0x190] ss:$20 sps:$4 sm:$0xff]   ;;  %v12981_v49 = vsub.s32 1, %v12966_v44  ;;  %v1881_v51 = vld [vmem:[#allocation2 + $0x8] sm:$0xff]  ;;  %v11154_v54 = vld [vmem:[%s15499_s3 + $0x1c0] ss:$20 sps:$4 sm:$0xff]  }
 0x1f2   : > { %v11149_v48 = vld [vmem:[%s15499_s3 + $0x1bc] ss:$20 sps:$4 sm:$0xff]   ;;  %v11151_v50 = vld [vmem:[%s15499_s3 + $0x1c4] ss:$20 sps:$4 sm:$0xff]   ;;  %v11157_v57 = vld [vmem:[%s15499_s3 + $0x1ec] ss:$20 sps:$4 sm:$0xff]  }
 0x1f3   : > { %v12989_v52 = vld [vmem:[%s15498_s2] sm:$0xff]  ;;  %v11153_v53 = vld [vmem:[%s15499_s3 + $0x1b8] ss:$20 sps:$4 sm:$0xff]   ;;  %v13009_v60 = vsub.s32 0, %v12966_v44  ;;  %v11160_v61 = vld [vmem:[%s15499_s3 + $0x1e8] ss:$20 sps:$4 sm:$0xff]  }
 0x1f4   : > { %4305 = vmatpush1.bf16.msra.mxu0 %v11111_v20  ;;  %4510 = vmatpush1.bf16.msra.mxu1 %v11112_v21  ;;  %v1900_v55 = vrot.slane %v12989_v52, %v12981_v49  ;;  %v11155_v56 = vld [vmem:[%s15499_s3 + $0x1e4] ss:$20 sps:$4 sm:$0xff]   ;;  %v11159_v59 = vld [vmem:[%s15499_s3 + $0x1e0] ss:$20 sps:$4 sm:$0xff]   ;;  %v11165_v2 = vld [vmem:[%s15499_s3 + $0x208] ss:$20 sps:$4 sm:$0xff]  }
 0x1f5   : > { %4306 = vmatprep.subr.bf16.mxu0 %v11113_v22  ;;  %4511 = vmatprep.subr.bf16.mxu1 %v11115_v23  ;;  %v11161_v62 = vld [vmem:[%s15499_s3 + $0x20c] ss:$20 sps:$4 sm:$0xff]   ;;  %v11163_v0 = vld [vmem:[%s15499_s3 + $0x214] ss:$20 sps:$4 sm:$0xff]   ;;  %v11166_v3 = vld [vmem:[%s15499_s3 + $0x210] ss:$20 sps:$4 sm:$0xff]   ;;  %v1896_v4 = vrot.slane %v12989_v52, %v13009_v60 }
 0x1f6   : > { %v1939_v58 = vadd.f32 %v1900_v55, %v1881_v51  ;;  %v11167_v5 = vld [vmem:[%s15499_s3 + $0x234] ss:$20 sps:$4 sm:$0xff]   ;;  %v1880_v6 = vld [vmem:[#allocation2] sm:$0xff]  ;;  %v11169_v7 = vld [vmem:[%s15499_s3 + $0x23c] ss:$20 sps:$4 sm:$0xff]   ;;  %vm5424_vm3 = vcmask 1041408  }
 0x1f7   : > { %v11171_v8 = vld [vmem:[%s15499_s3 + $0x230] ss:$20 sps:$4 sm:$0xff]   ;;  %v1938_v9 = vadd.f32 %v1896_v4, %v1880_v6  ;;  %v11172_v10 = vld [vmem:[%s15499_s3 + $0x238] ss:$20 sps:$4 sm:$0xff]   ;;  %v11178_v15 = vld [vmem:[%s15499_s3 + $0x260] ss:$20 sps:$4 sm:$0xff]  }
 0x1f8   : > { %4307 = vmatpush1.bf16.msra.mxu0 %v11117_v24  ;;  %4512 = vmatpush1.bf16.msra.mxu1 %v11118_v25  ;;  %v1948_v63 = vmax.f32 %v1939_v58, 0.0  ;;  %v11173_v11 = vld [vmem:[%s15499_s3 + $0x25c] ss:$20 sps:$4 sm:$0xff]   ;;  %v11175_v12 = vld [vmem:[%s15499_s3 + $0x264] ss:$20 sps:$4 sm:$0xff]   ;;  %vm5419_vm4 = vcmask 23552  }
 0x1f9   : > { %4308 = vmatprep.subr.bf16.mxu0 %v11119_v26  ;;  %4513 = vmatprep.subr.bf16.mxu1 %v11121_v27  ;;  %v11177_v13 = vld [vmem:[%s15499_s3 + $0x258] ss:$20 sps:$4 sm:$0xff]   ;;  %v1947_v14 = vmax.f32 %v1938_v9, 0.0  ;;  %v11179_v18 = vld [vmem:[%s15499_s3 + $0x280] ss:$20 sps:$4 sm:$0xff]  }
 0x1fa   : > { %v13020_v1 = vpack.c.bf16 %v1948_v63, %v1948_v63  ;;  %v11181_v16 = vld [vmem:[%s15499_s3 + $0x284] ss:$20 sps:$4 sm:$0xff]   ;;  %v11184_v17 = vld [vmem:[%s15499_s3 + $0x28c] ss:$20 sps:$4 sm:$0xff]   ;;  %v11182_v20 = vld [vmem:[%s15499_s3 + $0x288] ss:$20 sps:$4 sm:$0xff]  }
 0x1fb   : > { %v13065_v19 = vpack.c.bf16 %v1947_v14, %v1947_v14  ;;  %v11187_v21 = vld [vmem:[%s15499_s3 + $0x2ac] ss:$20 sps:$4 sm:$0xff]   ;;  %v11190_v22 = vld [vmem:[%s15499_s3 + $0x2b4] ss:$20 sps:$4 sm:$0xff]   ;;  %v11188_v24 = vld [vmem:[%s15499_s3 + $0x2b0] ss:$20 sps:$4 sm:$0xff]  }
 0x1fc   : > { %4309 = vmatpush1.bf16.msra.mxu0 %v11123_v28  ;;  %4514 = vmatpush1.bf16.msra.mxu1 %v11124_v29  ;;  %v11185_v23 = vld [vmem:[%s15499_s3 + $0x2a8] ss:$20 sps:$4 sm:$0xff]   ;;  %v11191_v27 = vld [vmem:[%s15499_s3 + $0x2d0] ss:$20 sps:$4 sm:$0xff]   ;;  %v11194_v28 = vld [vmem:[%s15499_s3 + $0x2d8] ss:$20 sps:$4 sm:$0xff]  }
 0x1fd   : > { %4310 = vmatprep.subr.bf16.mxu0 %v11125_v30  ;;  %4515 = vmatprep.subr.bf16.mxu1 %v11127_v31  ;;  %v11193_v25 = vld [vmem:[%s15499_s3 + $0x2d4] ss:$20 sps:$4 sm:$0xff]   ;;  %v11196_v26 = vld [vmem:[%s15499_s3 + $0x2dc] ss:$20 sps:$4 sm:$0xff]   ;;  %v11202_v30 = vld [vmem:[%s15499_s3 + $0x304] ss:$20 sps:$4 sm:$0xff]  }
 0x1fe   : > { %4328 = vmatprep.mubr.bf16.mxu0 %v13020_v1  ;;  %4533 = vmatprep.mubr.bf16.mxu1 %v13020_v1  ;;  %v11199_v29 = vld [vmem:[%s15499_s3 + $0x2fc] ss:$20 sps:$4 sm:$0xff]   ;;  %v11197_v31 = vld [vmem:[%s15499_s3 + $0x2f8] ss:$20 sps:$4 sm:$0xff]   ;;  %v11214_v39 = vld [vmem:[%s15499_s3 + $0x354] ss:$20 sps:$4 sm:$0xff]  }
 0x1ff   : > { %v11223_v51 = vld [vmem:[%s15499_s3 + $0x39c] ss:$20 sps:$4 sm:$0xff]   ;;  %v11221_v55 = vld [vmem:[%s15499_s3 + $0x398] ss:$20 sps:$4 sm:$0xff]   ;;  %v11241_v4 = vld [vmem:[%s15499_s3 + $0x414] ss:$20 sps:$4 sm:$0xff]  }
 0x200   : > { %4311 = vmatpush1.bf16.msra.mxu0 %v11129_v32  ;;  %4516 = vmatpush1.bf16.msra.mxu1 %v11130_v33  ;;  %v11200_v32 = vld [vmem:[%s15499_s3 + $0x300] ss:$20 sps:$4 sm:$0xff]   ;;  %v11205_v33 = vld [vmem:[%s15499_s3 + $0x324] ss:$20 sps:$4 sm:$0xff]  }
 0x201   : > { %4312 = vmatprep.subr.bf16.mxu0 %v11131_v34  ;;  %4517 = vmatprep.subr.bf16.mxu1 %v11133_v35  ;;  %v11208_v34 = vld [vmem:[%s15499_s3 + $0x32c] ss:$20 sps:$4 sm:$0xff]   ;;  %v11229_v58 = vld [vmem:[%s15499_s3 + $0x3c4] ss:$20 sps:$4 sm:$0xff]  }
 0x202   : > { %v11203_v35 = vld [vmem:[%s15499_s3 + $0x320] ss:$20 sps:$4 sm:$0xff]   ;;  %v11239_v6 = vld [vmem:[%s15499_s3 + $0x410] ss:$20 sps:$4 sm:$0xff]  }
 0x203   : > { %v11235_v63 = vld [vmem:[%s15499_s3 + $0x3ec] ss:$20 sps:$4 sm:$0xff]   ;;  %v11250_v9 = vld [vmem:[%s15499_s3 + $0x444] ss:$20 sps:$4 sm:$0xff]  }
 0x204   : > { %4313 = vmatpush1.bf16.msra.mxu0 %v11135_v36  ;;  %4518 = vmatpush1.bf16.msra.mxu1 %v11136_v37  ;;  %v13118_v36 = vsub.s32 3, %v12966_v44  ;;  %v11206_v37 = vld [vmem:[%s15499_s3 + $0x328] ss:$20 sps:$4 sm:$0xff]   ;;  %v11251_v14 = vld [vmem:[%s15499_s3 + $0x460] ss:$20 sps:$4 sm:$0xff]  }
 0x205   : > { %4314 = vmatprep.subr.bf16.mxu0 %v11137_v38  ;;  %4519 = vmatprep.subr.bf16.mxu1 %v11139_v40  ;;  %v11211_v38 = vld [vmem:[%s15499_s3 + $0x34c] ss:$20 sps:$4 sm:$0xff]   ;;  %v11209_v40 = vld [vmem:[%s15499_s3 + $0x348] ss:$20 sps:$4 sm:$0xff]  }
 0x208   : > { %4315 = vmatpush1.bf16.msra.mxu0 %v11141_v41  ;;  %4520 = vmatpush1.bf16.msra.mxu1 %v11142_v42  ;;  %v1908_v41 = vrot.slane %v12989_v52, %v13118_v36  ;;  %v11212_v42 = vld [vmem:[%s15499_s3 + $0x350] ss:$20 sps:$4 sm:$0xff]  }
 0x209   : > { %4316 = vmatprep.subr.bf16.mxu0 %v11143_v43  ;;  %4521 = vmatprep.subr.bf16.mxu1 %v11145_v45  ;;  %v11217_v43 = vld [vmem:[%s15499_s3 + $0x374] ss:$20 sps:$4 sm:$0xff]   ;;  %v11220_v45 = vld [vmem:[%s15499_s3 + $0x37c] ss:$20 sps:$4 sm:$0xff]  }
 0x20c   : > { %4317 = vmatpush1.bf16.msra.mxu0 %v11147_v46  ;;  %4522 = vmatpush1.bf16.msra.mxu1 %v11148_v47  ;;  %v1883_v46 = vld [vmem:[#allocation2 + $0x18] sm:$0xff]  ;;  %v11215_v47 = vld [vmem:[%s15499_s3 + $0x370] ss:$20 sps:$4 sm:$0xff]  }
 0x20d   : > { %4318 = vmatprep.subr.bf16.mxu0 %v11149_v48  ;;  %4523 = vmatprep.subr.bf16.mxu1 %v11151_v50  ;;  %v1941_v48 = vadd.f32 %v1908_v41, %v1883_v46  ;;  %v11218_v50 = vld [vmem:[%s15499_s3 + $0x378] ss:$20 sps:$4 sm:$0xff]   ;;  %v11278_v41 = vld [vmem:[%s15499_s3 + $0x508] ss:$20 sps:$4 sm:$0xff]  }
 0x20e   : > { %v11281_v46 = vld [vmem:[%s15499_s3 + $0x528] ss:$20 sps:$4 sm:$0xff]  }
 0x210   : > { %4319 = vmatpush1.bf16.msra.mxu0 %v11153_v53  ;;  %4524 = vmatpush1.bf16.msra.mxu1 %v11154_v54  ;;  %v11226_v53 = vld [vmem:[%s15499_s3 + $0x3a4] ss:$20 sps:$4 sm:$0xff]   ;;  %v1950_v54 = vmax.f32 %v1941_v48, 0.0  ;;  %v11289_v48 = vld [vmem:[%s15499_s3 + $0x554] ss:$20 sps:$4 sm:$0xff]  }
 0x211   : > { %4320 = vmatprep.subr.bf16.mxu0 %v11155_v56  ;;  %4525 = vmatprep.subr.bf16.mxu1 %v11157_v57  ;;  %v11224_v57 = vld [vmem:[%s15499_s3 + $0x3a0] ss:$20 sps:$4 sm:$0xff]  }
 0x212   : > { %v13158_v56 = vpack.c.bf16 %v1950_v54, %v1950_v54  ;;  %v11287_v54 = vld [vmem:[%s15499_s3 + $0x550] ss:$20 sps:$4 sm:$0xff]  }
 0x214   : > { %4321 = vmatpush1.bf16.msra.mxu0 %v11159_v59  ;;  %4526 = vmatpush1.bf16.msra.mxu1 %v11160_v61  ;;  %v11232_v59 = vld [vmem:[%s15499_s3 + $0x3cc] ss:$20 sps:$4 sm:$0xff]  }
 0x215   : > { %4322 = vmatprep.subr.bf16.mxu0 %v11161_v62  ;;  %4527 = vmatprep.subr.bf16.mxu1 %v11163_v0  ;;  %v11227_v61 = vld [vmem:[%s15499_s3 + $0x3c0] ss:$20 sps:$4 sm:$0xff]   ;;  %v11230_v62 = vld [vmem:[%s15499_s3 + $0x3c8] ss:$20 sps:$4 sm:$0xff]  }
 0x216   : > { %v11238_v0 = vld [vmem:[%s15499_s3 + $0x3f4] ss:$20 sps:$4 sm:$0xff]  }
 0x218   : > { %4323 = vmatpush1.bf16.msra.mxu0 %v11165_v2  ;;  %4528 = vmatpush1.bf16.msra.mxu1 %v11166_v3  ;;  %v11233_v2 = vld [vmem:[%s15499_s3 + $0x3e8] ss:$20 sps:$4 sm:$0xff]   ;;  %v11236_v3 = vld [vmem:[%s15499_s3 + $0x3f0] ss:$20 sps:$4 sm:$0xff]  }
 0x219   : > { %4324 = vmatprep.subr.bf16.mxu0 %v11167_v5  ;;  %4529 = vmatprep.subr.bf16.mxu1 %v11169_v7  ;;  %v11244_v5 = vld [vmem:[%s15499_s3 + $0x41c] ss:$20 sps:$4 sm:$0xff]   ;;  %v11242_v7 = vld [vmem:[%s15499_s3 + $0x418] ss:$20 sps:$4 sm:$0xff]  }
 0x21c   : > { %4325 = vmatpush1.bf16.msra.mxu0 %v11171_v8  ;;  %4530 = vmatpush1.bf16.msra.mxu1 %v11172_v10  ;;  %v11247_v8 = vld [vmem:[%s15499_s3 + $0x43c] ss:$20 sps:$4 sm:$0xff]   ;;  %v11245_v10 = vld [vmem:[%s15499_s3 + $0x438] ss:$20 sps:$4 sm:$0xff]  }
 0x21d   : > { %4326 = vmatprep.subr.bf16.mxu0 %v11173_v11  ;;  %4531 = vmatprep.subr.bf16.mxu1 %v11175_v12  ;;  %v11248_v11 = vld [vmem:[%s15499_s3 + $0x440] ss:$20 sps:$4 sm:$0xff]   ;;  %v11253_v12 = vld [vmem:[%s15499_s3 + $0x464] ss:$20 sps:$4 sm:$0xff]  }
 0x220   : > { %4327 = vmatpush1.bf16.msra.mxu0 %v11177_v13  ;;  %4532 = vmatpush1.bf16.msra.mxu1 %v11178_v15  ;;  %v11256_v13 = vld [vmem:[%s15499_s3 + $0x46c] ss:$20 sps:$4 sm:$0xff]   ;;  %v13223_v15 = vsub.s32 2, %v12966_v44 }
 0x221   : > { %4337 = vmatprep.subr.bf16.mxu0 %v11181_v16  ;;  %4542 = vmatprep.subr.bf16.mxu1 %v11184_v17  ;;  %v11254_v16 = vld [vmem:[%s15499_s3 + $0x468] ss:$20 sps:$4 sm:$0xff]   ;;  %v11259_v17 = vld [vmem:[%s15499_s3 + $0x48c] ss:$20 sps:$4 sm:$0xff]  }
 0x223   : > { %4329 = vmatmul.mubr.bf16.vlgmr.msra.gmra.mrb[0].mxu0 %v13065_v19  ;;  %4534 = vmatmul.mubr.bf16.vlgmr.msra.gmra.mrb[0].mxu1 %v13065_v19 }
 0x224   : > { %4338 = vmatpush1.bf16.msra.mxu0 %v11179_v18  ;;  %4543 = vmatpush1.bf16.msra.mxu1 %v11182_v20  ;;  %v11262_v18 = vld [vmem:[%s15499_s3 + $0x494] ss:$20 sps:$4 sm:$0xff]  }
 0x225   : > { %4339 = vmatprep.subr.bf16.mxu0 %v11187_v21  ;;  %4544 = vmatprep.subr.bf16.mxu1 %v11190_v22  ;;  %v11257_v20 = vld [vmem:[%s15499_s3 + $0x488] ss:$20 sps:$4 sm:$0xff]   ;;  %v11260_v21 = vld [vmem:[%s15499_s3 + $0x490] ss:$20 sps:$4 sm:$0xff]   ;;  %v1904_v22 = vrot.slane %v12989_v52, %v13223_v15 }
 0x226   : > { %4369 = vmatprep.mubr.bf16.mxu0 %v13158_v56  ;;  %4574 = vmatprep.mubr.bf16.mxu1 %v13158_v56 }
 0x228   : > { %4340 = vmatpush1.bf16.msra.mxu0 %v11185_v23  ;;  %4545 = vmatpush1.bf16.msra.mxu1 %v11188_v24  ;;  %v1882_v23 = vld [vmem:[#allocation2 + $0x10] sm:$0xff] }
 0x229   : > { %4341 = vmatprep.subr.bf16.mxu0 %v11193_v25  ;;  %4546 = vmatprep.subr.bf16.mxu1 %v11196_v26  ;;  %v11265_v24 = vld [vmem:[%s15499_s3 + $0x4b4] ss:$20 sps:$4 sm:$0xff]   ;;  %v11268_v25 = vld [vmem:[%s15499_s3 + $0x4bc] ss:$20 sps:$4 sm:$0xff]  }
 0x22a   : > { %v11263_v26 = vld [vmem:[%s15499_s3 + $0x4b0] ss:$20 sps:$4 sm:$0xff]  }
 0x22c   : > { %4342 = vmatpush1.bf16.msra.mxu0 %v11191_v27  ;;  %4547 = vmatpush1.bf16.msra.mxu1 %v11194_v28  ;;  %v1940_v27 = vadd.f32 %v1904_v22, %v1882_v23  ;;  %v11266_v28 = vld [vmem:[%s15499_s3 + $0x4b8] ss:$20 sps:$4 sm:$0xff]   ;;  %v11334_v22 = vld [vmem:[%s15499_s3 + $0x674] ss:$20 sps:$4 sm:$0xff]  }
 0x22d   : > { %4343 = vmatprep.subr.bf16.mxu0 %v11199_v29  ;;  %4548 = vmatprep.subr.bf16.mxu1 %v11202_v30  ;;  %v11271_v29 = vld [vmem:[%s15499_s3 + $0x4dc] ss:$20 sps:$4 sm:$0xff]   ;;  %v11274_v30 = vld [vmem:[%s15499_s3 + $0x4e4] ss:$20 sps:$4 sm:$0xff]  }
 0x22e   : > { %v11329_v23 = vld [vmem:[%s15499_s3 + $0x668] ss:$20 sps:$4 sm:$0xff]  }
 0x230   : > { %4344 = vmatpush1.bf16.msra.mxu0 %v11197_v31  ;;  %4549 = vmatpush1.bf16.msra.mxu1 %v11200_v32  ;;  %v1915_v31 = vsub.s32 5, %v12966_v44  ;;  %v11269_v32 = vld [vmem:[%s15499_s3 + $0x4d8] ss:$20 sps:$4 sm:$0xff]  }
 0x231   : > { %4345 = vmatprep.subr.bf16.mxu0 %v11205_v33  ;;  %4550 = vmatprep.subr.bf16.mxu1 %v11208_v34  ;;  %v1949_v33 = vmax.f32 %v1940_v27, 0.0  ;;  %v11272_v34 = vld [vmem:[%s15499_s3 + $0x4e0] ss:$20 sps:$4 sm:$0xff]   ;;  %v11335_v27 = vld [vmem:[%s15499_s3 + $0x690] ss:$20 sps:$4 sm:$0xff]  }
 0x234   : > { %4346 = vmatpush1.bf16.msra.mxu0 %v11203_v35  ;;  %4551 = vmatpush1.bf16.msra.mxu1 %v11206_v37  ;;  %v11277_v35 = vld [vmem:[%s15499_s3 + $0x504] ss:$20 sps:$4 sm:$0xff]   ;;  %v11280_v37 = vld [vmem:[%s15499_s3 + $0x50c] ss:$20 sps:$4 sm:$0xff]  }
 0x235   : > { %4347 = vmatprep.subr.bf16.mxu0 %v11211_v38  ;;  %4552 = vmatprep.subr.bf16.mxu1 %v11214_v39  ;;  %v1916_v38 = vrot.slane %v12989_v52, %v1915_v31  ;;  %v11275_v39 = vld [vmem:[%s15499_s3 + $0x500] ss:$20 sps:$4 sm:$0xff]  }
 0x236   : > { %v11286_v52 = vld [vmem:[%s15499_s3 + $0x534] ss:$20 sps:$4 sm:$0xff]  }
 0x238   : > { %4348 = vmatpush1.bf16.msra.mxu0 %v11209_v40  ;;  %4553 = vmatpush1.bf16.msra.mxu1 %v11212_v42  ;;  %v13279_v40 = vpack.c.bf16 %v1949_v33, %v1949_v33  ;;  %v11283_v42 = vld [vmem:[%s15499_s3 + $0x52c] ss:$20 sps:$4 sm:$0xff]  }
 0x239   : > { %4349 = vmatprep.subr.bf16.mxu0 %v11217_v43  ;;  %4554 = vmatprep.subr.bf16.mxu1 %v11220_v45  ;;  %v1885_v43 = vld [vmem:[#allocation2 + $0x28] sm:$0xff]  ;;  %v11344_v33 = vld [vmem:[%s15499_s3 + $0x6c0] ss:$20 sps:$4 sm:$0xff]  }
 0x23a   : > { %v1943_v45 = vadd.f32 %v1916_v38, %v1885_v43  ;;  %v13432_v38 = vsub.s32 4, %v12966_v44  ;;  %v1923_v43 = vsub.s32 7, %v12966_v44 }
 0x23c   : > { %4350 = vmatpush1.bf16.msra.mxu0 %v11215_v47  ;;  %4555 = vmatpush1.bf16.msra.mxu1 %v11218_v50  ;;  %v11284_v47 = vld [vmem:[%s15499_s3 + $0x530] ss:$20 sps:$4 sm:$0xff]   ;;  %v1952_v50 = vmax.f32 %v1943_v45, 0.0 }
 0x23d   : > { %4351 = vmatprep.subr.bf16.mxu0 %v11223_v51  ;;  %4556 = vmatprep.subr.bf16.mxu1 %v11226_v53  ;;  %v11292_v51 = vld [vmem:[%s15499_s3 + $0x55c] ss:$20 sps:$4 sm:$0xff]  }
 0x23e   : > { %v13304_v53 = vpack.c.bf16 %v1952_v50, %v1952_v50  ;;  %v11356_v45 = vld [vmem:[%s15499_s3 + $0x710] ss:$20 sps:$4 sm:$0xff]   ;;  %v11361_v50 = vld [vmem:[%s15499_s3 + $0x734] ss:$20 sps:$4 sm:$0xff]  }
 0x240   : > { %4352 = vmatpush1.bf16.msra.mxu0 %v11221_v55  ;;  %4557 = vmatpush1.bf16.msra.mxu1 %v11224_v57  ;;  %v11290_v55 = vld [vmem:[%s15499_s3 + $0x558] ss:$20 sps:$4 sm:$0xff]   ;;  %v11295_v57 = vld [vmem:[%s15499_s3 + $0x57c] ss:$20 sps:$4 sm:$0xff]  }
 0x241   : > { %4353 = vmatprep.subr.bf16.mxu0 %v11229_v58  ;;  %4558 = vmatprep.subr.bf16.mxu1 %v11232_v59  ;;  %v11298_v58 = vld [vmem:[%s15499_s3 + $0x584] ss:$20 sps:$4 sm:$0xff]  }
 0x242   : > { %v11293_v59 = vld [vmem:[%s15499_s3 + $0x578] ss:$20 sps:$4 sm:$0xff]  }
 0x244   : > { %4354 = vmatpush1.bf16.msra.mxu0 %v11227_v61  ;;  %4559 = vmatpush1.bf16.msra.mxu1 %v11230_v62  ;;  %v11296_v61 = vld [vmem:[%s15499_s3 + $0x580] ss:$20 sps:$4 sm:$0xff]   ;;  %v11301_v62 = vld [vmem:[%s15499_s3 + $0x5a4] ss:$20 sps:$4 sm:$0xff]  }
 0x245   : > { %4355 = vmatprep.subr.bf16.mxu0 %v11235_v63  ;;  %4560 = vmatprep.subr.bf16.mxu1 %v11238_v0  ;;  %v11304_v63 = vld [vmem:[%s15499_s3 + $0x5ac] ss:$20 sps:$4 sm:$0xff]  }
 0x246   : > { %v11299_v0 = vld [vmem:[%s15499_s3 + $0x5a0] ss:$20 sps:$4 sm:$0xff]  }
 0x248   : > { %4356 = vmatpush1.bf16.msra.mxu0 %v11233_v2  ;;  %4561 = vmatpush1.bf16.msra.mxu1 %v11236_v3  ;;  %v11302_v2 = vld [vmem:[%s15499_s3 + $0x5a8] ss:$20 sps:$4 sm:$0xff]   ;;  %v11307_v3 = vld [vmem:[%s15499_s3 + $0x5cc] ss:$20 sps:$4 sm:$0xff]  }
 0x249   : > { %4357 = vmatprep.subr.bf16.mxu0 %v11241_v4  ;;  %4562 = vmatprep.subr.bf16.mxu1 %v11244_v5  ;;  %v11310_v4 = vld [vmem:[%s15499_s3 + $0x5d4] ss:$20 sps:$4 sm:$0xff]  }
 0x24a   : > { %v11305_v5 = vld [vmem:[%s15499_s3 + $0x5c8] ss:$20 sps:$4 sm:$0xff]  }
 0x24c   : > { %4358 = vmatpush1.bf16.msra.mxu0 %v11239_v6  ;;  %4563 = vmatpush1.bf16.msra.mxu1 %v11242_v7  ;;  %v11308_v6 = vld [vmem:[%s15499_s3 + $0x5d0] ss:$20 sps:$4 sm:$0xff]   ;;  %v11313_v7 = vld [vmem:[%s15499_s3 + $0x5f4] ss:$20 sps:$4 sm:$0xff]  }
 0x24d   : > { %4359 = vmatprep.subr.bf16.mxu0 %v11247_v8  ;;  %4564 = vmatprep.subr.bf16.mxu1 %v11250_v9  ;;  %v11316_v8 = vld [vmem:[%s15499_s3 + $0x5fc] ss:$20 sps:$4 sm:$0xff]  }
 0x24e   : > { %v11311_v9 = vld [vmem:[%s15499_s3 + $0x5f0] ss:$20 sps:$4 sm:$0xff]  }
 0x250   : > { %4360 = vmatpush1.bf16.msra.mxu0 %v11245_v10  ;;  %4565 = vmatpush1.bf16.msra.mxu1 %v11248_v11  ;;  %v11314_v10 = vld [vmem:[%s15499_s3 + $0x5f8] ss:$20 sps:$4 sm:$0xff]   ;;  %v11319_v11 = vld [vmem:[%s15499_s3 + $0x61c] ss:$20 sps:$4 sm:$0xff]  }
 0x251   : > { %4361 = vmatprep.subr.bf16.mxu0 %v11253_v12  ;;  %4566 = vmatprep.subr.bf16.mxu1 %v11256_v13  ;;  %v11322_v12 = vld [vmem:[%s15499_s3 + $0x624] ss:$20 sps:$4 sm:$0xff]  }
 0x252   : > { %v11317_v13 = vld [vmem:[%s15499_s3 + $0x618] ss:$20 sps:$4 sm:$0xff]  }
 0x254   : > { %4362 = vmatpush1.bf16.msra.mxu0 %v11251_v14  ;;  %4567 = vmatpush1.bf16.msra.mxu1 %v11254_v16  ;;  %v11320_v14 = vld [vmem:[%s15499_s3 + $0x620] ss:$20 sps:$4 sm:$0xff]   ;;  %v11325_v16 = vld [vmem:[%s15499_s3 + $0x644] ss:$20 sps:$4 sm:$0xff]  }
 0x255   : > { %4363 = vmatprep.subr.bf16.mxu0 %v11259_v17  ;;  %4568 = vmatprep.subr.bf16.mxu1 %v11262_v18  ;;  %v11328_v17 = vld [vmem:[%s15499_s3 + $0x64c] ss:$20 sps:$4 sm:$0xff]  }
 0x256   : > { %v11323_v18 = vld [vmem:[%s15499_s3 + $0x640] ss:$20 sps:$4 sm:$0xff]  }
 0x258   : > { %4364 = vmatpush1.bf16.msra.mxu0 %v11257_v20  ;;  %4569 = vmatpush1.bf16.msra.mxu1 %v11260_v21  ;;  %v11326_v20 = vld [vmem:[%s15499_s3 + $0x648] ss:$20 sps:$4 sm:$0xff]   ;;  %v11331_v21 = vld [vmem:[%s15499_s3 + $0x66c] ss:$20 sps:$4 sm:$0xff]  }
 0x259   : > { %4365 = vmatprep.subr.bf16.mxu0 %v11265_v24  ;;  %4570 = vmatprep.subr.bf16.mxu1 %v11268_v25  ;;  %v11332_v24 = vld [vmem:[%s15499_s3 + $0x670] ss:$20 sps:$4 sm:$0xff]   ;;  %v11337_v25 = vld [vmem:[%s15499_s3 + $0x694] ss:$20 sps:$4 sm:$0xff]  }
 0x25c   : > { %4366 = vmatpush1.bf16.msra.mxu0 %v11263_v26  ;;  %4571 = vmatpush1.bf16.msra.mxu1 %v11266_v28  ;;  %v11340_v26 = vld [vmem:[%s15499_s3 + $0x69c] ss:$20 sps:$4 sm:$0xff]   ;;  %v11338_v28 = vld [vmem:[%s15499_s3 + $0x698] ss:$20 sps:$4 sm:$0xff]  }
 0x25d   : > { %4367 = vmatprep.subr.bf16.mxu0 %v11271_v29  ;;  %4572 = vmatprep.subr.bf16.mxu1 %v11274_v30  ;;  %v11343_v29 = vld [vmem:[%s15499_s3 + $0x6bc] ss:$20 sps:$4 sm:$0xff]   ;;  %v11346_v30 = vld [vmem:[%s15499_s3 + $0x6c4] ss:$20 sps:$4 sm:$0xff]  }
 0x260   : > { %4368 = vmatpush1.bf16.msra.mxu0 %v11269_v32  ;;  %4573 = vmatpush1.bf16.msra.mxu1 %v11272_v34  ;;  %v11341_v32 = vld [vmem:[%s15499_s3 + $0x6b8] ss:$20 sps:$4 sm:$0xff]  }
 0x261   : > { %4378 = vmatprep.subr.bf16.mxu0 %v11277_v35  ;;  %4583 = vmatprep.subr.bf16.mxu1 %v11280_v37  ;;  %v11349_v34 = vld [vmem:[%s15499_s3 + $0x6e4] ss:$20 sps:$4 sm:$0xff]   ;;  %v11352_v35 = vld [vmem:[%s15499_s3 + $0x6ec] ss:$20 sps:$4 sm:$0xff]  }
 0x262   : > { %v11347_v37 = vld [vmem:[%s15499_s3 + $0x6e0] ss:$20 sps:$4 sm:$0xff]  }
 0x263   : > { %4370 = vmatmul.mubr.bf16.vlgmr.msra.gmra.mrb[0].mxu0 %v13279_v40  ;;  %4575 = vmatmul.mubr.bf16.vlgmr.msra.gmra.mrb[0].mxu1 %v13279_v40 }
 0x264   : > { %4379 = vmatpush1.bf16.msra.mxu0 %v11275_v39  ;;  %4584 = vmatpush1.bf16.msra.mxu1 %v11278_v41  ;;  %v11350_v39 = vld [vmem:[%s15499_s3 + $0x6e8] ss:$20 sps:$4 sm:$0xff]   ;;  %v11355_v41 = vld [vmem:[%s15499_s3 + $0x70c] ss:$20 sps:$4 sm:$0xff]  }
 0x265   : > { %4380 = vmatprep.subr.bf16.mxu0 %v11283_v42  ;;  %4585 = vmatprep.subr.bf16.mxu1 %v11286_v52  ;;  %v11358_v42 = vld [vmem:[%s15499_s3 + $0x714] ss:$20 sps:$4 sm:$0xff]  }
 0x266   : > { %4410 = vmatprep.mubr.bf16.mxu0 %v13304_v53  ;;  %4615 = vmatprep.mubr.bf16.mxu1 %v13304_v53  ;;  %v11353_v52 = vld [vmem:[%s15499_s3 + $0x708] ss:$20 sps:$4 sm:$0xff]  }
 0x268   : > { %4381 = vmatpush1.bf16.msra.mxu0 %v11281_v46  ;;  %4586 = vmatpush1.bf16.msra.mxu1 %v11284_v47  ;;  %v13453_v46 = vld [vmem:[%s15498_s2] sm:$0xff] }
 0x269   : > { %4382 = vmatprep.subr.bf16.mxu0 %v11289_v48  ;;  %4587 = vmatprep.subr.bf16.mxu1 %v11292_v51  ;;  %v1912_v47 = vrot.slane %v13453_v46, %v13432_v38  ;;  %v1884_v48 = vld [vmem:[#allocation2 + $0x20] sm:$0xff]  ;;  %v11364_v51 = vld [vmem:[%s15499_s3 + $0x73c] ss:$20 sps:$4 sm:$0xff]  }
 0x26c   : > { %4383 = vmatpush1.bf16.msra.mxu0 %v11287_v54  ;;  %4588 = vmatpush1.bf16.msra.mxu1 %v11290_v55  ;;  %v11359_v54 = vld [vmem:[%s15499_s3 + $0x730] ss:$20 sps:$4 sm:$0xff]   ;;  %v1924_v55 = vrot.slane %v13453_v46, %v1923_v43 }
 0x26d   : > { %4384 = vmatprep.subr.bf16.mxu0 %v11295_v57  ;;  %4589 = vmatprep.subr.bf16.mxu1 %v11298_v58  ;;  %v1942_v57 = vadd.f32 %v1912_v47, %v1884_v48  ;;  %v1887_v58 = vld [vmem:[#allocation2 + $0x38] sm:$0xff]  ;;  %v11416_v47 = vld [vmem:[%s15499_s3 + $0x8a0] ss:$20 sps:$4 sm:$0xff]  }
 0x26e   : > { %v11421_v48 = vld [vmem:[%s15499_s3 + $0x8c4] ss:$20 sps:$4 sm:$0xff]  }
 0x270   : > { %4385 = vmatpush1.bf16.msra.mxu0 %v11293_v59  ;;  %4590 = vmatpush1.bf16.msra.mxu1 %v11296_v61  ;;  %v11362_v59 = vld [vmem:[%s15499_s3 + $0x738] ss:$20 sps:$4 sm:$0xff]   ;;  %v11367_v61 = vld [vmem:[%s15499_s3 + $0x75c] ss:$20 sps:$4 sm:$0xff]  }
 0x271   : > { %4386 = vmatprep.subr.bf16.mxu0 %v11301_v62  ;;  %4591 = vmatprep.subr.bf16.mxu1 %v11304_v63  ;;  %v11370_v62 = vld [vmem:[%s15499_s3 + $0x764] ss:$20 sps:$4 sm:$0xff]   ;;  %v1945_v63 = vadd.f32 %v1924_v55, %v1887_v58  ;;  %v11427_v55 = vld [vmem:[%s15499_s3 + $0x8ec] ss:$20 sps:$4 sm:$0xff]   ;;  %v11425_v58 = vld [vmem:[%s15499_s3 + $0x8e8] ss:$20 sps:$4 sm:$0xff]  }
 0x274   : > { %4387 = vmatpush1.bf16.msra.mxu0 %v11299_v0  ;;  %4592 = vmatpush1.bf16.msra.mxu1 %v11302_v2  ;;  %v11365_v0 = vld [vmem:[%s15499_s3 + $0x758] ss:$20 sps:$4 sm:$0xff]   ;;  %v1951_v2 = vmax.f32 %v1942_v57, 0.0  ;;  %v11430_v57 = vld [vmem:[%s15499_s3 + $0x8f4] ss:$20 sps:$4 sm:$0xff]  }
 0x275   : > { %4388 = vmatprep.subr.bf16.mxu0 %v11307_v3  ;;  %4593 = vmatprep.subr.bf16.mxu1 %v11310_v4  ;;  %v11368_v3 = vld [vmem:[%s15499_s3 + $0x760] ss:$20 sps:$4 sm:$0xff]   ;;  %v11373_v4 = vld [vmem:[%s15499_s3 + $0x784] ss:$20 sps:$4 sm:$0xff]  }
 0x278   : > { %4389 = vmatpush1.bf16.msra.mxu0 %v11305_v5  ;;  %4594 = vmatpush1.bf16.msra.mxu1 %v11308_v6  ;;  %v11376_v5 = vld [vmem:[%s15499_s3 + $0x78c] ss:$20 sps:$4 sm:$0xff]   ;;  %v1954_v6 = vmax.f32 %v1945_v63, 0.0  ;;  %v11431_v63 = vld [vmem:[%s15499_s3 + $0x910] ss:$20 sps:$4 sm:$0xff]  }
 0x279   : > { %4390 = vmatprep.subr.bf16.mxu0 %v11313_v7  ;;  %4595 = vmatprep.subr.bf16.mxu1 %v11316_v8  ;;  %v11371_v7 = vld [vmem:[%s15499_s3 + $0x780] ss:$20 sps:$4 sm:$0xff]   ;;  %v13493_v8 = vpack.c.bf16 %v1951_v2, %v1951_v2  ;;  %v11439_v2 = vld [vmem:[%s15499_s3 + $0x93c] ss:$20 sps:$4 sm:$0xff]  }
 0x27c   : > { %4391 = vmatpush1.bf16.msra.mxu0 %v11311_v9  ;;  %4596 = vmatpush1.bf16.msra.mxu1 %v11314_v10  ;;  %v11374_v9 = vld [vmem:[%s15499_s3 + $0x788] ss:$20 sps:$4 sm:$0xff]   ;;  %v11379_v10 = vld [vmem:[%s15499_s3 + $0x7ac] ss:$20 sps:$4 sm:$0xff]  }
 0x27d   : > { %4392 = vmatprep.subr.bf16.mxu0 %v11319_v11  ;;  %4597 = vmatprep.subr.bf16.mxu1 %v11322_v12  ;;  %v11382_v11 = vld [vmem:[%s15499_s3 + $0x7b4] ss:$20 sps:$4 sm:$0xff]   ;;  %v13504_v12 = vpack.c.bf16 %v1954_v6, %v1954_v6  ;;  %v11445_v6 = vld [vmem:[%s15499_s3 + $0x964] ss:$20 sps:$4 sm:$0xff]  }
 0x280   : > { %4393 = vmatpush1.bf16.msra.mxu0 %v11317_v13  ;;  %4598 = vmatpush1.bf16.msra.mxu1 %v11320_v14  ;;  %v11377_v13 = vld [vmem:[%s15499_s3 + $0x7a8] ss:$20 sps:$4 sm:$0xff]   ;;  %v11380_v14 = vld [vmem:[%s15499_s3 + $0x7b0] ss:$20 sps:$4 sm:$0xff]  }
 0x281   : > { %4394 = vmatprep.subr.bf16.mxu0 %v11325_v16  ;;  %4599 = vmatprep.subr.bf16.mxu1 %v11328_v17  ;;  %v11385_v16 = vld [vmem:[%s15499_s3 + $0x7d4] ss:$20 sps:$4 sm:$0xff]   ;;  %v11388_v17 = vld [vmem:[%s15499_s3 + $0x7dc] ss:$20 sps:$4 sm:$0xff]  }
 0x284   : > { %4395 = vmatpush1.bf16.msra.mxu0 %v11323_v18  ;;  %4600 = vmatpush1.bf16.msra.mxu1 %v11326_v20  ;;  %v11383_v18 = vld [vmem:[%s15499_s3 + $0x7d0] ss:$20 sps:$4 sm:$0xff]   ;;  %v1919_v20 = vsub.s32 6, %v12966_v44 }
 0x285   : > { %4396 = vmatprep.subr.bf16.mxu0 %v11331_v21  ;;  %4601 = vmatprep.subr.bf16.mxu1 %v11334_v22  ;;  %v11386_v21 = vld [vmem:[%s15499_s3 + $0x7d8] ss:$20 sps:$4 sm:$0xff]   ;;  %v11391_v22 = vld [vmem:[%s15499_s3 + $0x7fc] ss:$20 sps:$4 sm:$0xff]  }
 0x288   : > { %4397 = vmatpush1.bf16.msra.mxu0 %v11329_v23  ;;  %4602 = vmatpush1.bf16.msra.mxu1 %v11332_v24  ;;  %v11394_v23 = vld [vmem:[%s15499_s3 + $0x804] ss:$20 sps:$4 sm:$0xff]  }
 0x289   : > { %4398 = vmatprep.subr.bf16.mxu0 %v11337_v25  ;;  %4603 = vmatprep.subr.bf16.mxu1 %v11340_v26  ;;  %v11389_v24 = vld [vmem:[%s15499_s3 + $0x7f8] ss:$20 sps:$4 sm:$0xff]   ;;  %v11392_v25 = vld [vmem:[%s15499_s3 + $0x800] ss:$20 sps:$4 sm:$0xff]  }
 0x28a   : > { %v11397_v26 = vld [vmem:[%s15499_s3 + $0x824] ss:$20 sps:$4 sm:$0xff]  }
 0x28c   : > { %4399 = vmatpush1.bf16.msra.mxu0 %v11335_v27  ;;  %4604 = vmatpush1.bf16.msra.mxu1 %v11338_v28  ;;  %v11400_v27 = vld [vmem:[%s15499_s3 + $0x82c] ss:$20 sps:$4 sm:$0xff]  }
 0x28d   : > { %4400 = vmatprep.subr.bf16.mxu0 %v11343_v29  ;;  %4605 = vmatprep.subr.bf16.mxu1 %v11346_v30  ;;  %v11395_v28 = vld [vmem:[%s15499_s3 + $0x820] ss:$20 sps:$4 sm:$0xff]   ;;  %v11398_v29 = vld [vmem:[%s15499_s3 + $0x828] ss:$20 sps:$4 sm:$0xff]  }
 0x28e   : > { %v11403_v30 = vld [vmem:[%s15499_s3 + $0x84c] ss:$20 sps:$4 sm:$0xff]  }
 0x290   : > { %4401 = vmatpush1.bf16.msra.mxu0 %v11341_v32  ;;  %4606 = vmatpush1.bf16.msra.mxu1 %v11344_v33  ;;  %v11406_v32 = vld [vmem:[%s15499_s3 + $0x854] ss:$20 sps:$4 sm:$0xff]  }
 0x291   : > { %4402 = vmatprep.subr.bf16.mxu0 %v11349_v34  ;;  %4607 = vmatprep.subr.bf16.mxu1 %v11352_v35  ;;  %v11401_v33 = vld [vmem:[%s15499_s3 + $0x848] ss:$20 sps:$4 sm:$0xff]   ;;  %v11404_v34 = vld [vmem:[%s15499_s3 + $0x850] ss:$20 sps:$4 sm:$0xff]  }
 0x292   : > { %v11409_v35 = vld [vmem:[%s15499_s3 + $0x874] ss:$20 sps:$4 sm:$0xff]  }
 0x294   : > { %4403 = vmatpush1.bf16.msra.mxu0 %v11347_v37  ;;  %4608 = vmatpush1.bf16.msra.mxu1 %v11350_v39  ;;  %v11412_v37 = vld [vmem:[%s15499_s3 + $0x87c] ss:$20 sps:$4 sm:$0xff]  }
 0x295   : > { %4404 = vmatprep.subr.bf16.mxu0 %v11355_v41  ;;  %4609 = vmatprep.subr.bf16.mxu1 %v11358_v42  ;;  %v11407_v39 = vld [vmem:[%s15499_s3 + $0x870] ss:$20 sps:$4 sm:$0xff]   ;;  %v11410_v41 = vld [vmem:[%s15499_s3 + $0x878] ss:$20 sps:$4 sm:$0xff]  }
 0x296   : > { %v11415_v42 = vld [vmem:[%s15499_s3 + $0x89c] ss:$20 sps:$4 sm:$0xff]  }
 0x298   : > { %4405 = vmatpush1.bf16.msra.mxu0 %v11353_v52  ;;  %4610 = vmatpush1.bf16.msra.mxu1 %v11356_v45  ;;  %v11418_v52 = vld [vmem:[%s15499_s3 + $0x8a4] ss:$20 sps:$4 sm:$0xff]  }
 0x299   : > { %4406 = vmatprep.subr.bf16.mxu0 %v11361_v50  ;;  %4611 = vmatprep.subr.bf16.mxu1 %v11364_v51  ;;  %v11413_v45 = vld [vmem:[%s15499_s3 + $0x898] ss:$20 sps:$4 sm:$0xff]   ;;  %v11419_v51 = vld [vmem:[%s15499_s3 + $0x8c0] ss:$20 sps:$4 sm:$0xff]  }
 0x29a   : > { %v11424_v50 = vld [vmem:[%s15499_s3 + $0x8cc] ss:$20 sps:$4 sm:$0xff]  }
 0x29c   : > { %4407 = vmatpush1.bf16.msra.mxu0 %v11359_v54  ;;  %4612 = vmatpush1.bf16.msra.mxu1 %v11362_v59  ;;  %v11422_v54 = vld [vmem:[%s15499_s3 + $0x8c8] ss:$20 sps:$4 sm:$0xff]   ;;  %v11428_v59 = vld [vmem:[%s15499_s3 + $0x8f0] ss:$20 sps:$4 sm:$0xff]  }
 0x29d   : > { %4408 = vmatprep.subr.bf16.mxu0 %v11367_v61  ;;  %4613 = vmatprep.subr.bf16.mxu1 %v11370_v62  ;;  %v11433_v61 = vld [vmem:[%s15499_s3 + $0x914] ss:$20 sps:$4 sm:$0xff]   ;;  %v11436_v62 = vld [vmem:[%s15499_s3 + $0x91c] ss:$20 sps:$4 sm:$0xff]  }
 0x2a0   : > { %4409 = vmatpush1.bf16.msra.mxu0 %v11365_v0  ;;  %4614 = vmatpush1.bf16.msra.mxu1 %v11368_v3  ;;  %v11434_v0 = vld [vmem:[%s15499_s3 + $0x918] ss:$20 sps:$4 sm:$0xff]  }
 0x2a1   : > { %4419 = vmatprep.subr.bf16.mxu0 %v11373_v4  ;;  %4624 = vmatprep.subr.bf16.mxu1 %v11376_v5  ;;  %v11442_v3 = vld [vmem:[%s15499_s3 + $0x944] ss:$20 sps:$4 sm:$0xff]   ;;  %v11440_v5 = vld [vmem:[%s15499_s3 + $0x940] ss:$20 sps:$4 sm:$0xff]  }
 0x2a2   : > { %v11437_v4 = vld [vmem:[%s15499_s3 + $0x938] ss:$20 sps:$4 sm:$0xff]  }
 0x2a3   : > { %4411 = vmatmul.mubr.bf16.vlgmr.msra.gmra.mrb[0].mxu0 %v13493_v8  ;;  %4616 = vmatmul.mubr.bf16.vlgmr.msra.gmra.mrb[0].mxu1 %v13493_v8 }
 0x2a4   : > { %4420 = vmatpush1.bf16.msra.mxu0 %v11371_v7  ;;  %4625 = vmatpush1.bf16.msra.mxu1 %v11374_v9  ;;  %v11448_v7 = vld [vmem:[%s15499_s3 + $0x96c] ss:$20 sps:$4 sm:$0xff]  }
 0x2a5   : > { %4421 = vmatprep.subr.bf16.mxu0 %v11379_v10  ;;  %4626 = vmatprep.subr.bf16.mxu1 %v11382_v11  ;;  %v11443_v9 = vld [vmem:[%s15499_s3 + $0x960] ss:$20 sps:$4 sm:$0xff]   ;;  %v11446_v10 = vld [vmem:[%s15499_s3 + $0x968] ss:$20 sps:$4 sm:$0xff]  }
 0x2a6   : > { %4451 = vmatprep.mubr.bf16.mxu0 %v13504_v12  ;;  %4656 = vmatprep.mubr.bf16.mxu1 %v13504_v12  ;;  %v11451_v11 = vld [vmem:[%s15499_s3 + $0x98c] ss:$20 sps:$4 sm:$0xff]  }
 0x2a8   : > { %4422 = vmatpush1.bf16.msra.mxu0 %v11377_v13  ;;  %4627 = vmatpush1.bf16.msra.mxu1 %v11380_v14  ;;  %v11454_v13 = vld [vmem:[%s15499_s3 + $0x994] ss:$20 sps:$4 sm:$0xff]  }
 0x2a9   : > { %4423 = vmatprep.subr.bf16.mxu0 %v11385_v16  ;;  %4628 = vmatprep.subr.bf16.mxu1 %v11388_v17  ;;  %v11449_v14 = vld [vmem:[%s15499_s3 + $0x988] ss:$20 sps:$4 sm:$0xff]   ;;  %v11452_v16 = vld [vmem:[%s15499_s3 + $0x990] ss:$20 sps:$4 sm:$0xff]  }
 0x2aa   : > { %v11457_v17 = vld [vmem:[%s15499_s3 + $0x9b4] ss:$20 sps:$4 sm:$0xff]  }
 0x2ac   : > { %4424 = vmatpush1.bf16.msra.mxu0 %v11383_v18  ;;  %4629 = vmatpush1.bf16.msra.mxu1 %v11386_v21  ;;  %v1920_v18 = vrot.slane %v13453_v46, %v1919_v20  ;;  %v1886_v21 = vld [vmem:[#allocation2 + $0x30] sm:$0xff] }
 0x2ad   : > { %4425 = vmatprep.subr.bf16.mxu0 %v11391_v22  ;;  %4630 = vmatprep.subr.bf16.mxu1 %v11394_v23  ;;  %v11460_v22 = vld [vmem:[%s15499_s3 + $0x9bc] ss:$20 sps:$4 sm:$0xff]  }
 0x2ae   : > { %v11455_v23 = vld [vmem:[%s15499_s3 + $0x9b0] ss:$20 sps:$4 sm:$0xff]  }
 0x2af   : > { %v11463_v46 = vld [vmem:[%s15499_s3 + $0x9dc] ss:$20 sps:$4 sm:$0xff]  }
 0x2b0   : > { %4426 = vmatpush1.bf16.msra.mxu0 %v11389_v24  ;;  %4631 = vmatpush1.bf16.msra.mxu1 %v11392_v25  ;;  %v11458_v24 = vld [vmem:[%s15499_s3 + $0x9b8] ss:$20 sps:$4 sm:$0xff]   ;;  %v1944_v25 = vadd.f32 %v1920_v18, %v1886_v21  ;;  %v11515_v21 = vld [vmem:[%s15499_s3 + $0x150] ss:$20 sps:$4 sm:$0xff]  }
 0x2b1   : > { %4427 = vmatprep.subr.bf16.mxu0 %v11397_v26  ;;  %4632 = vmatprep.subr.bf16.mxu1 %v11400_v27  ;;  %v11466_v26 = vld [vmem:[%s15499_s3 + $0x9e4] ss:$20 sps:$4 sm:$0xff]  }
 0x2b2   : > { %v11461_v27 = vld [vmem:[%s15499_s3 + $0x9d8] ss:$20 sps:$4 sm:$0xff]  }
 0x2b4   : > { %4428 = vmatpush1.bf16.msra.mxu0 %v11395_v28  ;;  %4633 = vmatpush1.bf16.msra.mxu1 %v11398_v29  ;;  %v11464_v28 = vld [vmem:[%s15499_s3 + $0x9e0] ss:$20 sps:$4 sm:$0xff]   ;;  %v1953_v29 = vmax.f32 %v1944_v25, 0.0  ;;  %v11518_v25 = vld [vmem:[%s15499_s3 + $0x290] ss:$20 sps:$4 sm:$0xff]  }
 0x2b5   : > { %4429 = vmatprep.subr.bf16.mxu0 %v11403_v30  ;;  %4634 = vmatprep.subr.bf16.mxu1 %v11406_v32  ;;  %v11469_v30 = vld [vmem:[%s15499_s3 + $0xa04] ss:$20 sps:$4 sm:$0xff]   ;;  %v11472_v32 = vld [vmem:[%s15499_s3 + $0xa0c] ss:$20 sps:$4 sm:$0xff]  }
 0x2b8   : > { %4430 = vmatpush1.bf16.msra.mxu0 %v11401_v33  ;;  %4635 = vmatpush1.bf16.msra.mxu1 %v11404_v34  ;;  %v11467_v33 = vld [vmem:[%s15499_s3 + $0xa00] ss:$20 sps:$4 sm:$0xff]   ;;  %v11470_v34 = vld [vmem:[%s15499_s3 + $0xa08] ss:$20 sps:$4 sm:$0xff]  }
 0x2b9   : > { %4431 = vmatprep.subr.bf16.mxu0 %v11409_v35  ;;  %4636 = vmatprep.subr.bf16.mxu1 %v11412_v37  ;;  %v13700_v35 = vpack.c.bf16 %v1953_v29, %v1953_v29  ;;  %v11475_v37 = vld [vmem:[%s15499_s3 + $0xa2c] ss:$20 sps:$4 sm:$0xff]  }
 0x2ba   : > { %v11523_v29 = vld [vmem:[%s15499_s3 + $0x1a0] ss:$20 sps:$4 sm:$0xff]  }
 0x2bc   : > { %4432 = vmatpush1.bf16.msra.mxu0 %v11407_v39  ;;  %4637 = vmatpush1.bf16.msra.mxu1 %v11410_v41  ;;  %v11478_v39 = vld [vmem:[%s15499_s3 + $0xa34] ss:$20 sps:$4 sm:$0xff]  }
 0x2bd   : > { %4433 = vmatprep.subr.bf16.mxu0 %v11415_v42  ;;  %4638 = vmatprep.subr.bf16.mxu1 %v11418_v52  ;;  %v11473_v41 = vld [vmem:[%s15499_s3 + $0xa28] ss:$20 sps:$4 sm:$0xff]   ;;  %v11476_v42 = vld [vmem:[%s15499_s3 + $0xa30] ss:$20 sps:$4 sm:$0xff]  }
 0x2be   : > { %v11481_v52 = vld [vmem:[%s15499_s3 + $0xa54] ss:$20 sps:$4 sm:$0xff]  }
 0x2c0   : > { %4434 = vmatpush1.bf16.msra.mxu0 %v11413_v45  ;;  %4639 = vmatpush1.bf16.msra.mxu1 %v11416_v47  ;;  %v11484_v45 = vld [vmem:[%s15499_s3 + $0xa5c] ss:$20 sps:$4 sm:$0xff]  }
 0x2c1   : > { %4435 = vmatprep.subr.bf16.mxu0 %v11421_v48  ;;  %4640 = vmatprep.subr.bf16.mxu1 %v11424_v50  ;;  %v11479_v47 = vld [vmem:[%s15499_s3 + $0xa50] ss:$20 sps:$4 sm:$0xff]   ;;  %v12298_v48 = vmov 0   ;;  %v11482_v50 = vld [vmem:[%s15499_s3 + $0xa58] ss:$20 sps:$4 sm:$0xff]  }
 0x2c4   : > { %4436 = vmatpush1.bf16.msra.mxu0 %v11419_v51  ;;  %4641 = vmatpush1.bf16.msra.mxu1 %v11422_v54  ;;  %v11487_v51 = vld [vmem:[%s15499_s3 + $0xa7c] ss:$20 sps:$4 sm:$0xff]   ;;  %v11490_v54 = vld [vmem:[%s15499_s3 + $0xa84] ss:$20 sps:$4 sm:$0xff]  }
 0x2c5   : > { %4437 = vmatprep.subr.bf16.mxu0 %v11427_v55  ;;  %4642 = vmatprep.subr.bf16.mxu1 %v11430_v57  ;;  %v11485_v55 = vld [vmem:[%s15499_s3 + $0xa78] ss:$20 sps:$4 sm:$0xff]   ;;  %v11488_v57 = vld [vmem:[%s15499_s3 + $0xa80] ss:$20 sps:$4 sm:$0xff]  }
 0x2c8   : > { %4438 = vmatpush1.bf16.msra.mxu0 %v11425_v58  ;;  %4643 = vmatpush1.bf16.msra.mxu1 %v11428_v59  ;;  %v11493_v58 = vld [vmem:[%s15499_s3 + $0xaa4] ss:$20 sps:$4 sm:$0xff]   ;;  %v11496_v59 = vld [vmem:[%s15499_s3 + $0xaac] ss:$20 sps:$4 sm:$0xff]  }
 0x2c9   : > { %4439 = vmatprep.subr.bf16.mxu0 %v11433_v61  ;;  %4644 = vmatprep.subr.bf16.mxu1 %v11436_v62  ;;  %v11491_v61 = vld [vmem:[%s15499_s3 + $0xaa0] ss:$20 sps:$4 sm:$0xff]   ;;  %v11494_v62 = vld [vmem:[%s15499_s3 + $0xaa8] ss:$20 sps:$4 sm:$0xff]  }
 0x2cc   : > { %4440 = vmatpush1.bf16.msra.mxu0 %v11431_v63  ;;  %4645 = vmatpush1.bf16.msra.mxu1 %v11434_v0  ;;  %v11499_v63 = vld [vmem:[%s15499_s3 + $0xacc] ss:$20 sps:$4 sm:$0xff]   ;;  %v11502_v0 = vld [vmem:[%s15499_s3 + $0xad4] ss:$20 sps:$4 sm:$0xff]  }
 0x2cd   : > { %4441 = vmatprep.subr.bf16.mxu0 %v11439_v2  ;;  %4646 = vmatprep.subr.bf16.mxu1 %v11442_v3  ;;  %v11497_v2 = vld [vmem:[%s15499_s3 + $0xac8] ss:$20 sps:$4 sm:$0xff]   ;;  %v11500_v3 = vld [vmem:[%s15499_s3 + $0xad0] ss:$20 sps:$4 sm:$0xff]  }
 0x2d0   : > { %4442 = vmatpush1.bf16.msra.mxu0 %v11437_v4  ;;  %4647 = vmatpush1.bf16.msra.mxu1 %v11440_v5  ;;  %v11505_v4 = vld [vmem:[%s15499_s3 + $0xaf4] ss:$20 sps:$4 sm:$0xff]   ;;  %v1888_v5 = vld [vmem:[#allocation2 + $0x40] sm:$0xff] }
 0x2d1   : > { %4443 = vmatprep.subr.bf16.mxu0 %v11445_v6  ;;  %4648 = vmatprep.subr.bf16.mxu1 %v11448_v7  ;;  %v9566_v6 = vld [vmem:[%s15498_s2 + $0x8] ss:$0 sm:$0xff]  ;;  %v11508_v7 = vld [vmem:[%s15499_s3 + $0xafc] ss:$20 sps:$4 sm:$0xff]  }
 0x2d4   : > { %4444 = vmatpush1.bf16.msra.mxu0 %v11443_v9  ;;  %4649 = vmatpush1.bf16.msra.mxu1 %v11446_v10  ;;  %v11503_v9 = vld [vmem:[%s15499_s3 + $0xaf0] ss:$20 sps:$4 sm:$0xff]   ;;  %v11506_v10 = vld [vmem:[%s15499_s3 + $0xaf8] ss:$20 sps:$4 sm:$0xff]  }
 0x2d5   : > { %4445 = vmatprep.subr.bf16.mxu0 %v11451_v11  ;;  %4650 = vmatprep.subr.bf16.mxu1 %v11454_v13  ;;  %v1946_v11 = vadd.f32 %v9566_v6, %v1888_v5  ;;  %v11511_v13 = vld [vmem:[%s15499_s3 + $0xb1c] ss:$20 sps:$4 sm:$0xff]   ;;  %v11551_v5 = vld [vmem:[%s15499_s3 + $0x678] ss:$20 sps:$4 sm:$0xff]  }
 0x2d6   : > { %v11553_v6 = vld [vmem:[%s15499_s3 + $0x8f8] ss:$20 sps:$4 sm:$0xff]  }
 0x2d7   : > { %v1955_v18 = vmax.f32 %v1946_v11, 0.0  ;;  %v11557_v11 = vld [vmem:[%s15499_s3 + $0x920] ss:$20 sps:$4 sm:$0xff]  }
 0x2d8   : > { %4446 = vmatpush1.bf16.msra.mxu0 %v11449_v14  ;;  %4651 = vmatpush1.bf16.msra.mxu1 %v11452_v16  ;;  %v11514_v14 = vld [vmem:[%s15499_s3 + $0xb24] ss:$20 sps:$4 sm:$0xff]  }
 0x2d9   : > { %4447 = vmatprep.subr.bf16.mxu0 %v11457_v17  ;;  %4652 = vmatprep.subr.bf16.mxu1 %v11460_v22  ;;  %v11509_v16 = vld [vmem:[%s15499_s3 + $0xb18] ss:$20 sps:$4 sm:$0xff]   ;;  %v11512_v17 = vld [vmem:[%s15499_s3 + $0xb20] ss:$20 sps:$4 sm:$0xff]   ;;  %v11517_v22 = vld [vmem:[%s15499_s3 + $0x3d0] ss:$20 sps:$4 sm:$0xff]  }
 0x2dc   : > { %4448 = vmatpush1.bf16.msra.mxu0 %v11455_v23  ;;  %4653 = vmatpush1.bf16.msra.mxu1 %v11458_v24  ;;  %v11516_v23 = vld [vmem:[%s15499_s3 + $0x10] ss:$20 sps:$4 sm:$0xff]   ;;  %v13802_v24 = vpack.c.bf16 %v1955_v18, %v1955_v18 }
 0x2dd   : > { %4449 = vmatprep.subr.bf16.mxu0 %v11463_v46  ;;  %4654 = vmatprep.subr.bf16.mxu1 %v11466_v26  ;;  %v11519_v46 = vld [vmem:[%s15499_s3 + $0x178] ss:$20 sps:$4 sm:$0xff]   ;;  %v11564_v18 = vld [vmem:[%s15499_s3 + $0x5b0] ss:$20 sps:$4 sm:$0xff]  }
 0x2de   : > { %v11521_v26 = vld [vmem:[%s15499_s3 + $0x3f8] ss:$20 sps:$4 sm:$0xff]  }
 0x2e0   : > { %4450 = vmatpush1.bf16.msra.mxu0 %v11461_v27  ;;  %4655 = vmatpush1.bf16.msra.mxu1 %v11464_v28  ;;  %v11520_v27 = vld [vmem:[%s15499_s3 + $0x38] ss:$20 sps:$4 sm:$0xff]  }
 0x2e1   : > { %4460 = vmatprep.subr.bf16.mxu0 %v11469_v30  ;;  %4665 = vmatprep.subr.bf16.mxu1 %v11472_v32  ;;  %v11522_v28 = vld [vmem:[%s15499_s3 + $0x2b8] ss:$20 sps:$4 sm:$0xff]   ;;  %v11525_v30 = vld [vmem:[%s15499_s3 + $0x420] ss:$20 sps:$4 sm:$0xff]  }
 0x2e2   : > { %v11524_v32 = vld [vmem:[%s15499_s3 + $0x60] ss:$20 sps:$4 sm:$0xff]  }
 0x2e3   : > { %4452 = vmatmul.mubr.bf16.vlgmr.msra.gmra.mrb[0].mxu0 %v13700_v35  ;;  %4657 = vmatmul.mubr.bf16.vlgmr.msra.gmra.mrb[0].mxu1 %v13700_v35 }
 0x2e4   : > { %4461 = vmatpush1.bf16.msra.mxu0 %v11467_v33  ;;  %4666 = vmatpush1.bf16.msra.mxu1 %v11470_v34  ;;  %v11526_v33 = vld [vmem:[%s15499_s3 + $0x2e0] ss:$20 sps:$4 sm:$0xff]   ;;  %v11527_v34 = vld [vmem:[%s15499_s3 + $0x1c8] ss:$20 sps:$4 sm:$0xff]  }
 0x2e5   : > { %4462 = vmatprep.subr.bf16.mxu0 %v11475_v37  ;;  %4667 = vmatprep.subr.bf16.mxu1 %v11478_v39  ;;  %v11529_v37 = vld [vmem:[%s15499_s3 + $0x448] ss:$20 sps:$4 sm:$0xff]  }
 0x2e6   : > { %4492 = vmatprep.mubr.bf16.mxu0 %v12298_v48  ;;  %4697 = vmatprep.mubr.bf16.mxu1 %v12298_v48  ;;  %v11528_v39 = vld [vmem:[%s15499_s3 + $0x88] ss:$20 sps:$4 sm:$0xff]  }
 0x2e8   : > { %4463 = vmatpush1.bf16.msra.mxu0 %v11473_v41  ;;  %4668 = vmatpush1.bf16.msra.mxu1 %v11476_v42  ;;  %v11533_v41 = vld [vmem:[%s15499_s3 + $0x470] ss:$20 sps:$4 sm:$0xff]  }
 0x2e9   : > { %4464 = vmatprep.subr.bf16.mxu0 %v11481_v52  ;;  %4669 = vmatprep.subr.bf16.mxu1 %v11484_v45  ;;  %v11532_v42 = vld [vmem:[%s15499_s3 + $0xb0] ss:$20 sps:$4 sm:$0xff]   ;;  %v11535_v45 = vld [vmem:[%s15499_s3 + $0x218] ss:$20 sps:$4 sm:$0xff]  }
 0x2ea   : > { %v11534_v52 = vld [vmem:[%s15499_s3 + $0x330] ss:$20 sps:$4 sm:$0xff]  }
 0x2ec   : > { %4465 = vmatpush1.bf16.msra.mxu0 %v11479_v47  ;;  %4670 = vmatpush1.bf16.msra.mxu1 %v11482_v50  ;;  %v11537_v47 = vld [vmem:[%s15499_s3 + $0x498] ss:$20 sps:$4 sm:$0xff]  }
 0x2ed   : > { %4466 = vmatprep.subr.bf16.mxu0 %v11487_v51  ;;  %4671 = vmatprep.subr.bf16.mxu1 %v11490_v54  ;;  %v11536_v50 = vld [vmem:[%s15499_s3 + $0xd8] ss:$20 sps:$4 sm:$0xff]   ;;  %v11539_v54 = vld [vmem:[%s15499_s3 + $0x240] ss:$20 sps:$4 sm:$0xff]  }
 0x2ee   : > { %v11538_v51 = vld [vmem:[%s15499_s3 + $0x358] ss:$20 sps:$4 sm:$0xff]  }
 0x2f0   : > { %4467 = vmatpush1.bf16.msra.mxu0 %v11485_v55  ;;  %4672 = vmatpush1.bf16.msra.mxu1 %v11488_v57  ;;  %v11541_v55 = vld [vmem:[%s15499_s3 + $0x4c0] ss:$20 sps:$4 sm:$0xff]  }
 0x2f1   : > { %4468 = vmatprep.subr.bf16.mxu0 %v11493_v58  ;;  %4673 = vmatprep.subr.bf16.mxu1 %v11496_v59  ;;  %v11540_v57 = vld [vmem:[%s15499_s3 + $0x100] ss:$20 sps:$4 sm:$0xff]   ;;  %v11543_v59 = vld [vmem:[%s15499_s3 + $0x268] ss:$20 sps:$4 sm:$0xff]  }
 0x2f2   : > { %v11542_v58 = vld [vmem:[%s15499_s3 + $0x380] ss:$20 sps:$4 sm:$0xff]  }
 0x2f4   : > { %4469 = vmatpush1.bf16.msra.mxu0 %v11491_v61  ;;  %4674 = vmatpush1.bf16.msra.mxu1 %v11494_v62  ;;  %v11545_v61 = vld [vmem:[%s15499_s3 + $0x4e8] ss:$20 sps:$4 sm:$0xff]  }
 0x2f5   : > { %4470 = vmatprep.subr.bf16.mxu0 %v11499_v63  ;;  %4675 = vmatprep.subr.bf16.mxu1 %v11502_v0  ;;  %v11544_v62 = vld [vmem:[%s15499_s3 + $0x128] ss:$20 sps:$4 sm:$0xff]   ;;  %v11547_v0 = vld [vmem:[%s15499_s3 + $0x650] ss:$20 sps:$4 sm:$0xff]  }
 0x2f6   : > { %v11546_v63 = vld [vmem:[%s15499_s3 + $0x3a8] ss:$20 sps:$4 sm:$0xff]  }
 0x2f8   : > { %4471 = vmatpush1.bf16.msra.mxu0 %v11497_v2  ;;  %4676 = vmatpush1.bf16.msra.mxu1 %v11500_v3  ;;  %v11549_v2 = vld [vmem:[%s15499_s3 + $0x8d0] ss:$20 sps:$4 sm:$0xff]  }
 0x2f9   : > { %4472 = vmatprep.subr.bf16.mxu0 %v11505_v4  ;;  %4677 = vmatprep.subr.bf16.mxu1 %v11508_v7  ;;  %v11548_v3 = vld [vmem:[%s15499_s3 + $0x510] ss:$20 sps:$4 sm:$0xff]   ;;  %v11552_v7 = vld [vmem:[%s15499_s3 + $0x538] ss:$20 sps:$4 sm:$0xff]  }
 0x2fa   : > { %v11550_v4 = vld [vmem:[%s15499_s3 + $0x790] ss:$20 sps:$4 sm:$0xff]  }
 0x2fc   : > { %4473 = vmatpush1.bf16.msra.mxu0 %v11503_v9  ;;  %4678 = vmatpush1.bf16.msra.mxu1 %v11506_v10  ;;  %v11554_v9 = vld [vmem:[%s15499_s3 + $0x7b8] ss:$20 sps:$4 sm:$0xff]   ;;  %v11555_v10 = vld [vmem:[%s15499_s3 + $0x6a0] ss:$20 sps:$4 sm:$0xff]  }
 0x2fd   : > { %4474 = vmatprep.subr.bf16.mxu0 %v11511_v13  ;;  %4679 = vmatprep.subr.bf16.mxu1 %v11514_v14  ;;  %v11556_v13 = vld [vmem:[%s15499_s3 + $0x560] ss:$20 sps:$4 sm:$0xff]   ;;  %v11561_v14 = vld [vmem:[%s15499_s3 + $0x948] ss:$20 sps:$4 sm:$0xff]  }
 0x300   : > { %4475 = vmatpush1.bf16.msra.mxu0 %v11509_v16  ;;  %4680 = vmatpush1.bf16.msra.mxu1 %v11512_v17  ;;  %v11560_v16 = vld [vmem:[%s15499_s3 + $0x588] ss:$20 sps:$4 sm:$0xff]   ;;  %v11565_v17 = vld [vmem:[%s15499_s3 + $0x970] ss:$20 sps:$4 sm:$0xff]  }
 0x301   : > { %10442 = vmatprep.subr.bf16.mxu0 %v11515_v21  ;;  %10464 = vmatprep.subr.bf16.mxu1 %v11517_v22  ;;  %v11566_v21 = vld [vmem:[%s15499_s3 + $0x830] ss:$20 sps:$4 sm:$0xff]   ;;  %v11567_v22 = vld [vmem:[%s15499_s3 + $0x718] ss:$20 sps:$4 sm:$0xff]  }
 0x303   : > { %4493 = vmatmul.mubr.bf16.vlgmr.msra.gmra.mrb[0].mxu0 %v13802_v24  ;;  %4698 = vmatmul.mubr.bf16.vlgmr.msra.gmra.mrb[0].mxu1 %v13802_v24 }
 0x304   : > { %10443 = vmatpush3.bf16.msra.mxu0 %v11516_v23  ;;  %10465 = vmatpush3.bf16.msra.mxu1 %v11518_v25  ;;  %v11569_v23 = vld [vmem:[%s15499_s3 + $0x998] ss:$20 sps:$4 sm:$0xff]  }
 0x305   : > { %10444 = vmatprep.subr.bf16.mxu0 %v11519_v46  ;;  %10466 = vmatprep.subr.bf16.mxu1 %v11521_v26  ;;  %v11568_v25 = vld [vmem:[%s15499_s3 + $0x5d8] ss:$20 sps:$4 sm:$0xff]   ;;  %v11571_v26 = vld [vmem:[%s15499_s3 + $0x740] ss:$20 sps:$4 sm:$0xff]  }
 0x306   : > { %4738 = vmatprep.mubr.bf16.mxu0 %v13020_v1  ;;  %4778 = vmatprep.mubr.bf16.mxu1 %v13158_v56  ;;  %v11530_v1 = vld [vmem:[%s15499_s3 + $0x308] ss:$20 sps:$4 sm:$0xff]   ;;  %v11531_v56 = vld [vmem:[%s15499_s3 + $0x1f0] ss:$20 sps:$4 sm:$0xff]   ;;  %v11570_v46 = vld [vmem:[%s15499_s3 + $0x858] ss:$20 sps:$4 sm:$0xff]  }
 0x308   : > { %10445 = vmatpush3.bf16.msra.mxu0 %v11520_v27  ;;  %10467 = vmatpush3.bf16.msra.mxu1 %v11522_v28  ;;  %v11573_v27 = vld [vmem:[%s15499_s3 + $0x9c0] ss:$20 sps:$4 sm:$0xff]  }
 0x309   : > { %10446 = vmatprep.subr.bf16.mxu0 %v11523_v29  ;;  %10468 = vmatprep.subr.bf16.mxu1 %v11525_v30  ;;  %v11572_v28 = vld [vmem:[%s15499_s3 + $0x600] ss:$20 sps:$4 sm:$0xff]   ;;  %v11575_v30 = vld [vmem:[%s15499_s3 + $0x768] ss:$20 sps:$4 sm:$0xff]  }
 0x30a   : > { %v11574_v29 = vld [vmem:[%s15499_s3 + $0x880] ss:$20 sps:$4 sm:$0xff]  }
 0x30c   : > { %10447 = vmatpush3.bf16.msra.mxu0 %v11524_v32  ;;  %10469 = vmatpush3.bf16.msra.mxu1 %v11526_v33  ;;  %v11577_v32 = vld [vmem:[%s15499_s3 + $0x9e8] ss:$20 sps:$4 sm:$0xff]  }
 0x30d   : > { %10448 = vmatprep.subr.bf16.mxu0 %v11527_v34  ;;  %10470 = vmatprep.subr.bf16.mxu1 %v11529_v37  ;;  %v11576_v33 = vld [vmem:[%s15499_s3 + $0x628] ss:$20 sps:$4 sm:$0xff]   ;;  %v11587_v37 = vld [vmem:[%s15501_s5 + $0x40] sm:$0xff]  }
 0x30e   : > { %v11578_v34 = vld [vmem:[%s15499_s3 + $0x8a8] ss:$20 sps:$4 sm:$0xff]  }
 0x310   : > { %10449 = vmatpush3.bf16.msra.mxu0 %v11528_v39  ;;  %10471 = vmatpush3.bf16.msra.mxu1 %v11530_v1  ;;  %v11579_v39 = vld [vmem:[%s15499_s3 + $0xa10] ss:$20 sps:$4 sm:$0xff]  }
 0x311   : > { %10450 = vmatprep.subr.bf16.mxu0 %v11531_v56  ;;  %10472 = vmatprep.subr.bf16.mxu1 %v11533_v41  ;;  %v11589_v1 = vld [vmem:[%s15501_s5] sm:$0xff]   ;;  %v11591_v56 = vld [vmem:[%s15501_s5 + $0x48] sm:$0xff]   ;;  %v12299_v41 = vmov 0.0  }
 0x314   : > { %10451 = vmatpush3.bf16.msra.mxu0 %v11532_v42  ;;  %10473 = vmatpush3.bf16.msra.mxu1 %v11534_v52  ;;  %v11580_v42 = vld [vmem:[%s15499_s3 + $0xa38] ss:$20 sps:$4 sm:$0xff]  }
 0x315   : > { %10452 = vmatprep.subr.bf16.mxu0 %v11535_v45  ;;  %10474 = vmatprep.subr.bf16.mxu1 %v11537_v47  ;;  %v11593_v52 = vld [vmem:[%s15501_s5 + $0x8] sm:$0xff]   ;;  %v11595_v45 = vld [vmem:[%s15501_s5 + $0x50] sm:$0xff]   ;;  %v11599_v47 = vld [vmem:[%s15501_s5 + $0x58] sm:$0xff]  }
 0x318   : > { %10453 = vmatpush3.bf16.msra.mxu0 %v11536_v50  ;;  %10475 = vmatpush3.bf16.msra.mxu1 %v11538_v51  ;;  %v11582_v50 = vld [vmem:[%s15499_s3 + $0xa88] ss:$20 sps:$4 sm:$0xff]  }
 0x319   : > { %10454 = vmatprep.subr.bf16.mxu0 %v11539_v54  ;;  %10476 = vmatprep.subr.bf16.mxu1 %v11541_v55  ;;  %v11601_v51 = vld [vmem:[%s15501_s5 + $0x18] sm:$0xff]   ;;  %v11603_v54 = vld [vmem:[%s15501_s5 + $0x60] sm:$0xff]  }
 0x31a   : > { %v11583_v55 = vld [vmem:[%s15499_s3 + $0xab0] ss:$20 sps:$4 sm:$0xff]  }
 0x31c   : > { %10455 = vmatpush3.bf16.msra.mxu0 %v11540_v57  ;;  %10477 = vmatpush3.bf16.msra.mxu1 %v11542_v58  ;;  %v11605_v57 = vld [vmem:[%s15501_s5 + $0x20] sm:$0xff]   ;;  %v11607_v58 = vld [vmem:[%s15501_s5 + $0x68] sm:$0xff]  }
 0x31d   : > { %10456 = vmatprep.subr.bf16.mxu0 %v11543_v59  ;;  %10478 = vmatprep.subr.bf16.mxu1 %v11545_v61  ;;  %v11584_v59 = vld [vmem:[%s15499_s3 + $0xad8] ss:$20 sps:$4 sm:$0xff]  }
 0x31e   : > { %v11609_v61 = vld [vmem:[%s15501_s5 + $0x28] sm:$0xff]  }
 0x320   : > { %10457 = vmatpush3.bf16.msra.mxu0 %v11544_v62  ;;  %10479 = vmatpush3.bf16.msra.mxu1 %v11546_v63  ;;  %v11585_v62 = vld [vmem:[%s15499_s3 + $0xb00] ss:$20 sps:$4 sm:$0xff]  }
 0x321   : > { %10486 = vmatprep.subr.bf16.mxu0 %v11547_v0  ;;  %10508 = vmatprep.subr.bf16.mxu1 %v11549_v2  ;;  %v11611_v63 = vld [vmem:[%s15501_s5 + $0x70] sm:$0xff]   ;;  %v11586_v2 = vld [vmem:[%s15499_s3 + $0xb28] ss:$20 sps:$4 sm:$0xff]  }
 0x322   : > { %v11613_v0 = vld [vmem:[%s15501_s5 + $0x30] sm:$0xff]  }
 0x323   : > { %4739 = vmatmul.mubr.bf16.vlgmr.msra.gmra.mrb[4].mxu0 %v13065_v19  ;;  %4779 = vmatmul.mubr.bf16.vlgmr.msra.gmra.mrb[4].mxu1 %v13279_v40  ;;  %v11558_v19 = vld [vmem:[%s15499_s3 + $0x7e0] ss:$20 sps:$4 sm:$0xff]   ;;  %v11559_v40 = vld [vmem:[%s15499_s3 + $0x6c8] ss:$20 sps:$4 sm:$0xff]  }
 0x324   : > { %10487 = vmatpush3.bf16.msra.mxu0 %v11548_v3  ;;  %10509 = vmatpush3.bf16.msra.mxu1 %v11550_v4  ;;  %v11615_v3 = vld [vmem:[%s15501_s5 + $0x78] sm:$0xff]   ;;  %v11588_v4 = vld [vmem:[%s15501_s5 + $0xc0] sm:$0xff]  }
 0x325   : > { %10488 = vmatprep.subr.bf16.mxu0 %v11551_v5  ;;  %10510 = vmatprep.subr.bf16.mxu1 %v11553_v6  ;;  %v11617_v5 = vld [vmem:[%s15501_s5 + $0x38] sm:$0xff]   ;;  %v11590_v6 = vld [vmem:[%s15501_s5 + $0x80] sm:$0xff]  }
 0x326   : > { %4818 = vmatprep.mubr.bf16.mxu0 %v13304_v53  ;;  %4858 = vmatprep.mubr.bf16.mxu1 %v13504_v12  ;;  %v11562_v53 = vld [vmem:[%s15499_s3 + $0x808] ss:$20 sps:$4 sm:$0xff]   ;;  %v11563_v12 = vld [vmem:[%s15499_s3 + $0x6f0] ss:$20 sps:$4 sm:$0xff]  }
 0x328   : > { %10489 = vmatpush3.bf16.msra.mxu0 %v11552_v7  ;;  %10511 = vmatpush3.bf16.msra.mxu1 %v11554_v9  ;;  %v11592_v7 = vld [vmem:[%s15501_s5 + $0xc8] sm:$0xff]  }
 0x329   : > { %10490 = vmatprep.subr.bf16.mxu0 %v11555_v10  ;;  %10512 = vmatprep.subr.bf16.mxu1 %v11557_v11  ;;  %v11594_v9 = vld [vmem:[%s15501_s5 + $0x88] sm:$0xff]   ;;  %v11596_v10 = vld [vmem:[%s15501_s5 + $0xd0] sm:$0xff]  }
 0x32a   : > { %v11598_v11 = vld [vmem:[%s15501_s5 + $0x90] sm:$0xff]  }
 0x32c   : > { %10491 = vmatpush3.bf16.msra.mxu0 %v11556_v13  ;;  %10513 = vmatpush3.bf16.msra.mxu1 %v11558_v19  ;;  %v11600_v13 = vld [vmem:[%s15501_s5 + $0xd8] sm:$0xff]   ;;  %v11604_v19 = vld [vmem:[%s15501_s5 + $0xe0] sm:$0xff]  }
 0x32d   : > { %10492 = vmatprep.subr.bf16.mxu0 %v11559_v40  ;;  %10514 = vmatprep.subr.bf16.mxu1 %v11561_v14  ;;  %v11606_v40 = vld [vmem:[%s15501_s5 + $0xa0] sm:$0xff]   ;;  %v11608_v14 = vld [vmem:[%s15501_s5 + $0xe8] sm:$0xff]  }
 0x330   : > { %10493 = vmatpush3.bf16.msra.mxu0 %v11560_v16  ;;  %10515 = vmatpush3.bf16.msra.mxu1 %v11562_v53  ;;  %v11610_v16 = vld [vmem:[%s15501_s5 + $0xa8] sm:$0xff]   ;;  %v11612_v53 = vld [vmem:[%s15501_s5 + $0xf0] sm:$0xff]  }
 0x331   : > { %10494 = vmatprep.subr.bf16.mxu0 %v11563_v12  ;;  %10516 = vmatprep.subr.bf16.mxu1 %v11565_v17  ;;  %v11614_v12 = vld [vmem:[%s15501_s5 + $0xb0] sm:$0xff]   ;;  %v11616_v17 = vld [vmem:[%s15501_s5 + $0xf8] sm:$0xff]  }
 0x334   : > { %10495 = vmatpush3.bf16.msra.mxu0 %v11564_v18  ;;  %10517 = vmatpush3.bf16.msra.mxu1 %v11566_v21  ;;  %v11618_v18 = vld [vmem:[%s15501_s5 + $0xb8] sm:$0xff]   ;;  %v14132_v21 = vld [vmem:[%s15500_s4] sm:$0x1f] }
 0x335   : > { %10496 = vmatprep.subr.bf16.mxu0 %v11567_v22  ;;  %10518 = vmatprep.subr.bf16.mxu1 %v11569_v23  ;;  %v2402_v22 = vrot.slane %v14132_v21, %v13009_v60  ;;  %v2410_v23 = vrot.slane %v14132_v21, %v13223_v15 }
 0x338   : > { %10497 = vmatpush3.bf16.msra.mxu0 %v11568_v25  ;;  %10519 = vmatpush3.bf16.msra.mxu1 %v11570_v46  ;;  %v2406_v25 = vrot.slane %v14132_v21, %v12981_v49  ;;  %v2414_v46 = vrot.slane %v14132_v21, %v13118_v36 }
 0x339   : > { %10498 = vmatprep.subr.bf16.mxu0 %v11571_v26  ;;  %10520 = vmatprep.subr.bf16.mxu1 %v11573_v27 }
 0x33c   : > { %10499 = vmatpush3.bf16.msra.mxu0 %v11572_v28  ;;  %10521 = vmatpush3.bf16.msra.mxu1 %v11574_v29 }
 0x33d   : > { %10500 = vmatprep.subr.bf16.mxu0 %v11575_v30  ;;  %10522 = vmatprep.subr.bf16.mxu1 %v11577_v32 }
 0x340   : > { %10501 = vmatpush3.bf16.msra.mxu0 %v11576_v33  ;;  %10523 = vmatpush3.bf16.msra.mxu1 %v11578_v34 }
 0x341   : > { %10764 = vmatprep.subr.bf16.mxu0 %v12299_v41  ;;  %10539 = vmatprep.subr.bf16.mxu1 %v11587_v37 }
 0x343   : > { %4819 = vmatmul.mubr.bf16.vlgmr.msra.gmra.mrb[8].mxu0 %v13493_v8  ;;  %4859 = vmatmul.mubr.bf16.vlgmr.msra.gmra.mrb[8].mxu1 %v13700_v35  ;;  %v11581_v8 = vld [vmem:[%s15499_s3 + $0xa60] ss:$20 sps:$4 sm:$0xff]  }
 0x344   : > { %10765 = vmatpush3.bf16.msra.mxu0 %v11579_v39  ;;  %10780 = vmatprep.mubr.msk.bf16.mxu0 %vm12300_vm1, %v12299_v41  ;;  %v11597_v35 = vld [vmem:[%s15501_s5 + $0x10] sm:$0xff]  }
 0x345   : > { %10766 = vmatprep.subr.bf16.mxu0 %v12299_v41  ;;  %10540 = vmatpush3.bf16.msra.mxu1 %v11589_v1 }
 0x346   : > { %10541 = vmatprep.subr.bf16.mxu1 %v11591_v56 }
 0x348   : > { %10767 = vmatpush3.bf16.msra.mxu0 %v11580_v42 }
 0x349   : > { %10768 = vmatprep.subr.bf16.mxu0 %v12299_v41  ;;  %10542 = vmatpush3.bf16.msra.mxu1 %v11593_v52 }
 0x34a   : > { %10543 = vmatprep.subr.bf16.mxu1 %v11595_v45 }
 0x34c   : > { %10769 = vmatpush3.bf16.msra.mxu0 %v11581_v8 }
 0x34d   : > { %10770 = vmatprep.subr.bf16.mxu0 %v12299_v41  ;;  %10544 = vmatpush3.bf16.msra.mxu1 %v11597_v35 }
 0x34e   : > { %10545 = vmatprep.subr.bf16.mxu1 %v11599_v47 }
 0x350   : > { %10771 = vmatpush3.bf16.msra.mxu0 %v11582_v50  ;;  %v11619_v50 = vld [vmem:[%s15501_s5 + $0x100] sm:$0xff]  }
 0x351   : > { %10772 = vmatprep.subr.bf16.mxu0 %v12299_v41  ;;  %10546 = vmatpush3.bf16.msra.mxu1 %v11601_v51 }
 0x352   : > { %10547 = vmatprep.subr.bf16.mxu1 %v11603_v54 }
 0x354   : > { %10773 = vmatpush3.bf16.msra.mxu0 %v11583_v55  ;;  %v11620_v55 = vld [vmem:[%s15501_s5 + $0x108] sm:$0xff]  }
 0x355   : > { %10774 = vmatprep.subr.bf16.mxu0 %v12299_v41  ;;  %10548 = vmatpush3.bf16.msra.mxu1 %v11605_v57  ;;  %v11621_v57 = vld [vmem:[%s15501_s5 + $0x110] sm:$0xff]  }
 0x356   : > { %10549 = vmatprep.subr.bf16.mxu1 %v11607_v58  ;;  %v11622_v58 = vld [vmem:[%s15501_s5 + $0x118] sm:$0xff]  }
 0x358   : > { %10775 = vmatpush3.bf16.msra.mxu0 %v11584_v59  ;;  %v11623_v59 = vld [vmem:[%s15501_s5 + $0x120] sm:$0xff]  }
 0x359   : > { %10776 = vmatprep.subr.bf16.mxu0 %v12299_v41  ;;  %10550 = vmatpush3.bf16.msra.mxu1 %v11609_v61  ;;  %v11624_v61 = vld [vmem:[%s15501_s5 + $0x128] sm:$0xff]  }
 0x35a   : > { %10551 = vmatprep.subr.bf16.mxu1 %v11611_v63 }
 0x35c   : > { %10777 = vmatpush3.bf16.msra.mxu0 %v11585_v62  ;;  %v11625_v62 = vld [vmem:[%s15501_s5 + $0x130] sm:$0xff]  }
 0x35d   : > { %10778 = vmatprep.subr.bf16.mxu0 %v12299_v41  ;;  %10552 = vmatpush3.bf16.msra.mxu1 %v11613_v0  ;;  %v2418_v0 = vrot.slane %v14132_v21, %v13432_v38 }
 0x35e   : > { %10553 = vmatprep.subr.bf16.mxu1 %v11615_v3 }
 0x360   : > { %10779 = vmatpush3.bf16.msra.mxu0 %v11586_v2 }
 0x361   : > { %10561 = vmatprep.subr.bf16.mxu0 %v11588_v4  ;;  %10554 = vmatpush3.bf16.msra.mxu1 %v11617_v5 }
 0x362   : > { %10784 = vmatprep.subr.bf16.mxu1 %v12299_v41 }
 0x363   : > { %10781 = vmatmul.mubr.bf16.vlgmr.msra.gmra.mrb[12].mxu0 %v13802_v24  ;;  %v11602_v24 = vld [vmem:[%s15501_s5 + $0x98] sm:$0xff]  }
 0x364   : > { %10562 = vmatpush3.bf16.msra.mxu0 %v11590_v6 }
 0x365   : > { %10563 = vmatprep.subr.bf16.mxu0 %v11592_v7 }
 0x368   : > { %10564 = vmatpush3.bf16.msra.mxu0 %v11594_v9 }
 0x369   : > { %10565 = vmatprep.subr.bf16.mxu0 %v11596_v10  ;;  %v11626_v10 = vld [vmem:[%s15501_s5 + $0x138] sm:$0xff]  }
 0x36c   : > { %10566 = vmatpush3.bf16.msra.mxu0 %v11598_v11 }
 0x36d   : > { %10567 = vmatprep.subr.bf16.mxu0 %v11600_v13 }
 0x370   : > { %10568 = vmatpush3.bf16.msra.mxu0 %v11602_v24 }
 0x371   : > { %10569 = vmatprep.subr.bf16.mxu0 %v11604_v19 }
 0x374   : > { %10570 = vmatpush3.bf16.msra.mxu0 %v11606_v40 }
 0x375   : > { %10571 = vmatprep.subr.bf16.mxu0 %v11608_v14 }
 0x378   : > { %10572 = vmatpush3.bf16.msra.mxu0 %v11610_v16 }
 0x379   : > { %10573 = vmatprep.subr.bf16.mxu0 %v11612_v53 }
 0x37c   : > { %10574 = vmatpush3.bf16.msra.mxu0 %v11614_v12 }
 0x37d   : > { %10575 = vmatprep.subr.bf16.mxu0 %v11616_v17 }
 0x380   : > { %10576 = vmatpush3.bf16.msra.mxu0 %v11618_v18 }
 0x3d6   : > { %v4494_v26 = vpop.f32.mrb[0].mxu0  ;;  %v4699_v27 = vpop.f32.mrb[0].mxu1 }
 0x3d7   : > { %v10850_v28 = vadd.f32 %v4494_v26, %v2402_v22  ;;  %v10852_v29 = vadd.f32 %v4699_v27, %v2410_v23  ;;  %v4496_v30 = vpop.f32.mrb[1].mxu0  ;;  %v4701_v32 = vpop.f32.mrb[1].mxu1 }
 0x3d8   : > { %v10851_v33 = vadd.f32 %v4496_v30, %v2406_v25  ;;  %v10853_v34 = vadd.f32 %v4701_v32, %v2414_v46  ;;  %v4498_v37 = vpop.f32.mrb[2].mxu0  ;;  %v4703_v39 = vpop.f32.mrb[2].mxu1 }
 0x3d9   : > { %v4906_v1 = vmax.f32 %v10850_v28, 0.0  ;;  %v4908_v56 = vmax.f32 %v10852_v29, 0.0  ;;  %v4499_v42 = vpop.f32.mrb[3].mxu0  ;;  %v4704_v52 = vpop.f32.mrb[3].mxu1  ;;  %v12301_v29 = vmov 1983009808  }
 0x3da   : > { %v4907_v45 = vmax.f32 %v10851_v33, 0.0  ;;  %v4909_v8 = vmax.f32 %v10853_v34, 0.0  ;;  %v5397_v30 = vunpack.c.l.s4 %v12301_v29  ;;  %v5364_v39 = vld [vmem:[%s15503_s7] sm:$0xff]  ;;  %v11690_v29 = vld [vmem:[%s15505_s9 + $0x2d4] ss:$36 sps:$4 sm:$0xff]  }
 0x3db   : > { %v4911_v51 = vpack.c.bf16 %v4906_v1, %v4906_v1  ;;  %v4913_v54 = vpack.c.bf16 %v4908_v56, %v4908_v56  ;;  %v12302_v1 = vmov 65535  }
 0x3dc   : > { %v4912_v35 = vpack.c.bf16 %v4907_v45, %v4907_v45  ;;  %v4914_v47 = vpack.c.bf16 %v4909_v8, %v4909_v8  ;;  %v5398_v37 = vunpack.c.0.s8 %v5397_v30  ;;  %v5425_v56 = vsel %vm5423_vm2, 4294967295, %v12302_v1  ;;  %v11688_v30 = vld [vmem:[%s15505_s9 + $0x2d0] ss:$36 sps:$4 sm:$0xff]   ;;  %v11706_v1 = vld [vmem:[%s15505_s9 + $0x3a8] ss:$36 sps:$4 sm:$0xff]  }
 0x3dd   : > { %v14182_v8 = vsel %vm5424_vm3, %v5425_v56, 0 }
 0x3de   : > { %5275 = vmatprep.mubr.bf16.mxu1 %v4912_v35  ;;  %5315 = vmatprep.mubr.bf16.mxu0 %v4914_v47  ;;  %v5401_v52 = vsub.s32 %v5398_v37, %v12966_v44  ;;  %v11700_v37 = vld [vmem:[%s15505_s9 + $0x360] ss:$36 sps:$4 sm:$0xff]  }
 0x3df   : > { %5276 = vmatmul.mubr.bf16.vlgmr.msra.gmra.mrb[12].mxu1 %v4911_v51  ;;  %5316 = vmatmul.mubr.bf16.vlgmr.msra.gmra.mrb[16].mxu0 %v4913_v54  ;;  %v5395_v51 = vcombine.high %v5364_v39, %v5364_v39 }
 0x3e0   : > { %10785 = vmatpush3.bf16.msra.mxu1 %v11619_v50  ;;  %10800 = vmatprep.mubr.msk.bf16.mxu1 %vm12300_vm1, %v12299_v41  ;;  %v5402_v45 = vrot.slane %v5364_v39, %v5401_v52  ;;  %v11708_v39 = vld [vmem:[%s15505_s9 + $0x3ac] ss:$36 sps:$4 sm:$0xff]  }
 0x3e1   : > { %10786 = vmatprep.subr.bf16.mxu1 %v12299_v41  ;;  %5474 = vmatprep.mubr.bf16.mxu0 %v12298_v48  ;;  %v14186_v54 = vrot.slane %v5395_v51, %v5401_v52  ;;  %v9968_v51 = vld.sshfl [vmem:[%s15503_s7 + $0x8] sm:$0x3 pattern:$0x76325410] }
 0x3e2   : > { %v5410_v35 = vcombine.high %v5402_v45, %v5402_v45  ;;  %v5428_v47 = vand.u32 %v14182_v8, %v5402_v45 }
 0x3e4   : > { %10787 = vmatpush3.bf16.msra.mxu1 %v11620_v55  ;;  %v5431_v50 = vand.u32 %v14182_v8, %v5410_v35  ;;  %v5411_v55 = vcombine.high %v14186_v54, %v14186_v54  ;;  %v5434_v35 = vand.u32 %v14182_v8, %v14186_v54  ;;  %v11631_v54 = vld [vmem:[%s15505_s9 + $0x8] ss:$36 sps:$4 sm:$0xff]  }
 0x3e5   : > { %10788 = vmatprep.subr.bf16.mxu1 %v12299_v41 }
 0x3e6   : > { %5442 = vmatprep.subr.bf16.mxu0 %v5431_v50 }
 0x3e7   : > { %5443 = vmatpush1.bf16.msra.mxu0 %v5428_v47 }
 0x3e8   : > { %10789 = vmatpush3.bf16.msra.mxu1 %v11621_v57  ;;  %v5437_v57 = vand.u32 %v14182_v8, %v5411_v55  ;;  %v5440_v55 = vand.u32 %v9968_v51, %v14182_v8  ;;  %v11637_v8 = vld [vmem:[%s15505_s9 + $0x50] ss:$36 sps:$4 sm:$0xff]   ;;  %v11727_v51 = vld [vmem:[%s15505_s9 + $0x488] ss:$36 sps:$4 sm:$0xff]  }
 0x3e9   : > { %10790 = vmatprep.subr.bf16.mxu1 %v12299_v41 }
 0x3ea   : > { %5483 = vmatprep.subr.bf16.mxu0 %v5437_v57  ;;  %v11633_v57 = vld [vmem:[%s15505_s9 + $0xc] ss:$36 sps:$4 sm:$0xff]  }
 0x3ec   : > { %10791 = vmatpush3.bf16.msra.mxu1 %v11622_v58  ;;  %v11628_v58 = vld [vmem:[%s15505_s9] ss:$36 sps:$4 sm:$0xff]  }
 0x3ed   : > { %10792 = vmatprep.subr.bf16.mxu1 %v12299_v41 }
 0x3f0   : > { %10793 = vmatpush3.bf16.msra.mxu1 %v11623_v59  ;;  %v11630_v59 = vld [vmem:[%s15505_s9 + $0x4] ss:$36 sps:$4 sm:$0xff]  }
 0x3f1   : > { %10794 = vmatprep.subr.bf16.mxu1 %v12299_v41 }
 0x3f4   : > { %10795 = vmatpush3.bf16.msra.mxu1 %v11624_v61  ;;  %v11636_v61 = vld [vmem:[%s15505_s9 + $0x4c] ss:$36 sps:$4 sm:$0xff]  }
 0x3f5   : > { %10796 = vmatprep.subr.bf16.mxu1 %v12299_v41 }
 0x3f6   : > { %v10458_v63 = vpop.f32.mrb[4].mxu0  ;;  %v10480_v2 = vpop.f32.mrb[4].mxu1 }
 0x3f7   : > { %v10459_v3 = vpop.f32.mrb[5].mxu0  ;;  %v10481_v4 = vpop.f32.mrb[5].mxu1 }
 0x3f8   : > { %v10460_v5 = vadd.f32 %v10459_v3, %v10458_v63  ;;  %v10461_v6 = vpop.f32.mrb[6].mxu0  ;;  %v10482_v7 = vadd.f32 %v10481_v4, %v10480_v2  ;;  %v10483_v9 = vpop.f32.mrb[6].mxu1  ;;  %10797 = vmatpush3.bf16.msra.mxu1 %v11625_v62  ;;  %v11634_v62 = vld [vmem:[%s15505_s9 + $0x48] ss:$36 sps:$4 sm:$0xff]   ;;  %v11642_v63 = vld [vmem:[%s15505_s9 + $0x94] ss:$36 sps:$4 sm:$0xff]  }
 0x3f9   : > { %v10462_v11 = vpop.f32.mrb[7].mxu0  ;;  %v10484_v13 = vpop.f32.mrb[7].mxu1  ;;  %10798 = vmatprep.subr.bf16.mxu1 %v12299_v41  ;;  %v11648_v2 = vld [vmem:[%s15505_s9 + $0xdc] ss:$36 sps:$4 sm:$0xff]   ;;  %v11654_v6 = vld [vmem:[%s15505_s9 + $0x124] ss:$36 sps:$4 sm:$0xff]  }
 0x3fa   : > { %v4741_v24 = vadd.f32 %v10460_v5, %v2418_v0  ;;  %v11640_v0 = vld [vmem:[%s15505_s9 + $0x90] ss:$36 sps:$4 sm:$0xff]   ;;  %v11646_v3 = vld [vmem:[%s15505_s9 + $0xd8] ss:$36 sps:$4 sm:$0xff]  }
 0x3fc   : > { %v4781_v19 = vadd.f32 %v10482_v7, %v4741_v24  ;;  %10799 = vmatpush3.bf16.msra.mxu1 %v11626_v10  ;;  %v9927_v7 = vld [vmem:[%s15502_s6] ss:$0 sm:$0xff] }
 0x3fd   : > { %7863 = vmatprep.subr.bf16.mxu1 %v11630_v59  ;;  %v11645_v59 = vld [vmem:[%s15505_s9 + $0x9c] ss:$36 sps:$4 sm:$0xff]  }
 0x416   : > { %v10502_v40 = vpop.f32.mrb[8].mxu0  ;;  %v10524_v14 = vpop.f32.mrb[8].mxu1 }
 0x417   : > { %v10503_v16 = vpop.f32.mrb[9].mxu0  ;;  %v10525_v53 = vpop.f32.mrb[9].mxu1 }
 0x418   : > { %v10504_v12 = vadd.f32 %v10503_v16, %v10502_v40  ;;  %v10505_v17 = vpop.f32.mrb[10].mxu0  ;;  %v10526_v18 = vadd.f32 %v10525_v53, %v10524_v14  ;;  %v10527_v21 = vpop.f32.mrb[10].mxu1  ;;  %v11652_v40 = vld [vmem:[%s15505_s9 + $0x120] ss:$36 sps:$4 sm:$0xff]  }
 0x419   : > { %v10506_v22 = vpop.f32.mrb[11].mxu0  ;;  %v10528_v23 = vpop.f32.mrb[11].mxu1  ;;  %v11666_v21 = vld [vmem:[%s15505_s9 + $0x1b4] ss:$36 sps:$4 sm:$0xff]  }
 0x41a   : > { %v4821_v25 = vadd.f32 %v10504_v12, %v4781_v19  ;;  %v11660_v12 = vld [vmem:[%s15505_s9 + $0x16c] ss:$36 sps:$4 sm:$0xff]   ;;  %v11672_v23 = vld [vmem:[%s15505_s9 + $0x1fc] ss:$36 sps:$4 sm:$0xff]  }
 0x41b   : > { %v11664_v22 = vld [vmem:[%s15505_s9 + $0x1b0] ss:$36 sps:$4 sm:$0xff]  }
 0x41c   : > { %v4861_v46 = vadd.f32 %v10526_v18, %v4821_v25  ;;  %v11658_v18 = vld [vmem:[%s15505_s9 + $0x168] ss:$36 sps:$4 sm:$0xff]   ;;  %v11670_v25 = vld [vmem:[%s15505_s9 + $0x1f8] ss:$36 sps:$4 sm:$0xff]  }
 0x436   : > { %v4900_v26 = vpop.f32.mrb[12].mxu0 }
 0x437   : > { %v4901_v27 = vadd.f32 %v4900_v26, %v4861_v46  ;;  %v10782_v28 = vpop.f32.mrb[13].mxu0  ;;  %v11678_v46 = vld [vmem:[%s15505_s9 + $0x244] ss:$36 sps:$4 sm:$0xff]  }
 0x438   : > { %v4903_v32 = vpop.f32.mrb[14].mxu0  ;;  %v11676_v26 = vld [vmem:[%s15505_s9 + $0x240] ss:$36 sps:$4 sm:$0xff]   ;;  %v11682_v28 = vld [vmem:[%s15505_s9 + $0x288] ss:$36 sps:$4 sm:$0xff]  }
 0x439   : > { %v4910_v33 = vmax.f32 %v4901_v27, 0.0  ;;  %v10783_v34 = vpop.f32.mrb[15].mxu0  ;;  %v11684_v27 = vld [vmem:[%s15505_s9 + $0x28c] ss:$36 sps:$4 sm:$0xff]   ;;  %v11696_v32 = vld [vmem:[%s15505_s9 + $0x31c] ss:$36 sps:$4 sm:$0xff]  }
 0x43a   : > { %v11702_v34 = vld [vmem:[%s15505_s9 + $0x364] ss:$36 sps:$4 sm:$0xff]  }
 0x43b   : > { %v4915_v42 = vpack.c.bf16 %v4910_v33, %v4910_v33  ;;  %v11694_v33 = vld [vmem:[%s15505_s9 + $0x318] ss:$36 sps:$4 sm:$0xff]  }
 0x43d   : > { %10801 = vmatmul.mubr.bf16.vlgmr.msra.gmra.mrb[16].mxu1 %v4915_v42 }
 0x43e   : > { %7864 = vmatpush1.bf16.msra.mxu1 %v11628_v58  ;;  %v11639_v58 = vld [vmem:[%s15505_s9 + $0x54] ss:$36 sps:$4 sm:$0xff]  }
 0x43f   : > { %7865 = vmatprep.subr.bf16.mxu1 %v11636_v61  ;;  %v11643_v61 = vld [vmem:[%s15505_s9 + $0x98] ss:$36 sps:$4 sm:$0xff]  }
 0x442   : > { %7866 = vmatpush1.bf16.msra.mxu1 %v11634_v62  ;;  %v11651_v62 = vld [vmem:[%s15505_s9 + $0xe4] ss:$36 sps:$4 sm:$0xff]  }
 0x443   : > { %7867 = vmatprep.subr.bf16.mxu1 %v11642_v63  ;;  %v11649_v63 = vld [vmem:[%s15505_s9 + $0xe0] ss:$36 sps:$4 sm:$0xff]  }
 0x446   : > { %7868 = vmatpush1.bf16.msra.mxu1 %v11640_v0  ;;  %v11657_v0 = vld [vmem:[%s15505_s9 + $0x12c] ss:$36 sps:$4 sm:$0xff]  }
 0x447   : > { %7869 = vmatprep.subr.bf16.mxu1 %v11648_v2  ;;  %v11655_v2 = vld [vmem:[%s15505_s9 + $0x128] ss:$36 sps:$4 sm:$0xff]  }
 0x44a   : > { %7870 = vmatpush1.bf16.msra.mxu1 %v11646_v3  ;;  %v11663_v3 = vld [vmem:[%s15505_s9 + $0x174] ss:$36 sps:$4 sm:$0xff]  }
 0x44b   : > { %7871 = vmatprep.subr.bf16.mxu1 %v11654_v6  ;;  %v11667_v6 = vld [vmem:[%s15505_s9 + $0x1b8] ss:$36 sps:$4 sm:$0xff]  }
 0x44e   : > { %7872 = vmatpush1.bf16.msra.mxu1 %v11652_v40  ;;  %v11691_v40 = vld [vmem:[%s15505_s9 + $0x2d8] ss:$36 sps:$4 sm:$0xff]  }
 0x44f   : > { %7873 = vmatprep.subr.bf16.mxu1 %v11660_v12  ;;  %v11703_v12 = vld [vmem:[%s15505_s9 + $0x368] ss:$36 sps:$4 sm:$0xff]  }
 0x452   : > { %7874 = vmatpush1.bf16.msra.mxu1 %v11658_v18  ;;  %v11709_v18 = vld [vmem:[%s15505_s9 + $0x3b0] ss:$36 sps:$4 sm:$0xff]  }
 0x453   : > { %7875 = vmatprep.subr.bf16.mxu1 %v11666_v21  ;;  %v11714_v21 = vld [vmem:[%s15505_s9 + $0x3f4] ss:$36 sps:$4 sm:$0xff]  }
 0x456   : > { %7876 = vmatpush1.bf16.msra.mxu1 %v11664_v22  ;;  %v11717_v22 = vld [vmem:[%s15505_s9 + $0x3fc] ss:$36 sps:$4 sm:$0xff]  }
 0x457   : > { %7877 = vmatprep.subr.bf16.mxu1 %v11672_v23  ;;  %v11712_v23 = vld [vmem:[%s15505_s9 + $0x3f0] ss:$36 sps:$4 sm:$0xff]  }
 0x45a   : > { %7878 = vmatpush1.bf16.msra.mxu1 %v11670_v25  ;;  %v11715_v25 = vld [vmem:[%s15505_s9 + $0x3f8] ss:$36 sps:$4 sm:$0xff]  }
 0x45b   : > { %7879 = vmatprep.subr.bf16.mxu1 %v11678_v46  ;;  %v11720_v46 = vld [vmem:[%s15505_s9 + $0x43c] ss:$36 sps:$4 sm:$0xff]  }
 0x45e   : > { %7880 = vmatpush1.bf16.msra.mxu1 %v11676_v26  ;;  %v11723_v26 = vld [vmem:[%s15505_s9 + $0x444] ss:$36 sps:$4 sm:$0xff]  }
 0x45f   : > { %7881 = vmatprep.subr.bf16.mxu1 %v11684_v27  ;;  %v11718_v27 = vld [vmem:[%s15505_s9 + $0x438] ss:$36 sps:$4 sm:$0xff]  }
 0x462   : > { %7882 = vmatpush1.bf16.msra.mxu1 %v11682_v28  ;;  %v11721_v28 = vld [vmem:[%s15505_s9 + $0x440] ss:$36 sps:$4 sm:$0xff]  }
 0x463   : > { %7883 = vmatprep.subr.bf16.mxu1 %v11690_v29  ;;  %v11726_v29 = vld [vmem:[%s15505_s9 + $0x484] ss:$36 sps:$4 sm:$0xff]  }
 0x466   : > { %7884 = vmatpush1.bf16.msra.mxu1 %v11688_v30  ;;  %v11729_v30 = vld [vmem:[%s15505_s9 + $0x48c] ss:$36 sps:$4 sm:$0xff]  }
 0x467   : > { %7885 = vmatprep.subr.bf16.mxu1 %v11696_v32  ;;  %v14408_v32 = vld [vmem:[%s15504_s8] sm:$0x1f] }
 0x46a   : > { %7886 = vmatpush1.bf16.msra.mxu1 %v11694_v33  ;;  %v5371_v33 = vrot.slane %v14408_v32, %v13009_v60 }
 0x46b   : > { %7887 = vmatprep.subr.bf16.mxu1 %v11702_v34  ;;  %v5375_v34 = vrot.slane %v14408_v32, %v12981_v49 }
 0x46e   : > { %7888 = vmatpush1.bf16.msra.mxu1 %v11700_v37 }
 0x46f   : > { %7889 = vmatprep.subr.bf16.mxu1 %v11708_v39 }
 0x472   : > { %7890 = vmatpush1.bf16.msra.mxu1 %v11706_v1 }
 0x473   : > { %7891 = vmatprep.subr.bf16.mxu1 %v11714_v21  ;;  %v11756_v21 = vld [vmem:[%s15505_s9 + $0x5ec] ss:$36 sps:$4 sm:$0xff]  }
 0x476   : > { %7892 = vmatpush1.bf16.msra.mxu1 %v11712_v23  ;;  %v11754_v23 = vld [vmem:[%s15505_s9 + $0x5e8] ss:$36 sps:$4 sm:$0xff]  }
 0x477   : > { %7893 = vmatprep.subr.bf16.mxu1 %v11720_v46  ;;  %v11762_v46 = vld [vmem:[%s15505_s9 + $0x634] ss:$36 sps:$4 sm:$0xff]  }
 0x47a   : > { %7894 = vmatpush1.bf16.msra.mxu1 %v11718_v27  ;;  %v11760_v27 = vld [vmem:[%s15505_s9 + $0x630] ss:$36 sps:$4 sm:$0xff]  }
 0x47b   : > { %7904 = vmatprep.subr.bf16.mxu1 %v11726_v29  ;;  %v11768_v29 = vld [vmem:[%s15505_s9 + $0x67c] ss:$36 sps:$4 sm:$0xff]  }
 0x4b2   : > { %v10555_v4 = vpop.f32.mrb[12].mxu1  ;;  %v10577_v5 = vpop.f32.mrb[16].mxu0 }
 0x4b3   : > { %v10556_v9 = vpop.f32.mrb[13].mxu1  ;;  %v10578_v10 = vpop.f32.mrb[17].mxu0 }
 0x4b4   : > { %v10557_v11 = vadd.f32 %v10556_v9, %v10555_v4  ;;  %v10579_v13 = vadd.f32 %v10578_v10, %v10577_v5  ;;  %v10558_v24 = vpop.f32.mrb[14].mxu1  ;;  %v10580_v19 = vpop.f32.mrb[18].mxu0  ;;  %v11661_v4 = vld [vmem:[%s15505_s9 + $0x170] ss:$36 sps:$4 sm:$0xff]   ;;  %v11669_v5 = vld [vmem:[%s15505_s9 + $0x1bc] ss:$36 sps:$4 sm:$0xff]  }
 0x4b5   : > { %v10559_v14 = vpop.f32.mrb[15].mxu1  ;;  %v10581_v16 = vpop.f32.mrb[19].mxu0  ;;  %v11673_v9 = vld [vmem:[%s15505_s9 + $0x200] ss:$36 sps:$4 sm:$0xff]   ;;  %v11681_v10 = vld [vmem:[%s15505_s9 + $0x24c] ss:$36 sps:$4 sm:$0xff]  }
 0x4b6   : > { %v5278_v53 = vadd.f32 %v10557_v11, %v9927_v7  ;;  %v11675_v7 = vld [vmem:[%s15505_s9 + $0x204] ss:$36 sps:$4 sm:$0xff]   ;;  %v11685_v24 = vld [vmem:[%s15505_s9 + $0x290] ss:$36 sps:$4 sm:$0xff]   ;;  %v11693_v19 = vld [vmem:[%s15505_s9 + $0x2dc] ss:$36 sps:$4 sm:$0xff]  }
 0x4b7   : > { %v11679_v11 = vld [vmem:[%s15505_s9 + $0x248] ss:$36 sps:$4 sm:$0xff]   ;;  %v11697_v16 = vld [vmem:[%s15505_s9 + $0x320] ss:$36 sps:$4 sm:$0xff]  }
 0x4b8   : > { %v5318_v17 = vadd.f32 %v10579_v13, %v5278_v53  ;;  %v11687_v13 = vld [vmem:[%s15505_s9 + $0x294] ss:$36 sps:$4 sm:$0xff]   ;;  %v11699_v14 = vld [vmem:[%s15505_s9 + $0x324] ss:$36 sps:$4 sm:$0xff]   ;;  %v11705_v53 = vld [vmem:[%s15505_s9 + $0x36c] ss:$36 sps:$4 sm:$0xff]  }
 0x510   : > { %v5357_v56 = vpop.f32.mrb[16].mxu1 }
 0x511   : > { %v5358_v42 = vadd.f32 %v5357_v56, %v5318_v17  ;;  %v10802_v52 = vpop.f32.mrb[17].mxu1  ;;  %v11711_v17 = vld [vmem:[%s15505_s9 + $0x3b4] ss:$36 sps:$4 sm:$0xff]  }
 0x512   : > { %v5360_v45 = vpop.f32.mrb[18].mxu1 }
 0x513   : > { %v5363_v47 = vpack.c.bf16 %v5358_v42, %v5358_v42  ;;  %v10803_v50 = vpop.f32.mrb[19].mxu1 }
 0x514   : > { %v11724_v50 = vld [vmem:[%s15505_s9 + $0x480] ss:$36 sps:$4 sm:$0xff]  }
 0x515   : > { %9969 = vmatmul.mubr.msk.bf16.vlgmr.msra.gmra.mrb[20].mxu0 %vm5419_vm4, %v5363_v47 }
 0x516   : > { %5484 = vmatpush1.bf16.msra.mxu0 %v5434_v35  ;;  %5515 = vmatprep.mubr.bf16.mxu0 %v12298_v48 }
 0x517   : > { %10804 = vmatprep.subr.bf16.mxu0 %v12299_v41 }
 0x51d   : > { %9970 = vmatmul.mubr.msk.bf16.vlgmr.msra.gmra.mrb[24].mxu0 %vm5419_vm4, %v5363_v47 }
 0x51e   : > { %10805 = vmatpush3.bf16.msra.mxu0 %v5440_v55  ;;  %10806 = vmatprep.mubr.msk.bf16.mxu0 %vm12300_vm1, %v12299_v41  ;;  %v5383_v55 = vrot.slane %v14408_v32, %v13118_v36 }
 0x51f   : > { %7986 = vmatprep.subr.bf16.mxu0 %v11633_v57 }
 0x525   : > { %10807 = vmatmul.mubr.msk.bf16.vlgmr.msra.gmra.mrb[28].mxu0 %vm5419_vm4, %v5363_v47 }
 0x526   : > { %7987 = vmatpush1.bf16.msra.mxu0 %v11631_v54  ;;  %v11732_v54 = vld [vmem:[%s15505_s9 + $0x4cc] ss:$36 sps:$4 sm:$0xff]  }
 0x527   : > { %7988 = vmatprep.subr.bf16.mxu0 %v11639_v58  ;;  %v11735_v58 = vld [vmem:[%s15505_s9 + $0x4d4] ss:$36 sps:$4 sm:$0xff]  }
 0x52a   : > { %7989 = vmatpush1.bf16.msra.mxu0 %v11637_v8 }
 0x52b   : > { %7990 = vmatprep.subr.bf16.mxu0 %v11645_v59 }
 0x52e   : > { %7991 = vmatpush1.bf16.msra.mxu0 %v11643_v61 }
 0x52f   : > { %7992 = vmatprep.subr.bf16.mxu0 %v11651_v62 }
 0x532   : > { %7993 = vmatpush1.bf16.msra.mxu0 %v11649_v63  ;;  %v11730_v63 = vld [vmem:[%s15505_s9 + $0x4c8] ss:$36 sps:$4 sm:$0xff]  }
 0x533   : > { %7994 = vmatprep.subr.bf16.mxu0 %v11657_v0  ;;  %v11733_v0 = vld [vmem:[%s15505_s9 + $0x4d0] ss:$36 sps:$4 sm:$0xff]  }
 0x536   : > { %7995 = vmatpush1.bf16.msra.mxu0 %v11655_v2 }
 0x537   : > { %7996 = vmatprep.subr.bf16.mxu0 %v11663_v3  ;;  %v11738_v3 = vld [vmem:[%s15505_s9 + $0x514] ss:$36 sps:$4 sm:$0xff]  }
 0x53a   : > { %7997 = vmatpush1.bf16.msra.mxu0 %v11661_v4  ;;  %v11741_v4 = vld [vmem:[%s15505_s9 + $0x51c] ss:$36 sps:$4 sm:$0xff]  }
 0x53b   : > { %7998 = vmatprep.subr.bf16.mxu0 %v11669_v5 }
 0x53e   : > { %7999 = vmatpush1.bf16.msra.mxu0 %v11667_v6 }
 0x53f   : > { %8000 = vmatprep.subr.bf16.mxu0 %v11675_v7  ;;  %v11736_v7 = vld [vmem:[%s15505_s9 + $0x510] ss:$36 sps:$4 sm:$0xff]  }
 0x542   : > { %8001 = vmatpush1.bf16.msra.mxu0 %v11673_v9  ;;  %v11739_v9 = vld [vmem:[%s15505_s9 + $0x518] ss:$36 sps:$4 sm:$0xff]  }
 0x543   : > { %8002 = vmatprep.subr.bf16.mxu0 %v11681_v10  ;;  %v11744_v10 = vld [vmem:[%s15505_s9 + $0x55c] ss:$36 sps:$4 sm:$0xff]  }
 0x546   : > { %8003 = vmatpush1.bf16.msra.mxu0 %v11679_v11  ;;  %v11747_v11 = vld [vmem:[%s15505_s9 + $0x564] ss:$36 sps:$4 sm:$0xff]  }
 0x547   : > { %8004 = vmatprep.subr.bf16.mxu0 %v11687_v13 }
 0x54a   : > { %8005 = vmatpush1.bf16.msra.mxu0 %v11685_v24 }
 0x54b   : > { %8006 = vmatprep.subr.bf16.mxu0 %v11693_v19 }
 0x54e   : > { %8007 = vmatpush1.bf16.msra.mxu0 %v11691_v40  ;;  %v11742_v40 = vld [vmem:[%s15505_s9 + $0x558] ss:$36 sps:$4 sm:$0xff]  }
 0x54f   : > { %8008 = vmatprep.subr.bf16.mxu0 %v11699_v14  ;;  %v11745_v14 = vld [vmem:[%s15505_s9 + $0x560] ss:$36 sps:$4 sm:$0xff]  }
 0x552   : > { %8009 = vmatpush1.bf16.msra.mxu0 %v11697_v16 }
 0x553   : > { %8010 = vmatprep.subr.bf16.mxu0 %v11705_v53  ;;  %v11750_v53 = vld [vmem:[%s15505_s9 + $0x5a4] ss:$36 sps:$4 sm:$0xff]  }
 0x556   : > { %8011 = vmatpush1.bf16.msra.mxu0 %v11703_v12  ;;  %v11753_v12 = vld [vmem:[%s15505_s9 + $0x5ac] ss:$36 sps:$4 sm:$0xff]  }
 0x557   : > { %8012 = vmatprep.subr.bf16.mxu0 %v11711_v17  ;;  %v11748_v17 = vld [vmem:[%s15505_s9 + $0x5a0] ss:$36 sps:$4 sm:$0xff]  }
 0x55a   : > { %8013 = vmatpush1.bf16.msra.mxu0 %v11709_v18  ;;  %v11751_v18 = vld [vmem:[%s15505_s9 + $0x5a8] ss:$36 sps:$4 sm:$0xff]  }
 0x55b   : > { %8014 = vmatprep.subr.bf16.mxu0 %v11717_v22  ;;  %v11759_v22 = vld [vmem:[%s15505_s9 + $0x5f4] ss:$36 sps:$4 sm:$0xff]  }
 0x55e   : > { %8015 = vmatpush1.bf16.msra.mxu0 %v11715_v25  ;;  %v11757_v25 = vld [vmem:[%s15505_s9 + $0x5f0] ss:$36 sps:$4 sm:$0xff]  }
 0x55f   : > { %8016 = vmatprep.subr.bf16.mxu0 %v11723_v26  ;;  %v11765_v26 = vld [vmem:[%s15505_s9 + $0x63c] ss:$36 sps:$4 sm:$0xff]  }
 0x562   : > { %8017 = vmatpush1.bf16.msra.mxu0 %v11721_v28  ;;  %v11763_v28 = vld [vmem:[%s15505_s9 + $0x638] ss:$36 sps:$4 sm:$0xff]  }
 0x563   : > { %8027 = vmatprep.subr.bf16.mxu0 %v11729_v30  ;;  %v11771_v30 = vld [vmem:[%s15505_s9 + $0x684] ss:$36 sps:$4 sm:$0xff]  }
 0x5e8   : > { %v5476_v37 = vpop.f32.mrb[20].mxu0 }
 0x5e9   : > { %v5477_v39 = vadd.f32 %v5476_v37, %v5371_v33  ;;  %v5478_v1 = vpop.f32.mrb[21].mxu0  ;;  %v11766_v33 = vld [vmem:[%s15505_s9 + $0x678] ss:$36 sps:$4 sm:$0xff]   ;;  %v11774_v37 = vld [vmem:[%s15505_s9 + $0x6c4] ss:$36 sps:$4 sm:$0xff]  }
 0x5ea   : > { %v5479_v56 = vadd.f32 %v5478_v1, %v5375_v34  ;;  %v5480_v42 = vpop.f32.mrb[22].mxu0  ;;  %v11769_v34 = vld [vmem:[%s15505_s9 + $0x680] ss:$36 sps:$4 sm:$0xff]  }
 0x5eb   : > { %v5564_v52 = vmax.f32 %v5477_v39, 0.0  ;;  %v5481_v45 = vpop.f32.mrb[23].mxu0  ;;  %v11777_v39 = vld [vmem:[%s15505_s9 + $0x6cc] ss:$36 sps:$4 sm:$0xff]   ;;  %v11772_v1 = vld [vmem:[%s15505_s9 + $0x6c0] ss:$36 sps:$4 sm:$0xff]  }
 0x5ec   : > { %v5565_v35 = vmax.f32 %v5479_v56, 0.0  ;;  %v11775_v56 = vld [vmem:[%s15505_s9 + $0x6c8] ss:$36 sps:$4 sm:$0xff]  }
 0x5ed   : > { %v14424_v57 = vpack.c.bf16 %v5564_v52, %v5564_v52  ;;  %v11780_v42 = vld [vmem:[%s15505_s9 + $0x70c] ss:$36 sps:$4 sm:$0xff]   ;;  %v11783_v52 = vld [vmem:[%s15505_s9 + $0x714] ss:$36 sps:$4 sm:$0xff]  }
 0x5ee   : > { %v14414_v47 = vpack.c.bf16 %v5565_v35, %v5565_v35  ;;  %v11778_v45 = vld [vmem:[%s15505_s9 + $0x708] ss:$36 sps:$4 sm:$0xff]   ;;  %v11781_v35 = vld [vmem:[%s15505_s9 + $0x710] ss:$36 sps:$4 sm:$0xff]  }
 0x5f0   : > { %v14432_v8 = vpop.f32.mrb[24].mxu0  ;;  %7895 = vmatprep.mubr.bf16.mxu1 %v14414_v47  ;;  %8018 = vmatprep.mubr.bf16.mxu0 %v14414_v47 }
 0x5f1   : > { %v5519_v59 = vpop.f32.mrb[25].mxu0  ;;  %7896 = vmatmul.mubr.bf16.vlgmr.msra.gmra.mrb[20].mxu1 %v14424_v57  ;;  %8019 = vmatmul.mubr.bf16.vlgmr.msra.gmra.mrb[32].mxu0 %v14424_v57 }
 0x5f2   : > { %v5520_v61 = vadd.f32 %v5519_v59, %v5383_v55  ;;  %7905 = vmatpush1.bf16.msra.mxu1 %v11724_v50  ;;  %8028 = vmatpush1.bf16.msra.mxu0 %v11727_v51  ;;  %v5521_v62 = vpop.f32.mrb[26].mxu0  ;;  %v11786_v50 = vld [vmem:[%s15505_s9 + $0x754] ss:$36 sps:$4 sm:$0xff]   ;;  %v11789_v51 = vld [vmem:[%s15505_s9 + $0x75c] ss:$36 sps:$4 sm:$0xff]  }
 0x5f3   : > { %v5522_v2 = vpop.f32.mrb[27].mxu0  ;;  %7906 = vmatprep.subr.bf16.mxu1 %v11732_v54  ;;  %8029 = vmatprep.subr.bf16.mxu0 %v11735_v58  ;;  %v11784_v55 = vld [vmem:[%s15505_s9 + $0x750] ss:$36 sps:$4 sm:$0xff]   ;;  %v11787_v54 = vld [vmem:[%s15505_s9 + $0x758] ss:$36 sps:$4 sm:$0xff]  }
 0x5f4   : > { %v5567_v5 = vmax.f32 %v5520_v61, 0.0  ;;  %v11792_v58 = vld [vmem:[%s15505_s9 + $0x79c] ss:$36 sps:$4 sm:$0xff]   ;;  %v11795_v59 = vld [vmem:[%s15505_s9 + $0x7a4] ss:$36 sps:$4 sm:$0xff]  }
 0x5f5   : > { %v11790_v61 = vld [vmem:[%s15505_s9 + $0x798] ss:$36 sps:$4 sm:$0xff]   ;;  %v11793_v62 = vld [vmem:[%s15505_s9 + $0x7a0] ss:$36 sps:$4 sm:$0xff]  }
 0x5f6   : > { %v14450_v6 = vpack.c.bf16 %v5567_v5, %v5567_v5  ;;  %7907 = vmatpush1.bf16.msra.mxu1 %v11730_v63  ;;  %8030 = vmatpush1.bf16.msra.mxu0 %v11733_v0  ;;  %v11798_v63 = vld [vmem:[%s15505_s9 + $0x7e4] ss:$36 sps:$4 sm:$0xff]   ;;  %v11801_v0 = vld [vmem:[%s15505_s9 + $0x7ec] ss:$36 sps:$4 sm:$0xff]   ;;  %v11807_v5 = vld [vmem:[%s15505_s9 + $0x834] ss:$36 sps:$4 sm:$0xff]  }
 0x5f7   : > { %7908 = vmatprep.subr.bf16.mxu1 %v11738_v3  ;;  %8031 = vmatprep.subr.bf16.mxu0 %v11741_v4  ;;  %v11796_v2 = vld [vmem:[%s15505_s9 + $0x7e0] ss:$36 sps:$4 sm:$0xff]   ;;  %v11799_v3 = vld [vmem:[%s15505_s9 + $0x7e8] ss:$36 sps:$4 sm:$0xff]  }
 0x5f8   : > { %v14464_v13 = vpop.f32.mrb[28].mxu0  ;;  %7936 = vmatprep.mubr.bf16.mxu1 %v14450_v6  ;;  %8059 = vmatprep.mubr.bf16.mxu0 %v14450_v6  ;;  %v11804_v4 = vld [vmem:[%s15505_s9 + $0x82c] ss:$36 sps:$4 sm:$0xff]  }
 0x5f9   : > { %v10808_v24 = vpop.f32.mrb[29].mxu0 }
 0x5fa   : > { %7909 = vmatpush1.bf16.msra.mxu1 %v11736_v7  ;;  %8032 = vmatpush1.bf16.msra.mxu0 %v11739_v9  ;;  %v5561_v19 = vpop.f32.mrb[30].mxu0  ;;  %v11802_v7 = vld [vmem:[%s15505_s9 + $0x828] ss:$36 sps:$4 sm:$0xff]   ;;  %v11805_v9 = vld [vmem:[%s15505_s9 + $0x830] ss:$36 sps:$4 sm:$0xff]  }
 0x5fb   : > { %v10809_v16 = vpop.f32.mrb[31].mxu0  ;;  %7910 = vmatprep.subr.bf16.mxu1 %v11744_v10  ;;  %8033 = vmatprep.subr.bf16.mxu0 %v11747_v11  ;;  %v5379_v10 = vrot.slane %v14408_v32, %v13223_v15  ;;  %v11810_v11 = vld [vmem:[%s15505_s9 + $0x874] ss:$36 sps:$4 sm:$0xff]   ;;  %v11813_v24 = vld [vmem:[%s15505_s9 + $0x87c] ss:$36 sps:$4 sm:$0xff]  }
 0x5fc   : > { %v11808_v19 = vld [vmem:[%s15505_s9 + $0x870] ss:$36 sps:$4 sm:$0xff]   ;;  %v11816_v16 = vld [vmem:[%s15505_s9 + $0x8bc] ss:$36 sps:$4 sm:$0xff]  }
 0x5fe   : > { %7911 = vmatpush1.bf16.msra.mxu1 %v11742_v40  ;;  %8034 = vmatpush1.bf16.msra.mxu0 %v11745_v14  ;;  %v11811_v40 = vld [vmem:[%s15505_s9 + $0x878] ss:$36 sps:$4 sm:$0xff]   ;;  %v5518_v14 = vadd.f32 %v14432_v8, %v5379_v10  ;;  %v11817_v8 = vld [vmem:[%s15505_s9 + $0x8c0] ss:$36 sps:$4 sm:$0xff]  }
 0x5ff   : > { %7912 = vmatprep.subr.bf16.mxu1 %v11750_v53  ;;  %8035 = vmatprep.subr.bf16.mxu0 %v11753_v12  ;;  %v11819_v53 = vld [vmem:[%s15505_s9 + $0x8c4] ss:$36 sps:$4 sm:$0xff]   ;;  %v11814_v12 = vld [vmem:[%s15505_s9 + $0x8b8] ss:$36 sps:$4 sm:$0xff]  }
 0x602   : > { %7913 = vmatpush1.bf16.msra.mxu1 %v11748_v17  ;;  %8036 = vmatpush1.bf16.msra.mxu0 %v11751_v18  ;;  %v5566_v17 = vmax.f32 %v5518_v14, 0.0  ;;  %v11822_v18 = vld [vmem:[%s15505_s9 + $0x904] ss:$36 sps:$4 sm:$0xff]  }
 0x603   : > { %7914 = vmatprep.subr.bf16.mxu1 %v11756_v21  ;;  %8037 = vmatprep.subr.bf16.mxu0 %v11759_v22  ;;  %v11825_v21 = vld [vmem:[%s15505_s9 + $0x90c] ss:$36 sps:$4 sm:$0xff]   ;;  %v11820_v22 = vld [vmem:[%s15505_s9 + $0x900] ss:$36 sps:$4 sm:$0xff]  }
 0x604   : > { %v11877_v14 = vld [vmem:[%s15505_s9 + $0x60] ss:$36 sps:$4 sm:$0xff]  }
 0x606   : > { %7915 = vmatpush1.bf16.msra.mxu1 %v11754_v23  ;;  %8038 = vmatpush1.bf16.msra.mxu0 %v11757_v25  ;;  %v11823_v23 = vld [vmem:[%s15505_s9 + $0x908] ss:$36 sps:$4 sm:$0xff]   ;;  %v14633_v25 = vpack.c.bf16 %v5566_v17, %v5566_v17 }
 0x607   : > { %7916 = vmatprep.subr.bf16.mxu1 %v11762_v46  ;;  %8039 = vmatprep.subr.bf16.mxu0 %v11765_v26  ;;  %v11828_v46 = vld [vmem:[%s15505_s9 + $0x94c] ss:$36 sps:$4 sm:$0xff]   ;;  %v11831_v26 = vld [vmem:[%s15505_s9 + $0x954] ss:$36 sps:$4 sm:$0xff]  }
 0x608   : > { %v11888_v17 = vld [vmem:[%s15505_s9 + $0xec] ss:$36 sps:$4 sm:$0xff]  }
 0x60a   : > { %7917 = vmatpush1.bf16.msra.mxu1 %v11760_v27  ;;  %8040 = vmatpush1.bf16.msra.mxu0 %v11763_v28  ;;  %v11826_v27 = vld [vmem:[%s15505_s9 + $0x948] ss:$36 sps:$4 sm:$0xff]   ;;  %v11829_v28 = vld [vmem:[%s15505_s9 + $0x950] ss:$36 sps:$4 sm:$0xff]  }
 0x60b   : > { %7918 = vmatprep.subr.bf16.mxu1 %v11768_v29  ;;  %8041 = vmatprep.subr.bf16.mxu0 %v11771_v30  ;;  %v11834_v29 = vld [vmem:[%s15505_s9 + $0x994] ss:$36 sps:$4 sm:$0xff]   ;;  %v11837_v30 = vld [vmem:[%s15505_s9 + $0x99c] ss:$36 sps:$4 sm:$0xff]  }
 0x60e   : > { %7919 = vmatpush1.bf16.msra.mxu1 %v11766_v33  ;;  %8042 = vmatpush1.bf16.msra.mxu0 %v11769_v34  ;;  %v11832_v33 = vld [vmem:[%s15505_s9 + $0x990] ss:$36 sps:$4 sm:$0xff]   ;;  %v11835_v34 = vld [vmem:[%s15505_s9 + $0x998] ss:$36 sps:$4 sm:$0xff]  }
 0x60f   : > { %7920 = vmatprep.subr.bf16.mxu1 %v11774_v37  ;;  %8043 = vmatprep.subr.bf16.mxu0 %v11777_v39  ;;  %v11840_v37 = vld [vmem:[%s15505_s9 + $0x9dc] ss:$36 sps:$4 sm:$0xff]   ;;  %v11843_v39 = vld [vmem:[%s15505_s9 + $0x9e4] ss:$36 sps:$4 sm:$0xff]  }
 0x612   : > { %7921 = vmatpush1.bf16.msra.mxu1 %v11772_v1  ;;  %8044 = vmatpush1.bf16.msra.mxu0 %v11775_v56  ;;  %v11838_v1 = vld [vmem:[%s15505_s9 + $0x9d8] ss:$36 sps:$4 sm:$0xff]   ;;  %v11841_v56 = vld [vmem:[%s15505_s9 + $0x9e0] ss:$36 sps:$4 sm:$0xff]  }
 0x613   : > { %7922 = vmatprep.subr.bf16.mxu1 %v11780_v42  ;;  %8045 = vmatprep.subr.bf16.mxu0 %v11783_v52  ;;  %v11846_v42 = vld [vmem:[%s15505_s9 + $0xa24] ss:$36 sps:$4 sm:$0xff]   ;;  %v11849_v52 = vld [vmem:[%s15505_s9 + $0xa2c] ss:$36 sps:$4 sm:$0xff]  }
 0x616   : > { %7923 = vmatpush1.bf16.msra.mxu1 %v11778_v45  ;;  %8046 = vmatpush1.bf16.msra.mxu0 %v11781_v35  ;;  %v11844_v45 = vld [vmem:[%s15505_s9 + $0xa20] ss:$36 sps:$4 sm:$0xff]   ;;  %v11847_v35 = vld [vmem:[%s15505_s9 + $0xa28] ss:$36 sps:$4 sm:$0xff]  }
 0x617   : > { %7924 = vmatprep.subr.bf16.mxu1 %v11786_v50  ;;  %8047 = vmatprep.subr.bf16.mxu0 %v11789_v51  ;;  %v11852_v50 = vld [vmem:[%s15505_s9 + $0xa6c] ss:$36 sps:$4 sm:$0xff]   ;;  %v11855_v51 = vld [vmem:[%s15505_s9 + $0xa74] ss:$36 sps:$4 sm:$0xff]  }
 0x61a   : > { %7925 = vmatpush1.bf16.msra.mxu1 %v11784_v55  ;;  %8048 = vmatpush1.bf16.msra.mxu0 %v11787_v54  ;;  %v11850_v55 = vld [vmem:[%s15505_s9 + $0xa68] ss:$36 sps:$4 sm:$0xff]   ;;  %v11853_v54 = vld [vmem:[%s15505_s9 + $0xa70] ss:$36 sps:$4 sm:$0xff]  }
 0x61b   : > { %7926 = vmatprep.subr.bf16.mxu1 %v11792_v58  ;;  %8049 = vmatprep.subr.bf16.mxu0 %v11795_v59  ;;  %v5387_v58 = vrot.slane %v14408_v32, %v13432_v38  ;;  %v11858_v59 = vld [vmem:[%s15505_s9 + $0xab4] ss:$36 sps:$4 sm:$0xff]  }
 0x61c   : > { %v11859_v32 = vld [vmem:[%s15505_s9 + $0xab8] ss:$36 sps:$4 sm:$0xff]  }
 0x61e   : > { %7927 = vmatpush1.bf16.msra.mxu1 %v11790_v61  ;;  %8050 = vmatpush1.bf16.msra.mxu0 %v11793_v62  ;;  %v11861_v61 = vld [vmem:[%s15505_s9 + $0xabc] ss:$36 sps:$4 sm:$0xff]   ;;  %v11856_v62 = vld [vmem:[%s15505_s9 + $0xab0] ss:$36 sps:$4 sm:$0xff]  }
 0x61f   : > { %7928 = vmatprep.subr.bf16.mxu1 %v11798_v63  ;;  %8051 = vmatprep.subr.bf16.mxu0 %v11801_v0  ;;  %v5559_v63 = vadd.f32 %v14464_v13, %v5387_v58  ;;  %v11864_v0 = vld [vmem:[%s15505_s9 + $0xafc] ss:$36 sps:$4 sm:$0xff]   ;;  %v11927_v58 = vld [vmem:[%s15505_s9 + $0x2a4] ss:$36 sps:$4 sm:$0xff]  }
 0x620   : > { %v11865_v13 = vld [vmem:[%s15505_s9 + $0xb00] ss:$36 sps:$4 sm:$0xff]  }
 0x622   : > { %7929 = vmatpush1.bf16.msra.mxu1 %v11796_v2  ;;  %8052 = vmatpush1.bf16.msra.mxu0 %v11799_v3  ;;  %v11867_v2 = vld [vmem:[%s15505_s9 + $0xb04] ss:$36 sps:$4 sm:$0xff]   ;;  %v11862_v3 = vld [vmem:[%s15505_s9 + $0xaf8] ss:$36 sps:$4 sm:$0xff]  }
 0x623   : > { %7930 = vmatprep.subr.bf16.mxu1 %v11804_v4  ;;  %8053 = vmatprep.subr.bf16.mxu0 %v11807_v5  ;;  %v5568_v4 = vmax.f32 %v5559_v63, 0.0  ;;  %v11870_v5 = vld [vmem:[%s15505_s9 + $0x14] ss:$36 sps:$4 sm:$0xff]   ;;  %v11928_v63 = vld [vmem:[%s15505_s9 + $0x2e0] ss:$36 sps:$4 sm:$0xff]  }
 0x625   : > { %v14735_v10 = vpack.c.bf16 %v5568_v4, %v5568_v4  ;;  %v11937_v4 = vld [vmem:[%s15505_s9 + $0x330] ss:$36 sps:$4 sm:$0xff]  }
 0x626   : > { %7931 = vmatpush1.bf16.msra.mxu1 %v11802_v7  ;;  %8054 = vmatpush1.bf16.msra.mxu0 %v11805_v9  ;;  %v11873_v7 = vld [vmem:[%s15505_s9 + $0x1c] ss:$36 sps:$4 sm:$0xff]   ;;  %v11868_v9 = vld [vmem:[%s15505_s9 + $0x10] ss:$36 sps:$4 sm:$0xff]  }
 0x627   : > { %7932 = vmatprep.subr.bf16.mxu1 %v11810_v11  ;;  %8055 = vmatprep.subr.bf16.mxu0 %v11813_v24  ;;  %v11871_v11 = vld [vmem:[%s15505_s9 + $0x18] ss:$36 sps:$4 sm:$0xff]  }
 0x628   : > { %v11876_v24 = vld [vmem:[%s15505_s9 + $0x5c] ss:$36 sps:$4 sm:$0xff]  }
 0x62a   : > { %7933 = vmatpush1.bf16.msra.mxu1 %v11808_v19  ;;  %8056 = vmatpush1.bf16.msra.mxu0 %v11811_v40  ;;  %v11879_v19 = vld [vmem:[%s15505_s9 + $0x64] ss:$36 sps:$4 sm:$0xff]   ;;  %v11874_v40 = vld [vmem:[%s15505_s9 + $0x58] ss:$36 sps:$4 sm:$0xff]  }
 0x62b   : > { %7934 = vmatprep.subr.bf16.mxu1 %v11816_v16  ;;  %8057 = vmatprep.subr.bf16.mxu0 %v11819_v53  ;;  %v11882_v16 = vld [vmem:[%s15505_s9 + $0xa4] ss:$36 sps:$4 sm:$0xff]   ;;  %v11885_v53 = vld [vmem:[%s15505_s9 + $0xac] ss:$36 sps:$4 sm:$0xff]  }
 0x62e   : > { %7935 = vmatpush1.bf16.msra.mxu1 %v11814_v12  ;;  %8058 = vmatpush1.bf16.msra.mxu0 %v11817_v8  ;;  %v11880_v12 = vld [vmem:[%s15505_s9 + $0xa0] ss:$36 sps:$4 sm:$0xff]   ;;  %v11883_v8 = vld [vmem:[%s15505_s9 + $0xa8] ss:$36 sps:$4 sm:$0xff]  }
 0x62f   : > { %7945 = vmatprep.subr.bf16.mxu1 %v11822_v18  ;;  %8068 = vmatprep.subr.bf16.mxu0 %v11825_v21  ;;  %v11891_v18 = vld [vmem:[%s15505_s9 + $0xf4] ss:$36 sps:$4 sm:$0xff]   ;;  %v11886_v21 = vld [vmem:[%s15505_s9 + $0xe8] ss:$36 sps:$4 sm:$0xff]  }
 0x631   : > { %7937 = vmatmul.mubr.bf16.vlgmr.msra.gmra.mrb[20].mxu1 %v14633_v25  ;;  %8060 = vmatmul.mubr.bf16.vlgmr.msra.gmra.mrb[32].mxu0 %v14633_v25 }
 0x632   : > { %7946 = vmatpush1.bf16.msra.mxu1 %v11820_v22  ;;  %8069 = vmatpush1.bf16.msra.mxu0 %v11823_v23  ;;  %v11889_v22 = vld [vmem:[%s15505_s9 + $0xf0] ss:$36 sps:$4 sm:$0xff]  }
 0x633   : > { %7947 = vmatprep.subr.bf16.mxu1 %v11828_v46  ;;  %8070 = vmatprep.subr.bf16.mxu0 %v11831_v26  ;;  %v11894_v23 = vld [vmem:[%s15505_s9 + $0x134] ss:$36 sps:$4 sm:$0xff]   ;;  %v11897_v46 = vld [vmem:[%s15505_s9 + $0x13c] ss:$36 sps:$4 sm:$0xff]  }
 0x634   : > { %7977 = vmatprep.mubr.bf16.mxu1 %v12298_v48  ;;  %8100 = vmatprep.mubr.bf16.mxu0 %v12298_v48  ;;  %v11892_v26 = vld [vmem:[%s15505_s9 + $0x130] ss:$36 sps:$4 sm:$0xff]  }
 0x636   : > { %7948 = vmatpush1.bf16.msra.mxu1 %v11826_v27  ;;  %8071 = vmatpush1.bf16.msra.mxu0 %v11829_v28  ;;  %v11895_v27 = vld [vmem:[%s15505_s9 + $0x138] ss:$36 sps:$4 sm:$0xff]  }
 0x637   : > { %7949 = vmatprep.subr.bf16.mxu1 %v11834_v29  ;;  %8072 = vmatprep.subr.bf16.mxu0 %v11837_v30  ;;  %v11900_v28 = vld [vmem:[%s15505_s9 + $0x17c] ss:$36 sps:$4 sm:$0xff]   ;;  %v11903_v29 = vld [vmem:[%s15505_s9 + $0x184] ss:$36 sps:$4 sm:$0xff]  }
 0x638   : > { %v11898_v30 = vld [vmem:[%s15505_s9 + $0x178] ss:$36 sps:$4 sm:$0xff]  }
 0x63a   : > { %7950 = vmatpush1.bf16.msra.mxu1 %v11832_v33  ;;  %8073 = vmatpush1.bf16.msra.mxu0 %v11835_v34  ;;  %v11901_v33 = vld [vmem:[%s15505_s9 + $0x180] ss:$36 sps:$4 sm:$0xff]  }
 0x63b   : > { %7951 = vmatprep.subr.bf16.mxu1 %v11840_v37  ;;  %8074 = vmatprep.subr.bf16.mxu0 %v11843_v39  ;;  %v11906_v34 = vld [vmem:[%s15505_s9 + $0x1c4] ss:$36 sps:$4 sm:$0xff]   ;;  %v11909_v37 = vld [vmem:[%s15505_s9 + $0x1cc] ss:$36 sps:$4 sm:$0xff]  }
 0x63c   : > { %v11904_v39 = vld [vmem:[%s15505_s9 + $0x1c0] ss:$36 sps:$4 sm:$0xff]  }
 0x63e   : > { %7952 = vmatpush1.bf16.msra.mxu1 %v11838_v1  ;;  %8075 = vmatpush1.bf16.msra.mxu0 %v11841_v56  ;;  %v11907_v1 = vld [vmem:[%s15505_s9 + $0x1c8] ss:$36 sps:$4 sm:$0xff]  }
 0x63f   : > { %7953 = vmatprep.subr.bf16.mxu1 %v11846_v42  ;;  %8076 = vmatprep.subr.bf16.mxu0 %v11849_v52  ;;  %v11912_v56 = vld [vmem:[%s15505_s9 + $0x20c] ss:$36 sps:$4 sm:$0xff]   ;;  %v11915_v42 = vld [vmem:[%s15505_s9 + $0x214] ss:$36 sps:$4 sm:$0xff]  }
 0x640   : > { %v11910_v52 = vld [vmem:[%s15505_s9 + $0x208] ss:$36 sps:$4 sm:$0xff]  }
 0x642   : > { %7954 = vmatpush1.bf16.msra.mxu1 %v11844_v45  ;;  %8077 = vmatpush1.bf16.msra.mxu0 %v11847_v35  ;;  %v11913_v45 = vld [vmem:[%s15505_s9 + $0x210] ss:$36 sps:$4 sm:$0xff]  }
 0x643   : > { %7955 = vmatprep.subr.bf16.mxu1 %v11852_v50  ;;  %8078 = vmatprep.subr.bf16.mxu0 %v11855_v51  ;;  %v11918_v35 = vld [vmem:[%s15505_s9 + $0x254] ss:$36 sps:$4 sm:$0xff]   ;;  %v11921_v50 = vld [vmem:[%s15505_s9 + $0x25c] ss:$36 sps:$4 sm:$0xff]  }
 0x644   : > { %v11916_v51 = vld [vmem:[%s15505_s9 + $0x250] ss:$36 sps:$4 sm:$0xff]  }
 0x646   : > { %7956 = vmatpush1.bf16.msra.mxu1 %v11850_v55  ;;  %8079 = vmatpush1.bf16.msra.mxu0 %v11853_v54  ;;  %v11919_v55 = vld [vmem:[%s15505_s9 + $0x258] ss:$36 sps:$4 sm:$0xff]  }
 0x647   : > { %7957 = vmatprep.subr.bf16.mxu1 %v11858_v59  ;;  %8080 = vmatprep.subr.bf16.mxu0 %v11861_v61  ;;  %v11924_v54 = vld [vmem:[%s15505_s9 + $0x29c] ss:$36 sps:$4 sm:$0xff]  }
 0x648   : > { %v11922_v59 = vld [vmem:[%s15505_s9 + $0x298] ss:$36 sps:$4 sm:$0xff]   ;;  %v11925_v61 = vld [vmem:[%s15505_s9 + $0x2a0] ss:$36 sps:$4 sm:$0xff]  }
 0x64a   : > { %7958 = vmatpush1.bf16.msra.mxu1 %v11856_v62  ;;  %8081 = vmatpush1.bf16.msra.mxu0 %v11859_v32  ;;  %v11930_v62 = vld [vmem:[%s15505_s9 + $0x2e4] ss:$36 sps:$4 sm:$0xff]   ;;  %v11933_v32 = vld [vmem:[%s15505_s9 + $0x2ec] ss:$36 sps:$4 sm:$0xff]  }
 0x64b   : > { %7959 = vmatprep.subr.bf16.mxu1 %v11864_v0  ;;  %8082 = vmatprep.subr.bf16.mxu0 %v11867_v2  ;;  %v11931_v0 = vld [vmem:[%s15505_s9 + $0x2e8] ss:$36 sps:$4 sm:$0xff]  }
 0x64c   : > { %v11936_v2 = vld [vmem:[%s15505_s9 + $0x32c] ss:$36 sps:$4 sm:$0xff]  }
 0x64e   : > { %7960 = vmatpush1.bf16.msra.mxu1 %v11862_v3  ;;  %8083 = vmatpush1.bf16.msra.mxu0 %v11865_v13  ;;  %v11939_v3 = vld [vmem:[%s15505_s9 + $0x334] ss:$36 sps:$4 sm:$0xff]   ;;  %v11934_v13 = vld [vmem:[%s15505_s9 + $0x328] ss:$36 sps:$4 sm:$0xff]  }
 0x64f   : > { %8109 = vmatprep.subr.bf16.mxu1 %v11870_v5  ;;  %8232 = vmatprep.subr.bf16.mxu0 %v11873_v7  ;;  %v11942_v5 = vld [vmem:[%s15505_s9 + $0x374] ss:$36 sps:$4 sm:$0xff]   ;;  %v11945_v7 = vld [vmem:[%s15505_s9 + $0x37c] ss:$36 sps:$4 sm:$0xff]  }
 0x651   : > { %7978 = vmatmul.mubr.bf16.vlgmr.msra.gmra.mrb[20].mxu1 %v14735_v10  ;;  %8101 = vmatmul.mubr.bf16.vlgmr.msra.gmra.mrb[32].mxu0 %v14735_v10 }
 0x652   : > { %8110 = vmatpush1.bf16.msra.mxu1 %v11868_v9  ;;  %8141 = vmatprep.mubr.bf16.mxu1 %v14414_v47  ;;  %v11940_v9 = vld [vmem:[%s15505_s9 + $0x370] ss:$36 sps:$4 sm:$0xff]  }
 0x653   : > { %8233 = vmatpush1.bf16.msra.mxu0 %v11871_v11  ;;  %8264 = vmatprep.mubr.bf16.mxu0 %v14414_v47  ;;  %v11943_v11 = vld [vmem:[%s15505_s9 + $0x378] ss:$36 sps:$4 sm:$0xff]  }
 0x654   : > { %8111 = vmatprep.subr.bf16.mxu1 %v11876_v24  ;;  %8234 = vmatprep.subr.bf16.mxu0 %v11879_v19  ;;  %v11948_v24 = vld [vmem:[%s15505_s9 + $0x3bc] ss:$36 sps:$4 sm:$0xff]   ;;  %v11951_v19 = vld [vmem:[%s15505_s9 + $0x3c4] ss:$36 sps:$4 sm:$0xff]  }
 0x656   : > { %8112 = vmatpush1.bf16.msra.mxu1 %v11874_v40  ;;  %v11946_v40 = vld [vmem:[%s15505_s9 + $0x3b8] ss:$36 sps:$4 sm:$0xff]  }
 0x657   : > { %8235 = vmatpush1.bf16.msra.mxu0 %v11877_v14  ;;  %8113 = vmatprep.subr.bf16.mxu1 %v11882_v16  ;;  %v11949_v14 = vld [vmem:[%s15505_s9 + $0x3c0] ss:$36 sps:$4 sm:$0xff]  }
 0x658   : > { %8236 = vmatprep.subr.bf16.mxu0 %v11885_v53  ;;  %v11954_v16 = vld [vmem:[%s15505_s9 + $0x404] ss:$36 sps:$4 sm:$0xff]   ;;  %v11957_v53 = vld [vmem:[%s15505_s9 + $0x40c] ss:$36 sps:$4 sm:$0xff]  }
 0x65a   : > { %8114 = vmatpush1.bf16.msra.mxu1 %v11880_v12  ;;  %v11952_v12 = vld [vmem:[%s15505_s9 + $0x400] ss:$36 sps:$4 sm:$0xff]  }
 0x65b   : > { %8237 = vmatpush1.bf16.msra.mxu0 %v11883_v8  ;;  %8115 = vmatprep.subr.bf16.mxu1 %v11888_v17  ;;  %v11955_v8 = vld [vmem:[%s15505_s9 + $0x408] ss:$36 sps:$4 sm:$0xff]  }
 0x65c   : > { %8238 = vmatprep.subr.bf16.mxu0 %v11891_v18  ;;  %v11960_v17 = vld [vmem:[%s15505_s9 + $0x44c] ss:$36 sps:$4 sm:$0xff]   ;;  %v11963_v18 = vld [vmem:[%s15505_s9 + $0x454] ss:$36 sps:$4 sm:$0xff]  }
 0x65e   : > { %8116 = vmatpush1.bf16.msra.mxu1 %v11886_v21  ;;  %v11958_v21 = vld [vmem:[%s15505_s9 + $0x448] ss:$36 sps:$4 sm:$0xff]  }
 0x65f   : > { %8239 = vmatpush1.bf16.msra.mxu0 %v11889_v22  ;;  %8117 = vmatprep.subr.bf16.mxu1 %v11894_v23  ;;  %v11961_v22 = vld [vmem:[%s15505_s9 + $0x450] ss:$36 sps:$4 sm:$0xff]  }
 0x660   : > { %8240 = vmatprep.subr.bf16.mxu0 %v11897_v46  ;;  %v11966_v23 = vld [vmem:[%s15505_s9 + $0x494] ss:$36 sps:$4 sm:$0xff]   ;;  %v11969_v46 = vld [vmem:[%s15505_s9 + $0x49c] ss:$36 sps:$4 sm:$0xff]  }
 0x662   : > { %8118 = vmatpush1.bf16.msra.mxu1 %v11892_v26  ;;  %v11964_v26 = vld [vmem:[%s15505_s9 + $0x490] ss:$36 sps:$4 sm:$0xff]  }
 0x663   : > { %8241 = vmatpush1.bf16.msra.mxu0 %v11895_v27  ;;  %8119 = vmatprep.subr.bf16.mxu1 %v11900_v28  ;;  %v11967_v27 = vld [vmem:[%s15505_s9 + $0x498] ss:$36 sps:$4 sm:$0xff]  }
 0x664   : > { %8242 = vmatprep.subr.bf16.mxu0 %v11903_v29  ;;  %v11972_v28 = vld [vmem:[%s15505_s9 + $0x4dc] ss:$36 sps:$4 sm:$0xff]   ;;  %v11975_v29 = vld [vmem:[%s15505_s9 + $0x4e4] ss:$36 sps:$4 sm:$0xff]  }
 0x666   : > { %8120 = vmatpush1.bf16.msra.mxu1 %v11898_v30  ;;  %v11970_v30 = vld [vmem:[%s15505_s9 + $0x4d8] ss:$36 sps:$4 sm:$0xff]  }
 0x667   : > { %8243 = vmatpush1.bf16.msra.mxu0 %v11901_v33  ;;  %8121 = vmatprep.subr.bf16.mxu1 %v11906_v34  ;;  %v11973_v33 = vld [vmem:[%s15505_s9 + $0x4e0] ss:$36 sps:$4 sm:$0xff]  }
 0x668   : > { %8244 = vmatprep.subr.bf16.mxu0 %v11909_v37  ;;  %v11978_v34 = vld [vmem:[%s15505_s9 + $0x524] ss:$36 sps:$4 sm:$0xff]   ;;  %v11981_v37 = vld [vmem:[%s15505_s9 + $0x52c] ss:$36 sps:$4 sm:$0xff]  }
 0x66a   : > { %8122 = vmatpush1.bf16.msra.mxu1 %v11904_v39  ;;  %v11976_v39 = vld [vmem:[%s15505_s9 + $0x520] ss:$36 sps:$4 sm:$0xff]  }
 0x66b   : > { %8245 = vmatpush1.bf16.msra.mxu0 %v11907_v1  ;;  %8123 = vmatprep.subr.bf16.mxu1 %v11912_v56  ;;  %v11979_v1 = vld [vmem:[%s15505_s9 + $0x528] ss:$36 sps:$4 sm:$0xff]  }
 0x66c   : > { %8246 = vmatprep.subr.bf16.mxu0 %v11915_v42  ;;  %v11984_v56 = vld [vmem:[%s15505_s9 + $0x56c] ss:$36 sps:$4 sm:$0xff]   ;;  %v11987_v42 = vld [vmem:[%s15505_s9 + $0x574] ss:$36 sps:$4 sm:$0xff]  }
 0x66e   : > { %8124 = vmatpush1.bf16.msra.mxu1 %v11910_v52  ;;  %v11982_v52 = vld [vmem:[%s15505_s9 + $0x568] ss:$36 sps:$4 sm:$0xff]  }
 0x66f   : > { %8247 = vmatpush1.bf16.msra.mxu0 %v11913_v45  ;;  %8125 = vmatprep.subr.bf16.mxu1 %v11918_v35  ;;  %v11985_v45 = vld [vmem:[%s15505_s9 + $0x570] ss:$36 sps:$4 sm:$0xff]  }
 0x670   : > { %8248 = vmatprep.subr.bf16.mxu0 %v11921_v50  ;;  %v11990_v35 = vld [vmem:[%s15505_s9 + $0x5b4] ss:$36 sps:$4 sm:$0xff]   ;;  %v11993_v50 = vld [vmem:[%s15505_s9 + $0x5bc] ss:$36 sps:$4 sm:$0xff]  }
 0x672   : > { %8126 = vmatpush1.bf16.msra.mxu1 %v11916_v51  ;;  %v11988_v51 = vld [vmem:[%s15505_s9 + $0x5b0] ss:$36 sps:$4 sm:$0xff]  }
 0x673   : > { %8249 = vmatpush1.bf16.msra.mxu0 %v11919_v55  ;;  %8127 = vmatprep.subr.bf16.mxu1 %v11924_v54  ;;  %v11991_v55 = vld [vmem:[%s15505_s9 + $0x5b8] ss:$36 sps:$4 sm:$0xff]  }
 0x674   : > { %8250 = vmatprep.subr.bf16.mxu0 %v11927_v58  ;;  %v11996_v54 = vld [vmem:[%s15505_s9 + $0x5fc] ss:$36 sps:$4 sm:$0xff]   ;;  %v11999_v58 = vld [vmem:[%s15505_s9 + $0x604] ss:$36 sps:$4 sm:$0xff]  }
 0x676   : > { %8128 = vmatpush1.bf16.msra.mxu1 %v11922_v59  ;;  %v11994_v59 = vld [vmem:[%s15505_s9 + $0x5f8] ss:$36 sps:$4 sm:$0xff]  }
 0x677   : > { %8251 = vmatpush1.bf16.msra.mxu0 %v11925_v61  ;;  %8129 = vmatprep.subr.bf16.mxu1 %v11930_v62  ;;  %v11997_v61 = vld [vmem:[%s15505_s9 + $0x600] ss:$36 sps:$4 sm:$0xff]  }
 0x678   : > { %8252 = vmatprep.subr.bf16.mxu0 %v11933_v32  ;;  %v12002_v62 = vld [vmem:[%s15505_s9 + $0x644] ss:$36 sps:$4 sm:$0xff]   ;;  %v12005_v32 = vld [vmem:[%s15505_s9 + $0x64c] ss:$36 sps:$4 sm:$0xff]  }
 0x67a   : > { %8130 = vmatpush1.bf16.msra.mxu1 %v11928_v63  ;;  %v12000_v63 = vld [vmem:[%s15505_s9 + $0x640] ss:$36 sps:$4 sm:$0xff]  }
 0x67b   : > { %8253 = vmatpush1.bf16.msra.mxu0 %v11931_v0  ;;  %8131 = vmatprep.subr.bf16.mxu1 %v11936_v2  ;;  %v12003_v0 = vld [vmem:[%s15505_s9 + $0x648] ss:$36 sps:$4 sm:$0xff]  }
 0x67c   : > { %8254 = vmatprep.subr.bf16.mxu0 %v11939_v3  ;;  %v12008_v2 = vld [vmem:[%s15505_s9 + $0x68c] ss:$36 sps:$4 sm:$0xff]   ;;  %v12011_v3 = vld [vmem:[%s15505_s9 + $0x694] ss:$36 sps:$4 sm:$0xff]  }
 0x67e   : > { %8132 = vmatpush1.bf16.msra.mxu1 %v11934_v13  ;;  %v12006_v13 = vld [vmem:[%s15505_s9 + $0x688] ss:$36 sps:$4 sm:$0xff]  }
 0x67f   : > { %8255 = vmatpush1.bf16.msra.mxu0 %v11937_v4  ;;  %8133 = vmatprep.subr.bf16.mxu1 %v11942_v5  ;;  %v12009_v4 = vld [vmem:[%s15505_s9 + $0x690] ss:$36 sps:$4 sm:$0xff]  }
 0x680   : > { %8256 = vmatprep.subr.bf16.mxu0 %v11945_v7  ;;  %v12014_v5 = vld [vmem:[%s15505_s9 + $0x6d4] ss:$36 sps:$4 sm:$0xff]   ;;  %v12017_v7 = vld [vmem:[%s15505_s9 + $0x6dc] ss:$36 sps:$4 sm:$0xff]  }
 0x682   : > { %8134 = vmatpush1.bf16.msra.mxu1 %v11940_v9  ;;  %v12012_v9 = vld [vmem:[%s15505_s9 + $0x6d0] ss:$36 sps:$4 sm:$0xff]  }
 0x683   : > { %8257 = vmatpush1.bf16.msra.mxu0 %v11943_v11  ;;  %8135 = vmatprep.subr.bf16.mxu1 %v11948_v24  ;;  %v12015_v11 = vld [vmem:[%s15505_s9 + $0x6d8] ss:$36 sps:$4 sm:$0xff]  }
 0x684   : > { %8258 = vmatprep.subr.bf16.mxu0 %v11951_v19  ;;  %v12020_v24 = vld [vmem:[%s15505_s9 + $0x71c] ss:$36 sps:$4 sm:$0xff]   ;;  %v12023_v19 = vld [vmem:[%s15505_s9 + $0x724] ss:$36 sps:$4 sm:$0xff]  }
 0x686   : > { %8136 = vmatpush1.bf16.msra.mxu1 %v11946_v40  ;;  %v12018_v40 = vld [vmem:[%s15505_s9 + $0x718] ss:$36 sps:$4 sm:$0xff]  }
 0x687   : > { %8259 = vmatpush1.bf16.msra.mxu0 %v11949_v14  ;;  %8137 = vmatprep.subr.bf16.mxu1 %v11954_v16  ;;  %v12021_v14 = vld [vmem:[%s15505_s9 + $0x720] ss:$36 sps:$4 sm:$0xff]  }
 0x688   : > { %8260 = vmatprep.subr.bf16.mxu0 %v11957_v53  ;;  %v12026_v16 = vld [vmem:[%s15505_s9 + $0x764] ss:$36 sps:$4 sm:$0xff]   ;;  %v12029_v53 = vld [vmem:[%s15505_s9 + $0x76c] ss:$36 sps:$4 sm:$0xff]  }
 0x68a   : > { %8138 = vmatpush1.bf16.msra.mxu1 %v11952_v12  ;;  %v12024_v12 = vld [vmem:[%s15505_s9 + $0x760] ss:$36 sps:$4 sm:$0xff]  }
 0x68b   : > { %8261 = vmatpush1.bf16.msra.mxu0 %v11955_v8  ;;  %8139 = vmatprep.subr.bf16.mxu1 %v11960_v17  ;;  %v12027_v8 = vld [vmem:[%s15505_s9 + $0x768] ss:$36 sps:$4 sm:$0xff]  }
 0x68c   : > { %8262 = vmatprep.subr.bf16.mxu0 %v11963_v18  ;;  %v12032_v17 = vld [vmem:[%s15505_s9 + $0x7ac] ss:$36 sps:$4 sm:$0xff]   ;;  %v12035_v18 = vld [vmem:[%s15505_s9 + $0x7b4] ss:$36 sps:$4 sm:$0xff]  }
 0x68e   : > { %8140 = vmatpush1.bf16.msra.mxu1 %v11958_v21  ;;  %v12030_v21 = vld [vmem:[%s15505_s9 + $0x7a8] ss:$36 sps:$4 sm:$0xff]  }
 0x68f   : > { %8263 = vmatpush1.bf16.msra.mxu0 %v11961_v22  ;;  %8150 = vmatprep.subr.bf16.mxu1 %v11966_v23  ;;  %v12033_v22 = vld [vmem:[%s15505_s9 + $0x7b0] ss:$36 sps:$4 sm:$0xff]  }
 0x690   : > { %8273 = vmatprep.subr.bf16.mxu0 %v11969_v46  ;;  %v12038_v23 = vld [vmem:[%s15505_s9 + $0x7f4] ss:$36 sps:$4 sm:$0xff]   ;;  %v12041_v46 = vld [vmem:[%s15505_s9 + $0x7fc] ss:$36 sps:$4 sm:$0xff]  }
 0x691   : > { %8142 = vmatmul.mubr.bf16.vlgmr.msra.gmra.mrb[24].mxu1 %v14424_v57 }
 0x692   : > { %8265 = vmatmul.mubr.bf16.vlgmr.msra.gmra.mrb[36].mxu0 %v14424_v57  ;;  %8151 = vmatpush1.bf16.msra.mxu1 %v11964_v26  ;;  %v12036_v26 = vld [vmem:[%s15505_s9 + $0x7f0] ss:$36 sps:$4 sm:$0xff]  }
 0x693   : > { %8182 = vmatprep.mubr.bf16.mxu1 %v14450_v6  ;;  %8274 = vmatpush1.bf16.msra.mxu0 %v11967_v27  ;;  %v12039_v27 = vld [vmem:[%s15505_s9 + $0x7f8] ss:$36 sps:$4 sm:$0xff]  }
 0x694   : > { %8305 = vmatprep.mubr.bf16.mxu0 %v14450_v6  ;;  %8152 = vmatprep.subr.bf16.mxu1 %v11972_v28  ;;  %v12044_v28 = vld [vmem:[%s15505_s9 + $0x83c] ss:$36 sps:$4 sm:$0xff]  }
 0x695   : > { %8275 = vmatprep.subr.bf16.mxu0 %v11975_v29  ;;  %v12047_v29 = vld [vmem:[%s15505_s9 + $0x844] ss:$36 sps:$4 sm:$0xff]  }
 0x696   : > { %8153 = vmatpush1.bf16.msra.mxu1 %v11970_v30  ;;  %v12042_v30 = vld [vmem:[%s15505_s9 + $0x838] ss:$36 sps:$4 sm:$0xff]  }
 0x697   : > { %8276 = vmatpush1.bf16.msra.mxu0 %v11973_v33  ;;  %8154 = vmatprep.subr.bf16.mxu1 %v11978_v34  ;;  %v12045_v33 = vld [vmem:[%s15505_s9 + $0x840] ss:$36 sps:$4 sm:$0xff]  }
 0x698   : > { %8277 = vmatprep.subr.bf16.mxu0 %v11981_v37  ;;  %v12050_v34 = vld [vmem:[%s15505_s9 + $0x884] ss:$36 sps:$4 sm:$0xff]   ;;  %v12053_v37 = vld [vmem:[%s15505_s9 + $0x88c] ss:$36 sps:$4 sm:$0xff]  }
 0x69a   : > { %8155 = vmatpush1.bf16.msra.mxu1 %v11976_v39  ;;  %v12048_v39 = vld [vmem:[%s15505_s9 + $0x880] ss:$36 sps:$4 sm:$0xff]  }
 0x69b   : > { %8278 = vmatpush1.bf16.msra.mxu0 %v11979_v1  ;;  %8156 = vmatprep.subr.bf16.mxu1 %v11984_v56  ;;  %v12051_v1 = vld [vmem:[%s15505_s9 + $0x888] ss:$36 sps:$4 sm:$0xff]  }
 0x69c   : > { %8279 = vmatprep.subr.bf16.mxu0 %v11987_v42  ;;  %v12056_v56 = vld [vmem:[%s15505_s9 + $0x8cc] ss:$36 sps:$4 sm:$0xff]   ;;  %v12059_v42 = vld [vmem:[%s15505_s9 + $0x8d4] ss:$36 sps:$4 sm:$0xff]  }
 0x69e   : > { %8157 = vmatpush1.bf16.msra.mxu1 %v11982_v52  ;;  %v12054_v52 = vld [vmem:[%s15505_s9 + $0x8c8] ss:$36 sps:$4 sm:$0xff]  }
 0x69f   : > { %8280 = vmatpush1.bf16.msra.mxu0 %v11985_v45  ;;  %8158 = vmatprep.subr.bf16.mxu1 %v11990_v35  ;;  %v12057_v45 = vld [vmem:[%s15505_s9 + $0x8d0] ss:$36 sps:$4 sm:$0xff]  }
 0x6a0   : > { %8281 = vmatprep.subr.bf16.mxu0 %v11993_v50  ;;  %v12062_v35 = vld [vmem:[%s15505_s9 + $0x914] ss:$36 sps:$4 sm:$0xff]   ;;  %v12065_v50 = vld [vmem:[%s15505_s9 + $0x91c] ss:$36 sps:$4 sm:$0xff]  }
 0x6a2   : > { %8159 = vmatpush1.bf16.msra.mxu1 %v11988_v51  ;;  %v12060_v51 = vld [vmem:[%s15505_s9 + $0x910] ss:$36 sps:$4 sm:$0xff]  }
 0x6a3   : > { %8282 = vmatpush1.bf16.msra.mxu0 %v11991_v55  ;;  %8160 = vmatprep.subr.bf16.mxu1 %v11996_v54  ;;  %v12063_v55 = vld [vmem:[%s15505_s9 + $0x918] ss:$36 sps:$4 sm:$0xff]  }
 0x6a4   : > { %8283 = vmatprep.subr.bf16.mxu0 %v11999_v58  ;;  %v12068_v54 = vld [vmem:[%s15505_s9 + $0x95c] ss:$36 sps:$4 sm:$0xff]   ;;  %v12071_v58 = vld [vmem:[%s15505_s9 + $0x964] ss:$36 sps:$4 sm:$0xff]  }
 0x6a6   : > { %8161 = vmatpush1.bf16.msra.mxu1 %v11994_v59  ;;  %v12066_v59 = vld [vmem:[%s15505_s9 + $0x958] ss:$36 sps:$4 sm:$0xff]  }
 0x6a7   : > { %8284 = vmatpush1.bf16.msra.mxu0 %v11997_v61  ;;  %8162 = vmatprep.subr.bf16.mxu1 %v12002_v62  ;;  %v12069_v61 = vld [vmem:[%s15505_s9 + $0x960] ss:$36 sps:$4 sm:$0xff]  }
 0x6a8   : > { %8285 = vmatprep.subr.bf16.mxu0 %v12005_v32  ;;  %v12074_v62 = vld [vmem:[%s15505_s9 + $0x9a4] ss:$36 sps:$4 sm:$0xff]   ;;  %v12077_v32 = vld [vmem:[%s15505_s9 + $0x9ac] ss:$36 sps:$4 sm:$0xff]  }
 0x6aa   : > { %8163 = vmatpush1.bf16.msra.mxu1 %v12000_v63  ;;  %v12072_v63 = vld [vmem:[%s15505_s9 + $0x9a0] ss:$36 sps:$4 sm:$0xff]  }
 0x6ab   : > { %8286 = vmatpush1.bf16.msra.mxu0 %v12003_v0  ;;  %8164 = vmatprep.subr.bf16.mxu1 %v12008_v2  ;;  %v12075_v0 = vld [vmem:[%s15505_s9 + $0x9a8] ss:$36 sps:$4 sm:$0xff]  }
 0x6ac   : > { %8287 = vmatprep.subr.bf16.mxu0 %v12011_v3  ;;  %v12080_v2 = vld [vmem:[%s15505_s9 + $0x9ec] ss:$36 sps:$4 sm:$0xff]  }
 0x6ad   : > { %v12078_v3 = vld [vmem:[%s15505_s9 + $0x9e8] ss:$36 sps:$4 sm:$0xff]  }
 0x6ae   : > { %8165 = vmatpush1.bf16.msra.mxu1 %v12006_v13  ;;  %v12081_v13 = vld [vmem:[%s15505_s9 + $0x9f0] ss:$36 sps:$4 sm:$0xff]  }
 0x6af   : > { %8288 = vmatpush1.bf16.msra.mxu0 %v12009_v4  ;;  %8166 = vmatprep.subr.bf16.mxu1 %v12014_v5  ;;  %v12086_v4 = vld [vmem:[%s15505_s9 + $0xa34] ss:$36 sps:$4 sm:$0xff]   ;;  %v12089_v5 = vld [vmem:[%s15505_s9 + $0xa3c] ss:$36 sps:$4 sm:$0xff]  }
 0x6b0   : > { %8289 = vmatprep.subr.bf16.mxu0 %v12017_v7  ;;  %v12084_v7 = vld [vmem:[%s15505_s9 + $0xa30] ss:$36 sps:$4 sm:$0xff]  }
 0x6b2   : > { %8167 = vmatpush1.bf16.msra.mxu1 %v12012_v9  ;;  %v12087_v9 = vld [vmem:[%s15505_s9 + $0xa38] ss:$36 sps:$4 sm:$0xff]  }
 0x6b3   : > { %8290 = vmatpush1.bf16.msra.mxu0 %v12015_v11  ;;  %8168 = vmatprep.subr.bf16.mxu1 %v12020_v24  ;;  %v12092_v11 = vld [vmem:[%s15505_s9 + $0xa7c] ss:$36 sps:$4 sm:$0xff]   ;;  %v12095_v24 = vld [vmem:[%s15505_s9 + $0xa84] ss:$36 sps:$4 sm:$0xff]  }
 0x6b4   : > { %8291 = vmatprep.subr.bf16.mxu0 %v12023_v19  ;;  %v12090_v19 = vld [vmem:[%s15505_s9 + $0xa78] ss:$36 sps:$4 sm:$0xff]  }
 0x6b6   : > { %8169 = vmatpush1.bf16.msra.mxu1 %v12018_v40  ;;  %v12093_v40 = vld [vmem:[%s15505_s9 + $0xa80] ss:$36 sps:$4 sm:$0xff]  }
 0x6b7   : > { %8292 = vmatpush1.bf16.msra.mxu0 %v12021_v14  ;;  %8170 = vmatprep.subr.bf16.mxu1 %v12026_v16  ;;  %v12098_v14 = vld [vmem:[%s15505_s9 + $0xac4] ss:$36 sps:$4 sm:$0xff]   ;;  %v12101_v16 = vld [vmem:[%s15505_s9 + $0xacc] ss:$36 sps:$4 sm:$0xff]  }
 0x6b8   : > { %8293 = vmatprep.subr.bf16.mxu0 %v12029_v53  ;;  %v12096_v53 = vld [vmem:[%s15505_s9 + $0xac0] ss:$36 sps:$4 sm:$0xff]  }
 0x6ba   : > { %8171 = vmatpush1.bf16.msra.mxu1 %v12024_v12  ;;  %v12099_v12 = vld [vmem:[%s15505_s9 + $0xac8] ss:$36 sps:$4 sm:$0xff]  }
 0x6bb   : > { %8294 = vmatpush1.bf16.msra.mxu0 %v12027_v8  ;;  %8172 = vmatprep.subr.bf16.mxu1 %v12032_v17  ;;  %v12104_v8 = vld [vmem:[%s15505_s9 + $0xb0c] ss:$36 sps:$4 sm:$0xff]   ;;  %v12107_v17 = vld [vmem:[%s15505_s9 + $0xb14] ss:$36 sps:$4 sm:$0xff]  }
 0x6bc   : > { %8295 = vmatprep.subr.bf16.mxu0 %v12035_v18  ;;  %v12102_v18 = vld [vmem:[%s15505_s9 + $0xb08] ss:$36 sps:$4 sm:$0xff]  }
 0x6be   : > { %8173 = vmatpush1.bf16.msra.mxu1 %v12030_v21  ;;  %v12105_v21 = vld [vmem:[%s15505_s9 + $0xb10] ss:$36 sps:$4 sm:$0xff]  }
 0x6bf   : > { %8296 = vmatpush1.bf16.msra.mxu0 %v12033_v22  ;;  %8174 = vmatprep.subr.bf16.mxu1 %v12038_v23  ;;  %v12108_v22 = vld [vmem:[%s15505_s9 + $0x260] ss:$36 sps:$4 sm:$0xff]  }
 0x6c0   : > { %8297 = vmatprep.subr.bf16.mxu0 %v12041_v46  ;;  %v12109_v23 = vld [vmem:[%s15505_s9 + $0x6e0] ss:$36 sps:$4 sm:$0xff]  }
 0x6c1   : > { %v12110_v46 = vld [vmem:[%s15505_s9 + $0x20] ss:$36 sps:$4 sm:$0xff]  }
 0x6c2   : > { %8175 = vmatpush1.bf16.msra.mxu1 %v12036_v26  ;;  %v12111_v26 = vld [vmem:[%s15505_s9 + $0x4a0] ss:$36 sps:$4 sm:$0xff]  }
 0x6c3   : > { %8298 = vmatpush1.bf16.msra.mxu0 %v12039_v27  ;;  %8176 = vmatprep.subr.bf16.mxu1 %v12044_v28  ;;  %v12112_v27 = vld [vmem:[%s15505_s9 + $0x2a8] ss:$36 sps:$4 sm:$0xff]  }
 0x6c4   : > { %8299 = vmatprep.subr.bf16.mxu0 %v12047_v29  ;;  %v12113_v28 = vld [vmem:[%s15505_s9 + $0x728] ss:$36 sps:$4 sm:$0xff]  }
 0x6c5   : > { %v12114_v29 = vld [vmem:[%s15505_s9 + $0x68] ss:$36 sps:$4 sm:$0xff]  }
 0x6c6   : > { %8177 = vmatpush1.bf16.msra.mxu1 %v12042_v30  ;;  %v12115_v30 = vld [vmem:[%s15505_s9 + $0x4e8] ss:$36 sps:$4 sm:$0xff]  }
 0x6c7   : > { %8300 = vmatpush1.bf16.msra.mxu0 %v12045_v33  ;;  %8178 = vmatprep.subr.bf16.mxu1 %v12050_v34  ;;  %v12116_v33 = vld [vmem:[%s15505_s9 + $0x2f0] ss:$36 sps:$4 sm:$0xff]  }
 0x6c8   : > { %8301 = vmatprep.subr.bf16.mxu0 %v12053_v37  ;;  %v12117_v34 = vld [vmem:[%s15505_s9 + $0x770] ss:$36 sps:$4 sm:$0xff]  }
 0x6c9   : > { %v12119_v37 = vld [vmem:[%s15505_s9 + $0x530] ss:$36 sps:$4 sm:$0xff]  }
 0x6ca   : > { %8179 = vmatpush1.bf16.msra.mxu1 %v12048_v39  ;;  %v12121_v39 = vld [vmem:[%s15505_s9 + $0x7b8] ss:$36 sps:$4 sm:$0xff]  }
 0x6cb   : > { %8302 = vmatpush1.bf16.msra.mxu0 %v12051_v1  ;;  %8180 = vmatprep.subr.bf16.mxu1 %v12056_v56  ;;  %v12122_v1 = vld [vmem:[%s15505_s9 + $0xf8] ss:$36 sps:$4 sm:$0xff]  }
 0x6cc   : > { %8303 = vmatprep.subr.bf16.mxu0 %v12059_v42  ;;  %v12123_v56 = vld [vmem:[%s15505_s9 + $0x578] ss:$36 sps:$4 sm:$0xff]   ;;  %v12124_v42 = vld [vmem:[%s15505_s9 + $0x380] ss:$36 sps:$4 sm:$0xff]  }
 0x6ce   : > { %8181 = vmatpush1.bf16.msra.mxu1 %v12054_v52  ;;  %v12125_v52 = vld [vmem:[%s15505_s9 + $0x800] ss:$36 sps:$4 sm:$0xff]  }
 0x6cf   : > { %8304 = vmatpush1.bf16.msra.mxu0 %v12057_v45  ;;  %8191 = vmatprep.subr.bf16.mxu1 %v12062_v35  ;;  %v12126_v45 = vld [vmem:[%s15505_s9 + $0x140] ss:$36 sps:$4 sm:$0xff]  }
 0x6d0   : > { %8314 = vmatprep.subr.bf16.mxu0 %v12065_v50  ;;  %v12127_v35 = vld [vmem:[%s15505_s9 + $0x5c0] ss:$36 sps:$4 sm:$0xff]   ;;  %v12128_v50 = vld [vmem:[%s15505_s9 + $0x3c8] ss:$36 sps:$4 sm:$0xff]  }
 0x6d1   : > { %8183 = vmatmul.mubr.bf16.vlgmr.msra.gmra.mrb[24].mxu1 %v14633_v25 }
 0x6d2   : > { %8306 = vmatmul.mubr.bf16.vlgmr.msra.gmra.mrb[36].mxu0 %v14633_v25  ;;  %8192 = vmatpush1.bf16.msra.mxu1 %v12060_v51  ;;  %v12129_v51 = vld [vmem:[%s15505_s9 + $0x848] ss:$36 sps:$4 sm:$0xff]  }
 0x6d3   : > { %8315 = vmatpush1.bf16.msra.mxu0 %v12063_v55  ;;  %8193 = vmatprep.subr.bf16.mxu1 %v12068_v54  ;;  %v12130_v55 = vld [vmem:[%s15505_s9 + $0x188] ss:$36 sps:$4 sm:$0xff]  }
 0x6d4   : > { %8316 = vmatprep.subr.bf16.mxu0 %v12071_v58  ;;  %8223 = vmatprep.mubr.bf16.mxu1 %v12298_v48  ;;  %v12131_v54 = vld [vmem:[%s15505_s9 + $0x608] ss:$36 sps:$4 sm:$0xff]   ;;  %v12132_v58 = vld [vmem:[%s15505_s9 + $0x410] ss:$36 sps:$4 sm:$0xff]  }
 0x6d5   : > { %8346 = vmatprep.mubr.bf16.mxu0 %v12298_v48  ;;  %v12083_v48 = vld [vmem:[%s15505_s9 + $0x9f4] ss:$36 sps:$4 sm:$0xff]  }
 0x6d6   : > { %8194 = vmatpush1.bf16.msra.mxu1 %v12066_v59  ;;  %v12133_v59 = vld [vmem:[%s15505_s9 + $0x890] ss:$36 sps:$4 sm:$0xff]  }
 0x6d7   : > { %8317 = vmatpush1.bf16.msra.mxu0 %v12069_v61  ;;  %8195 = vmatprep.subr.bf16.mxu1 %v12074_v62  ;;  %v12134_v61 = vld [vmem:[%s15505_s9 + $0x1d0] ss:$36 sps:$4 sm:$0xff]  }
 0x6d8   : > { %8318 = vmatprep.subr.bf16.mxu0 %v12077_v32  ;;  %v12135_v62 = vld [vmem:[%s15505_s9 + $0x650] ss:$36 sps:$4 sm:$0xff]   ;;  %v12136_v32 = vld [vmem:[%s15505_s9 + $0x458] ss:$36 sps:$4 sm:$0xff]  }
 0x6da   : > { %8196 = vmatpush1.bf16.msra.mxu1 %v12072_v63  ;;  %v12137_v63 = vld [vmem:[%s15505_s9 + $0x8d8] ss:$36 sps:$4 sm:$0xff]  }
 0x6db   : > { %8319 = vmatpush1.bf16.msra.mxu0 %v12075_v0  ;;  %8197 = vmatprep.subr.bf16.mxu1 %v12080_v2  ;;  %v12138_v0 = vld [vmem:[%s15505_s9 + $0x218] ss:$36 sps:$4 sm:$0xff]  }
 0x6dc   : > { %8320 = vmatprep.subr.bf16.mxu0 %v12083_v48  ;;  %v12139_v2 = vld [vmem:[%s15505_s9 + $0x698] ss:$36 sps:$4 sm:$0xff]   ;;  %v12140_v48 = vld [vmem:[%s15505_s9 + $0x920] ss:$36 sps:$4 sm:$0xff]  }
 0x6de   : > { %8198 = vmatpush1.bf16.msra.mxu1 %v12078_v3  ;;  %v12141_v3 = vld [vmem:[%s15505_s9 + $0x968] ss:$36 sps:$4 sm:$0xff]  }
 0x6df   : > { %8321 = vmatpush1.bf16.msra.mxu0 %v12081_v13  ;;  %8199 = vmatprep.subr.bf16.mxu1 %v12086_v4  ;;  %v12142_v13 = vld [vmem:[%s15505_s9 + $0x9b0] ss:$36 sps:$4 sm:$0xff]   ;;  %v5974_v4 = vld [vmem:[%s15506_s10] sm:$0xff] }
 0x6e0   : > { %8322 = vmatprep.subr.bf16.mxu0 %v12089_v5  ;;  %v5981_v5 = vrot.slane %v5974_v4, %v13009_v60 }
 0x6e2   : > { %8200 = vmatpush1.bf16.msra.mxu1 %v12084_v7  ;;  %v5989_v7 = vrot.slane %v5974_v4, %v13223_v15 }
 0x6e3   : > { %8323 = vmatpush1.bf16.msra.mxu0 %v12087_v9  ;;  %8201 = vmatprep.subr.bf16.mxu1 %v12092_v11  ;;  %v5985_v9 = vrot.slane %v5974_v4, %v12981_v49  ;;  %v5993_v11 = vrot.slane %v5974_v4, %v13118_v36  ;;  %v12146_v49 = vld [vmem:[%s15505_s9 + $0xad0] ss:$36 sps:$4 sm:$0xff]  }
 0x6e4   : > { %8324 = vmatprep.subr.bf16.mxu0 %v12095_v24  ;;  %v12145_v24 = vld [vmem:[%s15505_s9 + $0xa88] ss:$36 sps:$4 sm:$0xff]  }
 0x6e6   : > { %8202 = vmatpush1.bf16.msra.mxu1 %v12090_v19 }
 0x6e7   : > { %8325 = vmatpush1.bf16.msra.mxu0 %v12093_v40  ;;  %8203 = vmatprep.subr.bf16.mxu1 %v12098_v14 }
 0x6e8   : > { %8326 = vmatprep.subr.bf16.mxu0 %v12101_v16 }
 0x6ea   : > { %8204 = vmatpush1.bf16.msra.mxu1 %v12096_v53 }
 0x6eb   : > { %8327 = vmatpush1.bf16.msra.mxu0 %v12099_v12  ;;  %8205 = vmatprep.subr.bf16.mxu1 %v12104_v8 }
 0x6ec   : > { %8328 = vmatprep.subr.bf16.mxu0 %v12107_v17 }
 0x6ee   : > { %8206 = vmatpush1.bf16.msra.mxu1 %v12102_v18 }
 0x6ef   : > { %8329 = vmatpush1.bf16.msra.mxu0 %v12105_v21  ;;  %10594 = vmatprep.subr.bf16.mxu1 %v12108_v22 }
 0x6f0   : > { %10616 = vmatprep.subr.bf16.mxu0 %v12109_v23 }
 0x6f1   : > { %8224 = vmatmul.mubr.bf16.vlgmr.msra.gmra.mrb[24].mxu1 %v14735_v10 }
 0x6f2   : > { %8347 = vmatmul.mubr.bf16.vlgmr.msra.gmra.mrb[36].mxu0 %v14735_v10  ;;  %10595 = vmatpush3.bf16.msra.mxu1 %v12110_v46 }
 0x6f3   : > { %8387 = vmatprep.mubr.bf16.mxu1 %v14414_v47  ;;  %10617 = vmatpush3.bf16.msra.mxu0 %v12111_v26  ;;  %v12118_v47 = vld [vmem:[%s15505_s9 + $0xb0] ss:$36 sps:$4 sm:$0xff]  }
 0x6f4   : > { %8427 = vmatprep.mubr.bf16.mxu0 %v14450_v6  ;;  %10596 = vmatprep.subr.bf16.mxu1 %v12112_v27  ;;  %v12120_v6 = vld [vmem:[%s15505_s9 + $0x338] ss:$36 sps:$4 sm:$0xff]  }
 0x6f5   : > { %10618 = vmatprep.subr.bf16.mxu0 %v12113_v28  ;;  %v12147_v28 = vld [vmem:[%s15505_s9 + $0xb18] ss:$36 sps:$4 sm:$0xff]  }
 0x6f6   : > { %10597 = vmatpush3.bf16.msra.mxu1 %v12114_v29  ;;  %v5997_v29 = vrot.slane %v5974_v4, %v13432_v38 }
 0x6f7   : > { %10619 = vmatpush3.bf16.msra.mxu0 %v12115_v30  ;;  %10598 = vmatprep.subr.bf16.mxu1 %v12116_v33  ;;  %v6005_v30 = vrot.slane %v5974_v4, %v1919_v20  ;;  %v6001_v33 = vrot.slane %v5974_v4, %v1915_v31 }
 0x6f8   : > { %10620 = vmatprep.subr.bf16.mxu0 %v12117_v34  ;;  %v6009_v34 = vrot.slane %v5974_v4, %v1923_v43 }
 0x6fa   : > { %10599 = vmatpush3.bf16.msra.mxu1 %v12118_v47 }
 0x6fb   : > { %10621 = vmatpush3.bf16.msra.mxu0 %v12119_v37  ;;  %10600 = vmatprep.subr.bf16.mxu1 %v12120_v6 }
 0x6fc   : > { %10622 = vmatprep.subr.bf16.mxu0 %v12121_v39 }
 0x6fe   : > { %10601 = vmatpush3.bf16.msra.mxu1 %v12122_v1 }
 0x6ff   : > { %10623 = vmatpush3.bf16.msra.mxu0 %v12123_v56  ;;  %10602 = vmatprep.subr.bf16.mxu1 %v12124_v42 }
 0x700   : > { %10624 = vmatprep.subr.bf16.mxu0 %v12125_v52 }
 0x702   : > { %10603 = vmatpush3.bf16.msra.mxu1 %v12126_v45 }
 0x703   : > { %10625 = vmatpush3.bf16.msra.mxu0 %v12127_v35  ;;  %10604 = vmatprep.subr.bf16.mxu1 %v12128_v50 }
 0x704   : > { %10626 = vmatprep.subr.bf16.mxu0 %v12129_v51 }
 0x706   : > { %10605 = vmatpush3.bf16.msra.mxu1 %v12130_v55 }
 0x707   : > { %10627 = vmatpush3.bf16.msra.mxu0 %v12131_v54  ;;  %10606 = vmatprep.subr.bf16.mxu1 %v12132_v58  ;;  %v9972_v54 = vld [vmem:[%s15506_s10 + $0x8] ss:$0 sm:$0xff] }
 0x708   : > { %10628 = vmatprep.subr.bf16.mxu0 %v12133_v59 }
 0x70a   : > { %10607 = vmatpush3.bf16.msra.mxu1 %v12134_v61 }
 0x70b   : > { %10629 = vmatpush3.bf16.msra.mxu0 %v12135_v62  ;;  %10608 = vmatprep.subr.bf16.mxu1 %v12136_v32 }
 0x70c   : > { %10630 = vmatprep.subr.bf16.mxu0 %v12137_v63 }
 0x70e   : > { %10609 = vmatpush3.bf16.msra.mxu1 %v12138_v0 }
 0x70f   : > { %10631 = vmatpush3.bf16.msra.mxu0 %v12139_v2  ;;  %10810 = vmatprep.subr.bf16.mxu1 %v12299_v41 }
 0x711   : > { %8388 = vmatmul.mubr.bf16.vlgmr.msra.gmra.mrb[28].mxu1 %v14424_v57  ;;  %v12143_v57 = vld [vmem:[%s15505_s9 + $0x9f8] ss:$36 sps:$4 sm:$0xff]  }
 0x712   : > { %8428 = vmatmul.mubr.bf16.vlgmr.msra.gmra.mrb[40].mxu0 %v14633_v25  ;;  %10811 = vmatpush3.bf16.msra.mxu1 %v12140_v48  ;;  %v12144_v25 = vld [vmem:[%s15505_s9 + $0xa40] ss:$36 sps:$4 sm:$0xff]  }
 0x713   : > { %10812 = vmatprep.subr.bf16.mxu1 %v12299_v41  ;;  %10826 = vmatprep.mubr.msk.bf16.mxu1 %vm12300_vm1, %v12299_v41 }
 0x716   : > { %10813 = vmatpush3.bf16.msra.mxu1 %v12141_v3 }
 0x717   : > { %10814 = vmatprep.subr.bf16.mxu1 %v12299_v41 }
 0x71a   : > { %10815 = vmatpush3.bf16.msra.mxu1 %v12142_v13 }
 0x71b   : > { %10816 = vmatprep.subr.bf16.mxu1 %v12299_v41 }
 0x71e   : > { %10817 = vmatpush3.bf16.msra.mxu1 %v12143_v57 }
 0x71f   : > { %10818 = vmatprep.subr.bf16.mxu1 %v12299_v41 }
 0x722   : > { %10819 = vmatpush3.bf16.msra.mxu1 %v12144_v25 }
 0x723   : > { %10820 = vmatprep.subr.bf16.mxu1 %v12299_v41 }
 0x724   : > { %v7979_v19 = vpop.f32.mrb[20].mxu1  ;;  %v8102_v40 = vpop.f32.mrb[32].mxu0 }
 0x725   : > { %v10854_v14 = vadd.f32 %v7979_v19, %v5981_v5  ;;  %v10856_v16 = vadd.f32 %v8102_v40, %v5989_v7  ;;  %v7981_v53 = vpop.f32.mrb[21].mxu1  ;;  %v8104_v12 = vpop.f32.mrb[33].mxu0 }
 0x726   : > { %v10855_v60 = vadd.f32 %v7981_v53, %v5985_v9  ;;  %v10857_v8 = vadd.f32 %v8104_v12, %v5993_v11  ;;  %v7983_v15 = vpop.f32.mrb[22].mxu1  ;;  %v8106_v17 = vpop.f32.mrb[34].mxu0  ;;  %10821 = vmatpush3.bf16.msra.mxu1 %v12145_v24 }
 0x727   : > { %v8475_v36 = vmax.f32 %v10854_v14, 0.0  ;;  %v8477_v18 = vmax.f32 %v10856_v16, 0.0  ;;  %v7984_v21 = vpop.f32.mrb[23].mxu1  ;;  %v8107_v22 = vpop.f32.mrb[35].mxu0  ;;  %10822 = vmatprep.subr.bf16.mxu1 %v12299_v41 }
 0x728   : > { %v8476_v23 = vmax.f32 %v10855_v60, 0.0  ;;  %v8478_v46 = vmax.f32 %v10857_v8, 0.0 }
 0x72a   : > { %v10428_v26 = vpack.c.bf16 %v8476_v23, %v8475_v36  ;;  %v10429_v27 = vpack.c.bf16 %v8478_v46, %v8477_v18  ;;  %10823 = vmatpush3.bf16.msra.mxu1 %v12146_v49 }
 0x72b   : > { %10824 = vmatprep.subr.bf16.mxu1 %v12299_v41 }
 0x72c   : > { %8521 = vst [vmem:[#allocation3] sm:$0xff] %v10428_v26  ;;  %8522 = vst [vmem:[#allocation3 + $0x8] sm:$0xff] %v10429_v27 }
 0x72e   : > { %10825 = vmatpush3.bf16.msra.mxu1 %v12147_v28 }
 0x731   : > { %10827 = vmatmul.mubr.bf16.vlgmr.msra.gmra.mrb[32].mxu1 %v14735_v10 }
 0x7c4   : > { %v8225_v47 = vpop.f32.mrb[24].mxu1 }
 0x7c5   : > { %v10858_v37 = vadd.f32 %v8225_v47, %v5997_v29  ;;  %v8348_v6 = vpop.f32.mrb[36].mxu0  ;;  %v8227_v41 = vpop.f32.mrb[25].mxu1 }
 0x7c6   : > { %v10860_v39 = vadd.f32 %v8348_v6, %v6005_v30  ;;  %v10859_v1 = vadd.f32 %v8227_v41, %v6001_v33  ;;  %v8350_v56 = vpop.f32.mrb[37].mxu0  ;;  %v8229_v42 = vpop.f32.mrb[26].mxu1 }
 0x7c7   : > { %v8479_v10 = vmax.f32 %v10858_v37, 0.0  ;;  %v10861_v52 = vadd.f32 %v8350_v56, %v6009_v34  ;;  %v8352_v38 = vpop.f32.mrb[38].mxu0  ;;  %v8230_v45 = vpop.f32.mrb[27].mxu1 }
 0x7c8   : > { %v8481_v35 = vmax.f32 %v10860_v39, 0.0  ;;  %v8480_v20 = vmax.f32 %v10859_v1, 0.0  ;;  %v8353_v50 = vpop.f32.mrb[39].mxu0 }
 0x7c9   : > { %v8482_v51 = vmax.f32 %v10861_v52, 0.0 }
 0x7ca   : > { %v10430_v31 = vpack.c.bf16 %v8480_v20, %v8479_v10 }
 0x7cb   : > { %v10431_v55 = vpack.c.bf16 %v8482_v51, %v8481_v35 }
 0x7cc   : > { %8523 = vst [vmem:[#allocation3 + $0x10] sm:$0xff] %v10430_v31 }
 0x7cd   : > { %8524 = vst [vmem:[#allocation3 + $0x18] sm:$0xff] %v10431_v55 }
 0x7e4   : > { %v10610_v44 = vpop.f32.mrb[28].mxu1 }
 0x7e5   : > { %v10632_v43 = vpop.f32.mrb[40].mxu0  ;;  %v10611_v58 = vpop.f32.mrb[29].mxu1 }
 0x7e6   : > { %v10612_v59 = vadd.f32 %v10611_v58, %v10610_v44  ;;  %v10633_v61 = vpop.f32.mrb[41].mxu0  ;;  %v10613_v62 = vpop.f32.mrb[30].mxu1 }
 0x7e7   : > { %v10634_v32 = vadd.f32 %v10633_v61, %v10632_v43  ;;  %v10635_v63 = vpop.f32.mrb[42].mxu0  ;;  %v10614_v0 = vpop.f32.mrb[31].mxu1 }
 0x7e8   : > { %v8390_v2 = vadd.f32 %v10612_v59, %v9972_v54  ;;  %v10636_v48 = vpop.f32.mrb[43].mxu0 }
 0x7ea   : > { %v8430_v3 = vadd.f32 %v10634_v32, %v8390_v2 }
 0x804   : > { %v8469_v13 = vpop.f32.mrb[32].mxu1 }
 0x805   : > { %v8470_v57 = vadd.f32 %v8469_v13, %v8430_v3  ;;  %v10828_v25 = vpop.f32.mrb[33].mxu1 }
 0x806   : > { %v8472_v4 = vpop.f32.mrb[34].mxu1 }
 0x807   : > { %v8483_v5 = vmax.f32 %v8470_v57, 0.0  ;;  %v10829_v7 = vpop.f32.mrb[35].mxu1 }
 0x809   : > { %v10432_v9 = vpack.c.bf16 %v8483_v5, %v8483_v5 }
 0x80b   : > { %8525 = vst [vmem:[#allocation3 + $0x20] sm:$0xf] %v10432_v9 }
 0x80c PF: > { %8529 = sbr.rel (%p1144_p1) target bundleno = 2372 (0x944), region = 129  ;;  %v12149_v11 = vld [vmem:[%s12752_s19 + $0x40] sm:$0xff] (!%p1144_p1)   ;;  %v12153_v14 = vld [vmem:[%s12752_s19 + $0x48] sm:$0xff] (!%p1144_p1)   ;;  %v12157_v60 = vld [vmem:[%s12752_s19 + $0x50] sm:$0xff] (!%p1144_p1)   ;;  %vm12304_vm5 = vmmov (!%p1144_p1), 0  }
 0x80d   : > { %v12150_v24 = vld [vmem:[%s12752_s19] sm:$0xff] (!%p1144_p1)   ;;  %10647 = vmatprep.subr.bf16.mxu0 (!%p1144_p1), %v12149_v11  ;;  %v12154_v16 = vld [vmem:[%s12752_s19 + $0x8] sm:$0xff] (!%p1144_p1)   ;;  %v12158_v8 = vld [vmem:[%s12752_s19 + $0x10] sm:$0xff] (!%p1144_p1)  }
 0x80e   : > { %v12151_v19 = vld [vmem:[%s12752_s19 + $0xc0] sm:$0xff] (!%p1144_p1)   ;;  %10648 = vmatpush3.bf16.msra.mxu0 (!%p1144_p1), %v12150_v24  ;;  %v12155_v53 = vld [vmem:[%s12752_s19 + $0xc8] sm:$0xff] (!%p1144_p1)   ;;  %v12159_v15 = vld [vmem:[%s12752_s19 + $0xd0] sm:$0xff] (!%p1144_p1)  }
 0x80f   : > { %v12152_v40 = vld [vmem:[%s12752_s19 + $0x80] sm:$0xff] (!%p1144_p1)   ;;  %10669 = vmatprep.subr.bf16.mxu1 (!%p1144_p1), %v12151_v19  ;;  %10649 = vmatprep.subr.bf16.mxu0 (!%p1144_p1), %v12153_v14  ;;  %v12156_v12 = vld [vmem:[%s12752_s19 + $0x88] sm:$0xff] (!%p1144_p1)   ;;  %v12160_v17 = vld [vmem:[%s12752_s19 + $0x90] sm:$0xff] (!%p1144_p1)  }
 0x810   : > { %10670 = vmatpush3.bf16.msra.mxu1 (!%p1144_p1), %v12152_v40  ;;  %v12161_v49 = vld [vmem:[%s12752_s19 + $0x58] sm:$0xff] (!%p1144_p1)   ;;  %v12165_v22 = vld [vmem:[%s12752_s19 + $0x60] sm:$0xff] (!%p1144_p1)   ;;  %v12169_v27 = vld [vmem:[%s12752_s19 + $0x68] sm:$0xff] (!%p1144_p1)  }
 0x811   : > { %10671 = vmatprep.subr.bf16.mxu1 (!%p1144_p1), %v12155_v53  ;;  %v12162_v36 = vld [vmem:[%s12752_s19 + $0x18] sm:$0xff] (!%p1144_p1)   ;;  %v12166_v23 = vld [vmem:[%s12752_s19 + $0x20] sm:$0xff] (!%p1144_p1)   ;;  %v12170_v28 = vld [vmem:[%s12752_s19 + $0x28] sm:$0xff] (!%p1144_p1)  }
 0x812   : > { %10650 = vmatpush3.bf16.msra.mxu0 (!%p1144_p1), %v12154_v16  ;;  %v12163_v18 = vld [vmem:[%s12752_s19 + $0xd8] sm:$0xff] (!%p1144_p1)   ;;  %v12167_v46 = vld [vmem:[%s12752_s19 + $0xe0] sm:$0xff] (!%p1144_p1)   ;;  %v12171_v29 = vld [vmem:[%s12752_s19 + $0xe8] sm:$0xff] (!%p1144_p1)  }
 0x813   : > { %10651 = vmatprep.subr.bf16.mxu0 %v12157_v60  ;;  %v12164_v21 = vld [vmem:[%s12752_s19 + $0x98] sm:$0xff]   ;;  %v12168_v26 = vld [vmem:[%s12752_s19 + $0xa0] sm:$0xff]   ;;  %v12172_v30 = vld [vmem:[%s12752_s19 + $0xa8] sm:$0xff]  }
 0x814   : > { %10672 = vmatpush3.bf16.msra.mxu1 %v12156_v12  ;;  %v12173_v33 = vld [vmem:[%s12752_s19 + $0x70] sm:$0xff]   ;;  %v12177_v6 = vld [vmem:[%s12752_s19 + $0x78] sm:$0xff]   ;;  %v12183_v52 = vld [vmem:[%s12752_s19 + $0x140] sm:$0xff]  }
 0x815   : > { %10673 = vmatprep.subr.bf16.mxu1 %v12159_v15  ;;  %v12174_v34 = vld [vmem:[%s12752_s19 + $0x30] sm:$0xff]   ;;  %v12178_v41 = vld [vmem:[%s12752_s19 + $0x38] sm:$0xff]   ;;  %v8531_v38 = vld [vmem:[#allocation3 + $0x8] sm:$0xff] }
 0x816   : > { %10652 = vmatpush3.bf16.msra.mxu0 %v12158_v8  ;;  %v12175_v47 = vld [vmem:[%s12752_s19 + $0xf0] sm:$0xff]   ;;  %v12179_v39 = vld [vmem:[%s12752_s19 + $0xf8] sm:$0xff]   ;;  %v10342_v45 = vcombine.low %v8531_v38, %v8531_v38  ;;  %v10343_v35 = vcombine.high %v8531_v38, %v8531_v38  ;;  %v12186_v20 = vld [vmem:[%s12752_s19 + $0x100] sm:$0xff]   ;;  %v12303_v8 = vmov 0.0  }
 0x817   : > { %10653 = vmatprep.subr.bf16.mxu0 %v12161_v49  ;;  %v12176_v37 = vld [vmem:[%s12752_s19 + $0xb0] sm:$0xff]   ;;  %v8530_v1 = vld [vmem:[#allocation3] sm:$0xff]  ;;  %v12189_v31 = vld [vmem:[%s12752_s19 + $0x148] sm:$0xff]  }
 0x818   : > { %10674 = vmatpush3.bf16.msra.mxu1 %v12160_v17  ;;  %v10340_v56 = vcombine.low %v8530_v1, %v8530_v1  ;;  %v10341_v42 = vcombine.high %v8530_v1, %v8530_v1  ;;  %v12182_v10 = vld [vmem:[%s12752_s19 + $0xb8] sm:$0xff]   ;;  %v12187_v50 = vld [vmem:[%s12752_s19 + $0x1c0] sm:$0xff]   ;;  %9222 = vmatprep.mubr.bf16.mxu1 %v10343_v35  ;;  %v12190_v55 = vld [vmem:[%s12752_s19 + $0x108] sm:$0xff]  }
 0x819   : > { %10675 = vmatprep.subr.bf16.mxu1 %v12163_v18  ;;  %v12188_v51 = vld [vmem:[%s12752_s19 + $0x180] sm:$0xff]   ;;  %v12191_v44 = vld [vmem:[%s12752_s19 + $0x1c8] sm:$0xff]   ;;  %v12193_v54 = vld [vmem:[%s12752_s19 + $0x150] sm:$0xff]  }
 0x81a   : > { %10654 = vmatpush3.bf16.msra.mxu0 %v12162_v36  ;;  %9182 = vmatprep.mubr.bf16.mxu0 %v10341_v42  ;;  %v12192_v43 = vld [vmem:[%s12752_s19 + $0x188] sm:$0xff]   ;;  %v12194_v58 = vld [vmem:[%s12752_s19 + $0x110] sm:$0xff]   ;;  %v12197_v62 = vld [vmem:[%s12752_s19 + $0x158] sm:$0xff]  }
 0x81b   : > { %10655 = vmatprep.subr.bf16.mxu0 %v12165_v22  ;;  %v12195_v59 = vld [vmem:[%s12752_s19 + $0x1d0] sm:$0xff]   ;;  %v12198_v32 = vld [vmem:[%s12752_s19 + $0x118] sm:$0xff]   ;;  %v12201_v2 = vld [vmem:[%s12752_s19 + $0x160] sm:$0xff]  }
 0x81c   : > { %10676 = vmatpush3.bf16.msra.mxu1 %v12164_v21  ;;  %v12196_v61 = vld [vmem:[%s12752_s19 + $0x190] sm:$0xff]   ;;  %v12199_v63 = vld [vmem:[%s12752_s19 + $0x1d8] sm:$0xff]   ;;  %v12202_v48 = vld [vmem:[%s12752_s19 + $0x120] sm:$0xff]  }
 0x81d   : > { %10677 = vmatprep.subr.bf16.mxu1 %v12167_v46  ;;  %v12200_v0 = vld [vmem:[%s12752_s19 + $0x198] sm:$0xff]   ;;  %v12203_v3 = vld [vmem:[%s12752_s19 + $0x1e0] sm:$0xff]   ;;  %v12205_v57 = vld [vmem:[%s12752_s19 + $0x168] sm:$0xff]  }
 0x81e   : > { %10656 = vmatpush3.bf16.msra.mxu0 %v12166_v23  ;;  %v12204_v13 = vld [vmem:[%s12752_s19 + $0x1a0] sm:$0xff]   ;;  %v12206_v25 = vld [vmem:[%s12752_s19 + $0x128] sm:$0xff]   ;;  %v12209_v7 = vld [vmem:[%s12752_s19 + $0x170] sm:$0xff]  }
 0x81f   : > { %10657 = vmatprep.subr.bf16.mxu0 %v12169_v27  ;;  %v12207_v4 = vld [vmem:[%s12752_s19 + $0x1e8] sm:$0xff]   ;;  %v12210_v9 = vld [vmem:[%s12752_s19 + $0x130] sm:$0xff]   ;;  %v12213_v19 = vld [vmem:[%s12752_s19 + $0x178] sm:$0xff]  }
 0x820   : > { %10678 = vmatpush3.bf16.msra.mxu1 %v12168_v26  ;;  %v12208_v5 = vld [vmem:[%s12752_s19 + $0x1a8] sm:$0xff]   ;;  %v12211_v11 = vld [vmem:[%s12752_s19 + $0x1f0] sm:$0xff]   ;;  %v12214_v40 = vld [vmem:[%s12752_s19 + $0x138] sm:$0xff]  }
 0x821   : > { %10679 = vmatprep.subr.bf16.mxu1 %v12171_v29  ;;  %v12212_v24 = vld [vmem:[%s12752_s19 + $0x1b0] sm:$0xff]   ;;  %v12215_v14 = vld [vmem:[%s12752_s19 + $0x1f8] sm:$0xff]   ;;  %v12221_v36 = vld [vmem:[%s12752_s19 + $0x200] sm:$0xff]  }
 0x822   : > { %10658 = vmatpush3.bf16.msra.mxu0 %v12170_v28  ;;  %v8532_v16 = vld [vmem:[#allocation3 + $0x10] sm:$0xff]  ;;  %v12218_v60 = vld [vmem:[%s12752_s19 + $0x1b8] sm:$0xff]   ;;  %v12225_v23 = vld [vmem:[%s12752_s19 + $0x220] sm:$0xff]  }
 0x823   : > { %10659 = vmatprep.subr.bf16.mxu0 %v12173_v33  ;;  %v10344_v53 = vcombine.low %v8532_v16, %v8532_v16  ;;  %v10345_v12 = vcombine.high %v8532_v16, %v8532_v16  ;;  %v8533_v15 = vld [vmem:[#allocation3 + $0x18] sm:$0xff]  ;;  %v12222_v18 = vld [vmem:[%s12752_s19 + $0x208] sm:$0xff]   ;;  %v12229_v28 = vld [vmem:[#allocation3 + $0x20] ss:$0 sps:$4 sm:$0xff]  }
 0x824   : > { %10680 = vmatpush3.bf16.msra.mxu1 %v12172_v30  ;;  %v10346_v17 = vcombine.low %v8533_v15, %v8533_v15  ;;  %v10347_v49 = vcombine.high %v8533_v15, %v8533_v15  ;;  %v12223_v21 = vld [vmem:[%s12752_s19 + $0x210] sm:$0xff]   ;;  %v12224_v22 = vld [vmem:[%s12752_s19 + $0x218] sm:$0xff]   ;;  %v12226_v46 = vld [vmem:[%s12752_s19 + $0x228] sm:$0xff]  }
 0x825   : > { %10681 = vmatprep.subr.bf16.mxu1 %v12175_v47  ;;  %v12227_v26 = vld [vmem:[%s12752_s19 + $0x230] sm:$0xff]   ;;  %v12228_v27 = vld [vmem:[%s12752_s19 + $0x238] sm:$0xff]  }
 0x826   : > { %10660 = vmatpush3.bf16.msra.mxu0 %v12174_v34  ;;  %v10339_v30 = vld [vmem:[%s1171_s28] ss:$0 sm:$0xff] }
 0x827   : > { %10661 = vmatprep.subr.bf16.mxu0 %v12177_v6 }
 0x828   : > { %10682 = vmatpush3.bf16.msra.mxu1 %v12176_v37 }
 0x829   : > { %10683 = vmatprep.subr.bf16.mxu1 %v12179_v39 }
 0x82a   : > { %10662 = vmatpush3.bf16.msra.mxu0 %v12178_v41 }
 0x82b   : > { %10691 = vmatprep.subr.bf16.mxu0 %v12183_v52 }
 0x82c   : > { %10684 = vmatpush3.bf16.msra.mxu1 %v12182_v10 }
 0x82d   : > { %9183 = vmatmul.mubr.bf16.vlgmr.msra.gmra.mrb[0].mxu0 %v10340_v56  ;;  %10713 = vmatprep.subr.bf16.mxu1 %v12187_v50 }
 0x82e   : > { %10692 = vmatpush3.bf16.msra.mxu0 %v12186_v20  ;;  %9262 = vmatprep.mubr.bf16.mxu0 %v10345_v12 }
 0x82f   : > { %9223 = vmatmul.mubr.bf16.vlgmr.msra.gmra.mrb[0].mxu1 %v10342_v45  ;;  %10693 = vmatprep.subr.bf16.mxu0 %v12189_v31 }
 0x830   : > { %10714 = vmatpush3.bf16.msra.mxu1 %v12188_v51  ;;  %9302 = vmatprep.mubr.bf16.mxu1 %v10347_v49 }
 0x831   : > { %10715 = vmatprep.subr.bf16.mxu1 %v12191_v44 }
 0x832   : > { %10694 = vmatpush3.bf16.msra.mxu0 %v12190_v55 }
 0x833   : > { %10695 = vmatprep.subr.bf16.mxu0 %v12193_v54 }
 0x834   : > { %10716 = vmatpush3.bf16.msra.mxu1 %v12192_v43 }
 0x835   : > { %10717 = vmatprep.subr.bf16.mxu1 %v12195_v59 }
 0x836   : > { %10696 = vmatpush3.bf16.msra.mxu0 %v12194_v58 }
 0x837   : > { %10697 = vmatprep.subr.bf16.mxu0 %v12197_v62 }
 0x838   : > { %10718 = vmatpush3.bf16.msra.mxu1 %v12196_v61 }
 0x839   : > { %10719 = vmatprep.subr.bf16.mxu1 %v12199_v63 }
 0x83a   : > { %10698 = vmatpush3.bf16.msra.mxu0 %v12198_v32 }
 0x83b   : > { %10699 = vmatprep.subr.bf16.mxu0 %v12201_v2 }
 0x83c   : > { %10720 = vmatpush3.bf16.msra.mxu1 %v12200_v0 }
 0x83d   : > { %10721 = vmatprep.subr.bf16.mxu1 %v12203_v3 }
 0x83e   : > { %10700 = vmatpush3.bf16.msra.mxu0 %v12202_v48 }
 0x83f   : > { %10701 = vmatprep.subr.bf16.mxu0 %v12205_v57 }
 0x840   : > { %10722 = vmatpush3.bf16.msra.mxu1 %v12204_v13 }
 0x841   : > { %10723 = vmatprep.subr.bf16.mxu1 %v12207_v4 }
 0x842   : > { %10702 = vmatpush3.bf16.msra.mxu0 %v12206_v25 }
 0x843   : > { %10703 = vmatprep.subr.bf16.mxu0 %v12209_v7 }
 0x844   : > { %10724 = vmatpush3.bf16.msra.mxu1 %v12208_v5 }
 0x845   : > { %10725 = vmatprep.subr.bf16.mxu1 %v12211_v11 }
 0x846   : > { %10704 = vmatpush3.bf16.msra.mxu0 %v12210_v9 }
 0x847   : > { %10705 = vmatprep.subr.bf16.mxu0 %v12213_v19 }
 0x848   : > { %10726 = vmatpush3.bf16.msra.mxu1 %v12212_v24 }
 0x849   : > { %10727 = vmatprep.subr.bf16.mxu1 %v12215_v14 }
 0x84a   : > { %10706 = vmatpush3.bf16.msra.mxu0 %v12214_v40 }
 0x84b   : > { %10830 = vmatprep.subr.bf16.mxu0 %v12303_v8 }
 0x84c   : > { %10728 = vmatpush3.bf16.msra.mxu1 %v12218_v60 }
 0x84d   : > { %9263 = vmatmul.mubr.bf16.vlgmr.msra.gmra.mrb[4].mxu0 %v10344_v53 }
 0x84e   : > { %10831 = vmatpush3.bf16.msra.mxu0 %v12221_v36  ;;  %10846 = vmatprep.mubr.msk.bf16.mxu0 %vm12304_vm5, %v12303_v8 }
 0x84f   : > { %9303 = vmatmul.mubr.bf16.vlgmr.msra.gmra.mrb[4].mxu1 %v10346_v17  ;;  %10832 = vmatprep.subr.bf16.mxu0 %v12303_v8 }
 0x852   : > { %10833 = vmatpush3.bf16.msra.mxu0 %v12222_v18 }
 0x853   : > { %10834 = vmatprep.subr.bf16.mxu0 %v12303_v8 }
 0x856   : > { %10835 = vmatpush3.bf16.msra.mxu0 %v12223_v21 }
 0x857   : > { %10836 = vmatprep.subr.bf16.mxu0 %v12303_v8 }
 0x85a   : > { %10837 = vmatpush3.bf16.msra.mxu0 %v12224_v22 }
 0x85b   : > { %10838 = vmatprep.subr.bf16.mxu0 %v12303_v8 }
 0x85e   : > { %10839 = vmatpush3.bf16.msra.mxu0 %v12225_v23 }
 0x85f   : > { %10840 = vmatprep.subr.bf16.mxu0 %v12303_v8 }
 0x862   : > { %10841 = vmatpush3.bf16.msra.mxu0 %v12226_v46 }
 0x863   : > { %10842 = vmatprep.subr.bf16.mxu0 %v12303_v8 }
 0x866   : > { %10843 = vmatpush3.bf16.msra.mxu0 %v12227_v26 }
 0x867   : > { %10844 = vmatprep.subr.bf16.mxu0 %v12303_v8 }
 0x86a   : > { %10845 = vmatpush3.bf16.msra.mxu0 %v12228_v27 }
 0x86d   : > { %10847 = vmatmul.mubr.bf16.vlgmr.msra.gmra.mrb[8].mxu0 %v12229_v28 }
 0x900   : > { %v10663_v29 = vpop.f32.mrb[0].mxu0 }
 0x901   : > { %v10664_v33 = vpop.f32.mrb[1].mxu0 }
 0x902   : > { %v10665_v34 = vadd.f32 %v10664_v33, %v10663_v29  ;;  %v10666_v47 = vpop.f32.mrb[2].mxu0  ;;  %v10685_v37 = vpop.f32.mrb[0].mxu1 }
 0x903   : > { %v10667_v6 = vpop.f32.mrb[3].mxu0  ;;  %v10686_v41 = vpop.f32.mrb[1].mxu1 }
 0x904   : > { %v9185_v39 = vadd.f32 %v10665_v34, %v10339_v30  ;;  %v10687_v1 = vadd.f32 %v10686_v41, %v10685_v37  ;;  %v10688_v56 = vpop.f32.mrb[2].mxu1 }
 0x905   : > { %v10689_v42 = vpop.f32.mrb[3].mxu1 }
 0x906   : > { %v9225_v10 = vadd.f32 %v10687_v1, %v9185_v39 }
 0x920   : > { %v10707_v52 = vpop.f32.mrb[4].mxu0 }
 0x921   : > { %v10708_v38 = vpop.f32.mrb[5].mxu0 }
 0x922   : > { %v10709_v45 = vadd.f32 %v10708_v38, %v10707_v52  ;;  %v10710_v35 = vpop.f32.mrb[6].mxu0  ;;  %v10729_v20 = vpop.f32.mrb[4].mxu1 }
 0x923   : > { %v10711_v50 = vpop.f32.mrb[7].mxu0  ;;  %v10730_v51 = vpop.f32.mrb[5].mxu1 }
 0x924   : > { %v9265_v31 = vadd.f32 %v10709_v45, %v9225_v10  ;;  %v10731_v55 = vadd.f32 %v10730_v51, %v10729_v20  ;;  %v10732_v44 = vpop.f32.mrb[6].mxu1 }
 0x925   : > { %v10733_v43 = vpop.f32.mrb[7].mxu1 }
 0x926   : > { %v9305_v54 = vadd.f32 %v10731_v55, %v9265_v31 }
 0x940   : > { %v9344_v58 = vpop.f32.mrb[8].mxu0 }
 0x941   : > { %v9345_v59 = vadd.f32 %v9344_v58, %v9305_v54  ;;  %v10848_v61 = vpop.f32.mrb[9].mxu0 }
 0x942   : > { %v9347_v62 = vpop.f32.mrb[10].mxu0 }
 0x943   : > { %9350 = vst [vmem:[%s12754_s23] sm:$0xff] %v9345_v59  ;;  %v10849_v32 = vpop.f32.mrb[11].mxu0 }
 0x944 PF: > { %s15535_s27 = sld [smem:[#allocation16_spill]]  ;;  %s10423_s19 = sshll.u32 %s12731_s22, 7 }
 0x945   : > { %s15537_s24 = sld [smem:[#allocation18_spill]]  ;;  %s9368_s30 = sshll.u32 %s12754_s23, 4  ;;  %s9369_s30 = int_to_ptr.vmem [resolvable:$true] %s9368_s30 }
 0x946   : > { %s12230_s11 = scalar_lea.vmem %s9369_s30, 128  ;;  %s12305_s25 = smov [#allocation5]  }
 0x947   : > { %p12231_p9 = scmp.ne.s32.totalorder %s9369_s30, %s12230_s11  ;;  %s12234_s26 = sshll.u32 %s12305_s25, 4  ;;  %s12235_s26 = int_to_ptr.vmem [resolvable:$false] %s12234_s26 }
 0x948   : > { %s12236_s18 = scalar_lea.vmem %s12235_s26, 256  ;;  %p12237_p13 = scmp.lt.s32.totalorder %s9369_s30, %s12235_s26 }
 0x949   : > { %p12232_p11 = pnand %p12231_p9, %p12409_p6  ;;  %p12238_p0 = scmp.lt.s32.totalorder %s12236_s18, %s12230_s11 }
 0x94a   : > { %s9352_s17 = scalar_lea.sflag [#allocation6], %s15535_s27 }
 0x94b   : > { %s15458_s15 = scalar_lea.hbm %s15537_s24, %s10423_s19  ;;  %p12233_p12 = pneg %p12232_p11 }
 0x94c   : > { %p12239_p1 = por %p12238_p0, %p12237_p13 }
 0x94e   : > { %p12240_p2 = pnand %p12239_p1, %p12233_p12 }
 0x950   : > { %12243 = shalt.err (!%p12240_p2)
}
 0x951   : > { %s12244_s22 = scalar_lea.hbm %s15458_s15, 128  ;;  %s12248_s21 = scalar_lea.hbm %s15537_s24, 384 }
 0x952   : > { %p12245_p3 = scmp.ne.s32.totalorder %s15458_s15, %s12244_s22  ;;  %p12249_p7 = scmp.lt.u32.totalorder %s15458_s15, %s15537_s24 }
 0x953   : > { %p12250_p8 = scmp.lt.u32.totalorder %s12248_s21, %s12244_s22  ;;  %p12252_p11 = scmp.lt.u32.totalorder %s12244_s22, %s15458_s15 }
 0x954   : > { %p12246_p4 = pnand %p12245_p3, %p12409_p6 }
 0x955   : > { %p12251_p9 = por %p12250_p8, %p12249_p7 }
 0x956   : > { %p12247_p5 = pneg %p12246_p4 }
 0x957   : > { %p12253_p12 = por %p12252_p11, %p12251_p9 }
 0x959   : > { %p12254_p13 = pnand %p12253_p12, %p12247_p5 }
 0x95b   : > { %12257 = shalt.err (!%p12254_p13)
}
 0x95c   : > { %10929 = dma.vmem_to_hbm [thread:$0]  (%p12409_p6), %s9369_s30, 128, %s15458_s15, %s9352_s17  }
 0x95d PF: > { %s15538_s27 = sld [smem:[#allocation11_spill]]  ;;  %s15539_s19 = sld [smem:[#allocation8_spill]] }
 0x963   : > { %p10935_p0 = scmp.ge.s32.totalorder %s15538_s27, 2  ;;  %s9380_s16 = sand.u32 1, %s15539_s19  }
 0x964   : > { %s9381_s11 = scalar_lea.sflag [#allocation6], %s9380_s16 }
 0x965   : > { %p10932_p1 = pnand %p10935_p0, %p12418_p10 }
 0x967   : > { %12275 = dma.done.wait (!%p10932_p1), %s9381_s11, 128  }
 0x968   : > { %12277 = vsyncadd (!%p10932_p1), %s9381_s11, 4294967168  ;;  %s15541_s28 = sld [smem:[#allocation12_spill]]  ;;  %s15542_s25 = sld [smem:[#allocation9_spill]] }
 0x969   : > { %s15543_s26 = sld [smem:[#allocation10_spill]]  ;;  %s15544_s27 = sld [smem:[#allocation14_spill]] }
 0x96e   : > { %p23_p2 = scmp.ge.s32.totalorder %s15541_s28, 7  }
 0x970   :  { %25 = sbr.rel (!%p23_p2) target bundleno = 6 (0x6), region = 178 }
 0x977   :  { %9386 = vsyncpa [#allocation6], 1 }
 0x978   :  { %9388 = vsyncpa [#allocation6 + $0x1], 1 }

</bundles_post_ra>
